<compile_context>
chip_gen: v7x
topology: tpu7x:2x2x1
jax: 0.10.0
libtpu: 0.0.40
codegen_flags: <defaults>
</compile_context>

<pallas_src>
import functools

import numpy as np
import jax
import jax.numpy as jnp
from jax.experimental import pallas as pl
from jax.experimental.pallas import tpu as pltpu


def _round_up(x, m):
    return (x + m - 1) // m * m


# ----------------------------------------------------------------------------
# Fused kernel: i2s conv chain + s2s convs + GRU gate math, one batch el / step
# ----------------------------------------------------------------------------
def _mconv_gru_kernel(x_ref, h_ref, w1_ref, w2_ref, w3_ref, ws_ref, b_ref,
                      m1_ref, m2_ref, o_ref,
                      col1_ref, col2_ref, col3_ref, cols_ref, t1_ref, t2_ref,
                      *, Wc, k1, k2, ci, co, L0p, L1p, L2p):
    kh1, kw1 = k1
    kh2, kw2 = k2
    ph1, pw1 = (kh1 - 1) // 2, (kw1 - 1) // 2
    ph2, pw2 = (kh2 - 1) // 2, (kw2 - 1) // 2
    m1 = ph1 * Wc + pw1          # flat halo reach of the i2s kernel
    m2 = ph2 * Wc + pw2          # flat halo reach of the s2s kernel
    a0 = m1 + 2 * m2             # flat canvas offset of the H x W interior
    bf16 = jnp.bfloat16

    def im2col(dst_ref, src, base, kh, kw, cin, out_len):
        """Pack the kh*kw shifted lane-slices of the stage input into dst_ref.

        src(s, l) returns the (cin, l) slice of the stage input starting at
        flat index s (static).  Row group t of dst_ref holds the input shifted
        by tap offset t, so the whole stage reduces to ONE
        (Cout, kh*kw*cin) @ (kh*kw*cin, out_len) MXU matmul.
        """
        ph, pw = (kh - 1) // 2, (kw - 1) // 2
        t = 0
        for dy in range(kh):
            for dx in range(kw):
                s = base + (dy - ph) * Wc + (dx - pw)      # static int >= 0
                dst_ref[t * cin:(t + 1) * cin, :] = src(s, out_len)
                t += 1

    # ---- stage 1: input-to-state conv1 of x (z|r|h stacked along Cout) ------
    im2col(col1_ref, lambda s, l: x_ref[0, :, s:s + l], m1, kh1, kw1, ci, L1p)
    y1 = jnp.dot(w1_ref[...], col1_ref[...], preferred_element_type=jnp.float32)
    # re-zero the SAME-padding halo (and the 128-alignment tail) exactly
    t1_ref[...] = (y1 * m1_ref[...]).astype(bf16)

    # ---- stage 2: chained conv2 (block-diagonal z,r,h weights) --------------
    im2col(col2_ref, lambda s, l: t1_ref[:, s:s + l], m2, kh2, kw2, 3 * co, L2p)
    y2 = jnp.dot(w2_ref[...], col2_ref[...], preferred_element_type=jnp.float32)
    t2_ref[...] = (y2 * m2_ref[...]).astype(bf16)

    # ---- stage 3: chained conv3 ----------------------------------------------
    im2col(col3_ref, lambda s, l: t2_ref[:, s:s + l], m2, kh2, kw2, 3 * co, L0p)
    xall = jnp.dot(w3_ref[...], col3_ref[...], preferred_element_type=jnp.float32)

    # ---- state-to-state conv of h (hz|hr|hh stacked along Cout) --------------
    im2col(cols_ref, lambda s, l: h_ref[0, :, s:s + l].astype(bf16),
           a0, kh2, kw2, co, L0p)
    hall = jnp.dot(ws_ref[...], cols_ref[...], preferred_element_type=jnp.float32)

    # ---- fused GRU gate math on lane-dense (3co, L0p) tiles (all f32) --------
    pre = hall + b_ref[...]                               # pre-broadcast bias
    zr = jax.nn.sigmoid(pre[:2 * co] + xall[:2 * co])
    z, r = zr[:co], zr[co:]
    hc = pre[2 * co:] + r * xall[2 * co:]
    hc = jnp.where(hc >= 0, hc, 0.2 * hc)                 # leaky_relu(0.2)
    h_prev = h_ref[0, :, a0:a0 + L0p]
    o_ref[...] = ((1.0 - z) * hc + z * h_prev)[None].astype(o_ref.dtype)


# ----------------------------------------------------------------------------
# Weight / mask plumbing (wrapper side)
# ----------------------------------------------------------------------------
def _xavier_uniform_hwio(key, kh, kw, cin, cout):
    # Matches nn.init.xavier_uniform_ on an OIHW conv weight (gain=1).
    fan_in = cin * kh * kw
    fan_out = cout * kh * kw
    bound = (6.0 / (fan_in + fan_out)) ** 0.5
    return jax.random.uniform(key, (kh, kw, cin, cout), jnp.float32,
                              -bound, bound)


def _to_big(w_hwio):
    """(kh, kw, Cin, Cout) HWIO -> (Cout, kh*kw*Cin) im2col weight matrix.

    Column ordering matches the kernel's im2col rows: col = t*Cin + c with
    tap index t = dy*kw + dx.
    """
    kh, kw, cin, cout = w_hwio.shape
    return jnp.transpose(w_hwio, (3, 0, 1, 2)).reshape(cout, kh * kw * cin)


def _block_diag_hwio(wz, wr, wh):
    """Three (kh,kw,C,C) HWIO weights -> (kh,kw,3C,3C) block-diagonal HWIO."""
    # NOTE: 2/3 of the block-diagonal matmul is zeros; fine while 3C stays well
    # under the MXU width (24 here).  Split into three matmuls at large C.
    kh, kw, c, _ = wz.shape
    big = jnp.zeros((kh, kw, 3 * c, 3 * c), wz.dtype)
    big = big.at[:, :, :c, :c].set(wz)
    big = big.at[:, :, c:2 * c, c:2 * c].set(wr)
    big = big.at[:, :, 2 * c:, 2 * c:].set(wh)
    return big


def _interior_mask(start, length, H, W, Ph, Pw, Wc, rows):
    """(rows, length) f32: 1.0 where flat canvas position (start + j) lies in
    the H x W interior; 0.0 in the SAME-padding halo and the alignment tail."""
    q = start + np.arange(length)
    yc, xc = q // Wc, q % Wc
    m = ((yc >= Ph) & (yc < Ph + H) & (xc >= Pw) & (xc < Pw + W)
         ).astype(np.float32)
    return jnp.asarray(np.ascontiguousarray(np.broadcast_to(m, (rows, length))))


def _nbytes(shape, dtype):
    return int(np.prod(shape)) * np.dtype(dtype).itemsize


# ----------------------------------------------------------------------------
# Module: MConvGRUCell
# ----------------------------------------------------------------------------
class MConvGRUCellPallas:
    def __init__(self, cell_param, key):
        self.input_dim = cell_param['input_channels']
        self.output_dim = cell_param['output_channels']
        self.i2s_k = tuple(cell_param['input_to_state_kernel_size'])
        self.s2s_k = tuple(cell_param['state_to_state_kernel_size'])
        if any(k % 2 == 0 for k in self.i2s_k + self.s2s_k):
            raise ValueError("kernel sizes must be odd for SAME padding")

        keys = jax.random.split(key, 12)
        ci, co = self.input_dim, self.output_dim
        ikh, ikw = self.i2s_k
        skh, skw = self.s2s_k

        def i2s(k):
            return _xavier_uniform_hwio(k, ikh, ikw, ci, co)

        def s2s(k):
            return _xavier_uniform_hwio(k, skh, skw, co, co)

        # per-gate HWIO weights (PyTorch OIHW == transpose(3,2,0,1) of these)
        self.w_xz1, self.w_xz2, self.w_xz3, self.w_hz = \
            i2s(keys[0]), s2s(keys[1]), s2s(keys[2]), s2s(keys[3])
        self.w_xr1, self.w_xr2, self.w_xr3, self.w_hr = \
            i2s(keys[4]), s2s(keys[5]), s2s(keys[6]), s2s(keys[7])
        self.w_xh1, self.w_xh2, self.w_xh3, self.w_hh = \
            i2s(keys[8]), s2s(keys[9]), s2s(keys[10]), s2s(keys[11])
        self.b_z = jnp.zeros((co,), jnp.float32)
        self.b_r = jnp.zeros((co,), jnp.float32)
        self.b_h = jnp.zeros((co,), jnp.float32)

        # kernel-layout im2col weights (bf16 MXU operands), built once:
        #   stage-1 i2s conv: z|r|h stacked along Cout      -> (3co, T1*ci)
        #   stage-2/3 chain convs: block-diagonal (z,r,h)   -> (3co, T2*3co)
        #   state-to-state conv of h: z|r|h stacked on Cout -> (3co, T2*co)
        self.w1_big = _to_big(jnp.concatenate(
            [self.w_xz1, self.w_xr1, self.w_xh1], axis=3)).astype(jnp.bfloat16)
        self.w2_big = _to_big(_block_diag_hwio(
            self.w_xz2, self.w_xr2, self.w_xh2)).astype(jnp.bfloat16)
        self.w3_big = _to_big(_block_diag_hwio(
            self.w_xz3, self.w_xr3, self.w_xh3)).astype(jnp.bfloat16)
        self.ws_big = _to_big(jnp.concatenate(
            [self.w_hz, self.w_hr, self.w_hh], axis=3)).astype(jnp.bfloat16)
        self.bias = jnp.concatenate(
            [self.b_z, self.b_r, self.b_h]).reshape(3 * co, 1)

    # forward: x (N, Cin, H, W), hidden (N, Cout, H, W) -> (N, Cout, H, W)
    def __call__(self, x_nchw, h_nchw):
        N, ci, H, W = x_nchw.shape
        co = self.output_dim
        kh1, kw1 = self.i2s_k
        kh2, kw2 = self.s2s_k
        ph1, pw1 = (kh1 - 1) // 2, (kw1 - 1) // 2
        ph2, pw2 = (kh2 - 1) // 2, (kw2 - 1) // 2
        Ph, Pw = ph1 + 2 * ph2, pw1 + 2 * pw2     # full receptive-field halo
        Hc, Wc = H + 2 * Ph, W + 2 * Pw
        Ncan = Hc * Wc
        m1, m2 = ph1 * Wc + pw1, ph2 * Wc + pw2
        T1, T2 = kh1 * kw1, kh2 * kw2

        # 128-lane-aligned flattened spans, derived inside-out so every tap
        # slice of every stage stays inside its (padded) source buffer.
        L0p = _round_up(H * Wc, 128)              # output span (>= interior)
        L2p = _round_up(L0p + 2 * m2, 128)        # input span of chain conv 3
        L1p = _round_up(L2p + 2 * m2, 128)        # input span of chain conv 2
        Ncp = _round_up(L1p + 2 * m1, 128)        # padded flat canvas length

        # pad ONCE into a shared zero canvas; flatten spatial onto the lanes.
        # x canvas is pre-cast to bf16 (MXU operand); h stays f32 because the
        # exact h_prev feeds the final gate blend.
        def canvas(a, dtype):
            c = a.shape[1]
            a = jnp.pad(a, ((0, 0), (0, 0), (Ph, Ph), (Pw, Pw))
                        ).reshape(N, c, Ncan)
            return jnp.pad(a, ((0, 0), (0, 0), (0, Ncp - Ncan))).astype(dtype)

        x_can = canvas(x_nchw, jnp.bfloat16)
        h_can = canvas(h_nchw, jnp.float32)

        # halo masks and bias, pre-broadcast to full lane-dense tiles
        mask1 = _interior_mask(m1, L1p, H, W, Ph, Pw, Wc, 3 * co)
        mask2 = _interior_mask(m1 + m2, L2p, H, W, Ph, Pw, Wc, 3 * co)
        bias_full = jnp.broadcast_to(self.bias, (3 * co, L0p))

        kernel = functools.partial(
            _mconv_gru_kernel, Wc=Wc, k1=self.i2s_k, k2=self.s2s_k,
            ci=ci, co=co, L0p=L0p, L1p=L1p, L2p=L2p)

        def const2(a):
            return pl.BlockSpec(a.shape, lambda n: (0, 0))

        scratch_specs = [
            ((T1 * ci, L1p), jnp.bfloat16),       # im2col stack, stage 1
            ((T2 * 3 * co, L2p), jnp.bfloat16),   # im2col stack, stage 2
            ((T2 * 3 * co, L0p), jnp.bfloat16),   # im2col stack, stage 3
            ((T2 * co, L0p), jnp.bfloat16),       # im2col stack, s2s conv of h
            ((3 * co, L1p), jnp.bfloat16),        # masked stage-1 output
            ((3 * co, L2p), jnp.bfloat16),        # masked stage-2 output
        ]

        # explicit scoped-VMEM budget: double-buffered blocks + scratch + slack
        blk_bytes = (_nbytes((1, ci, Ncp), jnp.bfloat16)
                     + _nbytes((1, co, Ncp), jnp.float32)
                     + _nbytes((1, co, L0p), x_nchw.dtype)
                     + sum(int(a.size) * a.dtype.itemsize for a in
                           (self.w1_big, self.w2_big, self.w3_big, self.ws_big,
                            bias_full, mask1, mask2)))
        scratch_bytes = sum(_nbytes(s, d) for s, d in scratch_specs)
        vmem_need = 2 * blk_bytes + scratch_bytes + (2 << 20)
        vmem_limit = int(min(max(vmem_need, 32 << 20), 96 << 20))

        out_span = pl.pallas_call(
            kernel,
            out_shape=jax.ShapeDtypeStruct((N, co, L0p), x_nchw.dtype),
            grid=(N,),
            in_specs=[
                pl.BlockSpec((1, ci, Ncp), lambda n: (n, 0, 0)),
                pl.BlockSpec((1, co, Ncp), lambda n: (n, 0, 0)),
                const2(self.w1_big), const2(self.w2_big), const2(self.w3_big),
                const2(self.ws_big), const2(bias_full),
                const2(mask1), const2(mask2),
            ],
            out_specs=pl.BlockSpec((1, co, L0p), lambda n: (n, 0, 0)),
            scratch_shapes=[pltpu.VMEM(s, d) for s, d in scratch_specs],
            compiler_params=pltpu.CompilerParams(
                dimension_semantics=("parallel",),
                vmem_limit_bytes=vmem_limit),
        )(x_can, h_can, self.w1_big, self.w2_big, self.w3_big, self.ws_big,
          bias_full, mask1, mask2)

        # un-flatten the interior span back to (N, Cout, H, W)
        return out_span[:, :, :H * Wc].reshape(N, co, H, Wc)[:, :, :, :W]

    # pure-JAX f32 reference (same math, XLA conv) for validation
    def reference(self, x_nchw, h_nchw):
        def conv(x, w):
            return jax.lax.conv_general_dilated(
                x, w, window_strides=(1, 1), padding='SAME',
                dimension_numbers=('NCHW', 'HWIO', 'NCHW'),
                precision=jax.lax.Precision.HIGHEST)

        bz = self.b_z.reshape(1, -1, 1, 1)
        br = self.b_r.reshape(1, -1, 1, 1)
        bh = self.b_h.reshape(1, -1, 1, 1)
        xz = conv(conv(conv(x_nchw, self.w_xz1), self.w_xz2), self.w_xz3)
        xr = conv(conv(conv(x_nchw, self.w_xr1), self.w_xr2), self.w_xr3)
        xh = conv(conv(conv(x_nchw, self.w_xh1), self.w_xh2), self.w_xh3)
        z = jax.nn.sigmoid(conv(h_nchw, self.w_hz) + xz + bz)
        r = jax.nn.sigmoid(conv(h_nchw, self.w_hr) + xr + br)
        hc = conv(h_nchw, self.w_hh) + r * xh + bh
        hc = jnp.where(hc >= 0, hc, 0.2 * hc)
        return (1.0 - z) * hc + z * h_nchw


if __name__ == "__main__":
    cell_param = {
        'input_channels': 4,
        'output_channels': 8,
        'input_to_state_kernel_size': (3, 3),
        'state_to_state_kernel_size': (3, 3),
    }
    key = jax.random.PRNGKey(0)
    k_cell, k_x, k_h = jax.random.split(key, 3)

    cell = MConvGRUCellPallas(cell_param, k_cell)

    N, H, W = 2, 16, 16
    x = jax.random.normal(k_x, (N, cell_param['input_channels'], H, W),
                          jnp.float32)
    h0 = jax.random.normal(k_h, (N, cell_param['output_channels'], H, W),
                           jnp.float32)

    h_new = jax.block_until_ready(cell(x, h0))
    h_ref = jax.block_until_ready(cell.reference(x, h0))

    assert h_new.shape == h0.shape and h_new.dtype == h0.dtype
    max_err = float(jnp.max(jnp.abs(h_new - h_ref)))
    # bf16 MXU operands (per perf review) vs the f32 XLA reference: tolerance
    # relaxed from 2e-3 to 3e-2.  A real bug (padding / gate mix-up) is O(0.1+).
    assert max_err < 3e-2, f"max abs error too large: {max_err}"
    print("KERNEL_OK")
</pallas_src>

<mosaic_0001>
module attributes {stable_mosaic.version = 11 : i64} {
  func.func @_mconv_gru_kernel(%arg0: i32, %arg1: memref<1x4x768xbf16, #tpu.memory_space<vmem>>, %arg2: memref<1x8x768xf32, #tpu.memory_space<vmem>>, %arg3: memref<24x36xbf16, #tpu.memory_space<vmem>>, %arg4: memref<24x216xbf16, #tpu.memory_space<vmem>>, %arg5: memref<24x216xbf16, #tpu.memory_space<vmem>>, %arg6: memref<24x72xbf16, #tpu.memory_space<vmem>>, %arg7: memref<24x384xf32, #tpu.memory_space<vmem>>, %arg8: memref<24x640xf32, #tpu.memory_space<vmem>>, %arg9: memref<24x512xf32, #tpu.memory_space<vmem>>, %arg10: memref<1x8x384xf32, #tpu.memory_space<vmem>>, %arg11: memref<36x640xbf16, #tpu.memory_space<vmem>>, %arg12: memref<216x512xbf16, #tpu.memory_space<vmem>>, %arg13: memref<216x384xbf16, #tpu.memory_space<vmem>>, %arg14: memref<72x384xbf16, #tpu.memory_space<vmem>>, %arg15: memref<24x640xbf16, #tpu.memory_space<vmem>>, %arg16: memref<24x512xbf16, #tpu.memory_space<vmem>>) attributes {dimension_semantics = [#tpu.dimension_semantics<parallel>], iteration_bounds = array<i64: 2>, scalar_prefetch = 0 : i64, scratch_operands = 6 : i64, tpu.core_type = #tpu.core_type<tc>, window_params = [{transform_indices = @transform_0, window_bounds = array<i64: 1, 4, 768>}, {transform_indices = @transform_1, window_bounds = array<i64: 1, 8, 768>}, {pipeline_mode = #tpu.pipeline_mode<synchronous>, transform_indices = @transform_2, window_bounds = array<i64: 24, 36>}, {pipeline_mode = #tpu.pipeline_mode<synchronous>, transform_indices = @transform_3, window_bounds = array<i64: 24, 216>}, {pipeline_mode = #tpu.pipeline_mode<synchronous>, transform_indices = @transform_4, window_bounds = array<i64: 24, 216>}, {pipeline_mode = #tpu.pipeline_mode<synchronous>, transform_indices = @transform_5, window_bounds = array<i64: 24, 72>}, {pipeline_mode = #tpu.pipeline_mode<synchronous>, transform_indices = @transform_6, window_bounds = array<i64: 24, 384>}, {pipeline_mode = #tpu.pipeline_mode<synchronous>, transform_indices = @transform_7, window_bounds = array<i64: 24, 640>}, {pipeline_mode = #tpu.pipeline_mode<synchronous>, transform_indices = @transform_8, window_bounds = array<i64: 24, 512>}, {transform_indices = @transform_9, window_bounds = array<i64: 1, 8, 384>}]} {
    %c0 = arith.constant 0 : index
    %c0_0 = arith.constant 0 : index
    %c0_1 = arith.constant 0 : index
    %0 = vector.load %arg1[%c0, %c0_0, %c0_1] : memref<1x4x768xbf16, #tpu.memory_space<vmem>>, vector<1x4x640xbf16>
    %1 = vector.shape_cast %0 : vector<1x4x640xbf16> to vector<4x640xbf16>
    %c0_2 = arith.constant 0 : index
    %c0_3 = arith.constant 0 : index
    %2 = vector.load %arg11[%c0_2, %c0_3] : memref<36x640xbf16, #tpu.memory_space<vmem>>, vector<4x640xbf16>
    tpu.vector_store %arg11[%c0_2, %c0_3], %1 {strides = array<i32>} : memref<36x640xbf16, #tpu.memory_space<vmem>>, vector<4x640xbf16>,
    %c0_4 = arith.constant 0 : index
    %c0_5 = arith.constant 0 : index
    %c1 = arith.constant 1 : index
    %3 = vector.load %arg1[%c0_4, %c0_5, %c1] : memref<1x4x768xbf16, #tpu.memory_space<vmem>>, vector<1x4x640xbf16>
    %4 = vector.shape_cast %3 : vector<1x4x640xbf16> to vector<4x640xbf16>
    %c4 = arith.constant 4 : index
    %c0_6 = arith.constant 0 : index
    %5 = vector.load %arg11[%c4, %c0_6] : memref<36x640xbf16, #tpu.memory_space<vmem>>, vector<4x640xbf16>
    tpu.vector_store %arg11[%c4, %c0_6], %4 {strides = array<i32>} : memref<36x640xbf16, #tpu.memory_space<vmem>>, vector<4x640xbf16>,
    %c0_7 = arith.constant 0 : index
    %c0_8 = arith.constant 0 : index
    %c2 = arith.constant 2 : index
    %6 = vector.load %arg1[%c0_7, %c0_8, %c2] : memref<1x4x768xbf16, #tpu.memory_space<vmem>>, vector<1x4x640xbf16>
    %7 = vector.shape_cast %6 : vector<1x4x640xbf16> to vector<4x640xbf16>
    %c8 = arith.constant 8 : index
    %c0_9 = arith.constant 0 : index
    %8 = vector.load %arg11[%c8, %c0_9] : memref<36x640xbf16, #tpu.memory_space<vmem>>, vector<4x640xbf16>
    tpu.vector_store %arg11[%c8, %c0_9], %7 {strides = array<i32>} : memref<36x640xbf16, #tpu.memory_space<vmem>>, vector<4x640xbf16>,
    %c0_10 = arith.constant 0 : index
    %c0_11 = arith.constant 0 : index
    %c22 = arith.constant 22 : index
    %9 = vector.load %arg1[%c0_10, %c0_11, %c22] : memref<1x4x768xbf16, #tpu.memory_space<vmem>>, vector<1x4x640xbf16>
    %10 = vector.shape_cast %9 : vector<1x4x640xbf16> to vector<4x640xbf16>
    %c12 = arith.constant 12 : index
    %c0_12 = arith.constant 0 : index
    %11 = vector.load %arg11[%c12, %c0_12] : memref<36x640xbf16, #tpu.memory_space<vmem>>, vector<4x640xbf16>
    tpu.vector_store %arg11[%c12, %c0_12], %10 {strides = array<i32>} : memref<36x640xbf16, #tpu.memory_space<vmem>>, vector<4x640xbf16>,
    %c0_13 = arith.constant 0 : index
    %c0_14 = arith.constant 0 : index
    %c23 = arith.constant 23 : index
    %12 = vector.load %arg1[%c0_13, %c0_14, %c23] : memref<1x4x768xbf16, #tpu.memory_space<vmem>>, vector<1x4x640xbf16>
    %13 = vector.shape_cast %12 : vector<1x4x640xbf16> to vector<4x640xbf16>
    %c16 = arith.constant 16 : index
    %c0_15 = arith.constant 0 : index
    %14 = vector.load %arg11[%c16, %c0_15] : memref<36x640xbf16, #tpu.memory_space<vmem>>, vector<4x640xbf16>
    tpu.vector_store %arg11[%c16, %c0_15], %13 {strides = array<i32>} : memref<36x640xbf16, #tpu.memory_space<vmem>>, vector<4x640xbf16>,
    %c0_16 = arith.constant 0 : index
    %c0_17 = arith.constant 0 : index
    %c24 = arith.constant 24 : index
    %15 = vector.load %arg1[%c0_16, %c0_17, %c24] : memref<1x4x768xbf16, #tpu.memory_space<vmem>>, vector<1x4x640xbf16>
    %16 = vector.shape_cast %15 : vector<1x4x640xbf16> to vector<4x640xbf16>
    %c20 = arith.constant 20 : index
    %c0_18 = arith.constant 0 : index
    %17 = vector.load %arg11[%c20, %c0_18] : memref<36x640xbf16, #tpu.memory_space<vmem>>, vector<4x640xbf16>
    tpu.vector_store %arg11[%c20, %c0_18], %16 {strides = array<i32>} : memref<36x640xbf16, #tpu.memory_space<vmem>>, vector<4x640xbf16>,
    %c0_19 = arith.constant 0 : index
    %c0_20 = arith.constant 0 : index
    %c44 = arith.constant 44 : index
    %18 = vector.load %arg1[%c0_19, %c0_20, %c44] : memref<1x4x768xbf16, #tpu.memory_space<vmem>>, vector<1x4x640xbf16>
    %19 = vector.shape_cast %18 : vector<1x4x640xbf16> to vector<4x640xbf16>
    %c24_21 = arith.constant 24 : index
    %c0_22 = arith.constant 0 : index
    %20 = vector.load %arg11[%c24_21, %c0_22] : memref<36x640xbf16, #tpu.memory_space<vmem>>, vector<4x640xbf16>
    tpu.vector_store %arg11[%c24_21, %c0_22], %19 {strides = array<i32>} : memref<36x640xbf16, #tpu.memory_space<vmem>>, vector<4x640xbf16>,
    %c0_23 = arith.constant 0 : index
    %c0_24 = arith.constant 0 : index
    %c45 = arith.constant 45 : index
    %21 = vector.load %arg1[%c0_23, %c0_24, %c45] : memref<1x4x768xbf16, #tpu.memory_space<vmem>>, vector<1x4x640xbf16>
    %22 = vector.shape_cast %21 : vector<1x4x640xbf16> to vector<4x640xbf16>
    %c28 = arith.constant 28 : index
    %c0_25 = arith.constant 0 : index
    %23 = vector.load %arg11[%c28, %c0_25] : memref<36x640xbf16, #tpu.memory_space<vmem>>, vector<4x640xbf16>
    tpu.vector_store %arg11[%c28, %c0_25], %22 {strides = array<i32>} : memref<36x640xbf16, #tpu.memory_space<vmem>>, vector<4x640xbf16>,
    %c0_26 = arith.constant 0 : index
    %c0_27 = arith.constant 0 : index
    %c46 = arith.constant 46 : index
    %24 = vector.load %arg1[%c0_26, %c0_27, %c46] : memref<1x4x768xbf16, #tpu.memory_space<vmem>>, vector<1x4x640xbf16>
    %25 = vector.shape_cast %24 : vector<1x4x640xbf16> to vector<4x640xbf16>
    %c32 = arith.constant 32 : index
    %c0_28 = arith.constant 0 : index
    %26 = vector.load %arg11[%c32, %c0_28] : memref<36x640xbf16, #tpu.memory_space<vmem>>, vector<4x640xbf16>
    tpu.vector_store %arg11[%c32, %c0_28], %25 {strides = array<i32>} : memref<36x640xbf16, #tpu.memory_space<vmem>>, vector<4x640xbf16>,
    %c0_29 = arith.constant 0 : index
    %c0_30 = arith.constant 0 : index
    %27 = vector.load %arg3[%c0_29, %c0_30] : memref<24x36xbf16, #tpu.memory_space<vmem>>, vector<24x36xbf16>
    %c0_31 = arith.constant 0 : index
    %c0_32 = arith.constant 0 : index
    %28 = vector.load %arg11[%c0_31, %c0_32] : memref<36x640xbf16, #tpu.memory_space<vmem>>, vector<36x640xbf16>
    %cst = arith.constant dense<0.000000e+00> : vector<24x640xf32>
    %29 = tpu.matmul %27, %28, %cst {dimension_numbers = #tpu.dot_dimension_numbers<[1], [0], [0], [1], [0, 0, 1, 1], [], []>} : vector<24x36xbf16>, vector<36x640xbf16>, vector<24x640xf32> -> vector<24x640xf32>
    %c0_33 = arith.constant 0 : index
    %c0_34 = arith.constant 0 : index
    %30 = vector.load %arg8[%c0_33, %c0_34] : memref<24x640xf32, #tpu.memory_space<vmem>>, vector<24x640xf32>
    %31 = arith.mulf %29, %30 : vector<24x640xf32>
    %32 = arith.truncf %31 : vector<24x640xf32> to vector<24x640xbf16>
    %c0_35 = arith.constant 0 : index
    %c0_36 = arith.constant 0 : index
    %33 = vector.load %arg15[%c0_35, %c0_36] : memref<24x640xbf16, #tpu.memory_space<vmem>>, vector<24x640xbf16>
    tpu.vector_store %arg15[%c0_35, %c0_36], %32 {strides = array<i32>} : memref<24x640xbf16, #tpu.memory_space<vmem>>, vector<24x640xbf16>,
    %c0_37 = arith.constant 0 : index
    %c0_38 = arith.constant 0 : index
    %34 = vector.load %arg15[%c0_37, %c0_38] : memref<24x640xbf16, #tpu.memory_space<vmem>>, vector<24x512xbf16>
    %c0_39 = arith.constant 0 : index
    %c0_40 = arith.constant 0 : index
    %35 = vector.load %arg12[%c0_39, %c0_40] : memref<216x512xbf16, #tpu.memory_space<vmem>>, vector<24x512xbf16>
    tpu.vector_store %arg12[%c0_39, %c0_40], %34 {strides = array<i32>} : memref<216x512xbf16, #tpu.memory_space<vmem>>, vector<24x512xbf16>,
    %c0_41 = arith.constant 0 : index
    %c1_42 = arith.constant 1 : index
    %36 = vector.load %arg15[%c0_41, %c1_42] : memref<24x640xbf16, #tpu.memory_space<vmem>>, vector<24x512xbf16>
    %c24_43 = arith.constant 24 : index
    %c0_44 = arith.constant 0 : index
    %37 = vector.load %arg12[%c24_43, %c0_44] : memref<216x512xbf16, #tpu.memory_space<vmem>>, vector<24x512xbf16>
    tpu.vector_store %arg12[%c24_43, %c0_44], %36 {strides = array<i32>} : memref<216x512xbf16, #tpu.memory_space<vmem>>, vector<24x512xbf16>,
    %c0_45 = arith.constant 0 : index
    %c2_46 = arith.constant 2 : index
    %38 = vector.load %arg15[%c0_45, %c2_46] : memref<24x640xbf16, #tpu.memory_space<vmem>>, vector<24x512xbf16>
    %c48 = arith.constant 48 : index
    %c0_47 = arith.constant 0 : index
    %39 = vector.load %arg12[%c48, %c0_47] : memref<216x512xbf16, #tpu.memory_space<vmem>>, vector<24x512xbf16>
    tpu.vector_store %arg12[%c48, %c0_47], %38 {strides = array<i32>} : memref<216x512xbf16, #tpu.memory_space<vmem>>, vector<24x512xbf16>,
    %c0_48 = arith.constant 0 : index
    %c22_49 = arith.constant 22 : index
    %40 = vector.load %arg15[%c0_48, %c22_49] : memref<24x640xbf16, #tpu.memory_space<vmem>>, vector<24x512xbf16>
    %c72 = arith.constant 72 : index
    %c0_50 = arith.constant 0 : index
    %41 = vector.load %arg12[%c72, %c0_50] : memref<216x512xbf16, #tpu.memory_space<vmem>>, vector<24x512xbf16>
    tpu.vector_store %arg12[%c72, %c0_50], %40 {strides = array<i32>} : memref<216x512xbf16, #tpu.memory_space<vmem>>, vector<24x512xbf16>,
    %c0_51 = arith.constant 0 : index
    %c23_52 = arith.constant 23 : index
    %42 = vector.load %arg15[%c0_51, %c23_52] : memref<24x640xbf16, #tpu.memory_space<vmem>>, vector<24x512xbf16>
    %c96 = arith.constant 96 : index
    %c0_53 = arith.constant 0 : index
    %43 = vector.load %arg12[%c96, %c0_53] : memref<216x512xbf16, #tpu.memory_space<vmem>>, vector<24x512xbf16>
    tpu.vector_store %arg12[%c96, %c0_53], %42 {strides = array<i32>} : memref<216x512xbf16, #tpu.memory_space<vmem>>, vector<24x512xbf16>,
    %c0_54 = arith.constant 0 : index
    %c24_55 = arith.constant 24 : index
    %44 = vector.load %arg15[%c0_54, %c24_55] : memref<24x640xbf16, #tpu.memory_space<vmem>>, vector<24x512xbf16>
    %c120 = arith.constant 120 : index
    %c0_56 = arith.constant 0 : index
    %45 = vector.load %arg12[%c120, %c0_56] : memref<216x512xbf16, #tpu.memory_space<vmem>>, vector<24x512xbf16>
    tpu.vector_store %arg12[%c120, %c0_56], %44 {strides = array<i32>} : memref<216x512xbf16, #tpu.memory_space<vmem>>, vector<24x512xbf16>,
    %c0_57 = arith.constant 0 : index
    %c44_58 = arith.constant 44 : index
    %46 = vector.load %arg15[%c0_57, %c44_58] : memref<24x640xbf16, #tpu.memory_space<vmem>>, vector<24x512xbf16>
    %c144 = arith.constant 144 : index
    %c0_59 = arith.constant 0 : index
    %47 = vector.load %arg12[%c144, %c0_59] : memref<216x512xbf16, #tpu.memory_space<vmem>>, vector<24x512xbf16>
    tpu.vector_store %arg12[%c144, %c0_59], %46 {strides = array<i32>} : memref<216x512xbf16, #tpu.memory_space<vmem>>, vector<24x512xbf16>,
    %c0_60 = arith.constant 0 : index
    %c45_61 = arith.constant 45 : index
    %48 = vector.load %arg15[%c0_60, %c45_61] : memref<24x640xbf16, #tpu.memory_space<vmem>>, vector<24x512xbf16>
    %c168 = arith.constant 168 : index
    %c0_62 = arith.constant 0 : index
    %49 = vector.load %arg12[%c168, %c0_62] : memref<216x512xbf16, #tpu.memory_space<vmem>>, vector<24x512xbf16>
    tpu.vector_store %arg12[%c168, %c0_62], %48 {strides = array<i32>} : memref<216x512xbf16, #tpu.memory_space<vmem>>, vector<24x512xbf16>,
    %c0_63 = arith.constant 0 : index
    %c46_64 = arith.constant 46 : index
    %50 = vector.load %arg15[%c0_63, %c46_64] : memref<24x640xbf16, #tpu.memory_space<vmem>>, vector<24x512xbf16>
    %c192 = arith.constant 192 : index
    %c0_65 = arith.constant 0 : index
    %51 = vector.load %arg12[%c192, %c0_65] : memref<216x512xbf16, #tpu.memory_space<vmem>>, vector<24x512xbf16>
    tpu.vector_store %arg12[%c192, %c0_65], %50 {strides = array<i32>} : memref<216x512xbf16, #tpu.memory_space<vmem>>, vector<24x512xbf16>,
    %c0_66 = arith.constant 0 : index
    %c0_67 = arith.constant 0 : index
    %52 = vector.load %arg4[%c0_66, %c0_67] : memref<24x216xbf16, #tpu.memory_space<vmem>>, vector<24x216xbf16>
    %c0_68 = arith.constant 0 : index
    %c0_69 = arith.constant 0 : index
    %53 = vector.load %arg12[%c0_68, %c0_69] : memref<216x512xbf16, #tpu.memory_space<vmem>>, vector<216x512xbf16>
    %cst_70 = arith.constant dense<0.000000e+00> : vector<24x512xf32>
    %54 = tpu.matmul %52, %53, %cst_70 {dimension_numbers = #tpu.dot_dimension_numbers<[1], [0], [0], [1], [0, 0, 1, 1], [], []>} : vector<24x216xbf16>, vector<216x512xbf16>, vector<24x512xf32> -> vector<24x512xf32>
    %c0_71 = arith.constant 0 : index
    %c0_72 = arith.constant 0 : index
    %55 = vector.load %arg9[%c0_71, %c0_72] : memref<24x512xf32, #tpu.memory_space<vmem>>, vector<24x512xf32>
    %56 = arith.mulf %54, %55 : vector<24x512xf32>
    %57 = arith.truncf %56 : vector<24x512xf32> to vector<24x512xbf16>
    %c0_73 = arith.constant 0 : index
    %c0_74 = arith.constant 0 : index
    %58 = vector.load %arg16[%c0_73, %c0_74] : memref<24x512xbf16, #tpu.memory_space<vmem>>, vector<24x512xbf16>
    tpu.vector_store %arg16[%c0_73, %c0_74], %57 {strides = array<i32>} : memref<24x512xbf16, #tpu.memory_space<vmem>>, vector<24x512xbf16>,
    %c0_75 = arith.constant 0 : index
    %c0_76 = arith.constant 0 : index
    %59 = vector.load %arg16[%c0_75, %c0_76] : memref<24x512xbf16, #tpu.memory_space<vmem>>, vector<24x384xbf16>
    %c0_77 = arith.constant 0 : index
    %c0_78 = arith.constant 0 : index
    %60 = vector.load %arg13[%c0_77, %c0_78] : memref<216x384xbf16, #tpu.memory_space<vmem>>, vector<24x384xbf16>
    tpu.vector_store %arg13[%c0_77, %c0_78], %59 {strides = array<i32>} : memref<216x384xbf16, #tpu.memory_space<vmem>>, vector<24x384xbf16>,
    %c0_79 = arith.constant 0 : index
    %c1_80 = arith.constant 1 : index
    %61 = vector.load %arg16[%c0_79, %c1_80] : memref<24x512xbf16, #tpu.memory_space<vmem>>, vector<24x384xbf16>
    %c24_81 = arith.constant 24 : index
    %c0_82 = arith.constant 0 : index
    %62 = vector.load %arg13[%c24_81, %c0_82] : memref<216x384xbf16, #tpu.memory_space<vmem>>, vector<24x384xbf16>
    tpu.vector_store %arg13[%c24_81, %c0_82], %61 {strides = array<i32>} : memref<216x384xbf16, #tpu.memory_space<vmem>>, vector<24x384xbf16>,
    %c0_83 = arith.constant 0 : index
    %c2_84 = arith.constant 2 : index
    %63 = vector.load %arg16[%c0_83, %c2_84] : memref<24x512xbf16, #tpu.memory_space<vmem>>, vector<24x384xbf16>
    %c48_85 = arith.constant 48 : index
    %c0_86 = arith.constant 0 : index
    %64 = vector.load %arg13[%c48_85, %c0_86] : memref<216x384xbf16, #tpu.memory_space<vmem>>, vector<24x384xbf16>
    tpu.vector_store %arg13[%c48_85, %c0_86], %63 {strides = array<i32>} : memref<216x384xbf16, #tpu.memory_space<vmem>>, vector<24x384xbf16>,
    %c0_87 = arith.constant 0 : index
    %c22_88 = arith.constant 22 : index
    %65 = vector.load %arg16[%c0_87, %c22_88] : memref<24x512xbf16, #tpu.memory_space<vmem>>, vector<24x384xbf16>
    %c72_89 = arith.constant 72 : index
    %c0_90 = arith.constant 0 : index
    %66 = vector.load %arg13[%c72_89, %c0_90] : memref<216x384xbf16, #tpu.memory_space<vmem>>, vector<24x384xbf16>
    tpu.vector_store %arg13[%c72_89, %c0_90], %65 {strides = array<i32>} : memref<216x384xbf16, #tpu.memory_space<vmem>>, vector<24x384xbf16>,
    %c0_91 = arith.constant 0 : index
    %c23_92 = arith.constant 23 : index
    %67 = vector.load %arg16[%c0_91, %c23_92] : memref<24x512xbf16, #tpu.memory_space<vmem>>, vector<24x384xbf16>
    %c96_93 = arith.constant 96 : index
    %c0_94 = arith.constant 0 : index
    %68 = vector.load %arg13[%c96_93, %c0_94] : memref<216x384xbf16, #tpu.memory_space<vmem>>, vector<24x384xbf16>
    tpu.vector_store %arg13[%c96_93, %c0_94], %67 {strides = array<i32>} : memref<216x384xbf16, #tpu.memory_space<vmem>>, vector<24x384xbf16>,
    %c0_95 = arith.constant 0 : index
    %c24_96 = arith.constant 24 : index
    %69 = vector.load %arg16[%c0_95, %c24_96] : memref<24x512xbf16, #tpu.memory_space<vmem>>, vector<24x384xbf16>
    %c120_97 = arith.constant 120 : index
    %c0_98 = arith.constant 0 : index
    %70 = vector.load %arg13[%c120_97, %c0_98] : memref<216x384xbf16, #tpu.memory_space<vmem>>, vector<24x384xbf16>
    tpu.vector_store %arg13[%c120_97, %c0_98], %69 {strides = array<i32>} : memref<216x384xbf16, #tpu.memory_space<vmem>>, vector<24x384xbf16>,
    %c0_99 = arith.constant 0 : index
    %c44_100 = arith.constant 44 : index
    %71 = vector.load %arg16[%c0_99, %c44_100] : memref<24x512xbf16, #tpu.memory_space<vmem>>, vector<24x384xbf16>
    %c144_101 = arith.constant 144 : index
    %c0_102 = arith.constant 0 : index
    %72 = vector.load %arg13[%c144_101, %c0_102] : memref<216x384xbf16, #tpu.memory_space<vmem>>, vector<24x384xbf16>
    tpu.vector_store %arg13[%c144_101, %c0_102], %71 {strides = array<i32>} : memref<216x384xbf16, #tpu.memory_space<vmem>>, vector<24x384xbf16>,
    %c0_103 = arith.constant 0 : index
    %c45_104 = arith.constant 45 : index
    %73 = vector.load %arg16[%c0_103, %c45_104] : memref<24x512xbf16, #tpu.memory_space<vmem>>, vector<24x384xbf16>
    %c168_105 = arith.constant 168 : index
    %c0_106 = arith.constant 0 : index
    %74 = vector.load %arg13[%c168_105, %c0_106] : memref<216x384xbf16, #tpu.memory_space<vmem>>, vector<24x384xbf16>
    tpu.vector_store %arg13[%c168_105, %c0_106], %73 {strides = array<i32>} : memref<216x384xbf16, #tpu.memory_space<vmem>>, vector<24x384xbf16>,
    %c0_107 = arith.constant 0 : index
    %c46_108 = arith.constant 46 : index
    %75 = vector.load %arg16[%c0_107, %c46_108] : memref<24x512xbf16, #tpu.memory_space<vmem>>, vector<24x384xbf16>
    %c192_109 = arith.constant 192 : index
    %c0_110 = arith.constant 0 : index
    %76 = vector.load %arg13[%c192_109, %c0_110] : memref<216x384xbf16, #tpu.memory_space<vmem>>, vector<24x384xbf16>
    tpu.vector_store %arg13[%c192_109, %c0_110], %75 {strides = array<i32>} : memref<216x384xbf16, #tpu.memory_space<vmem>>, vector<24x384xbf16>,
    %c0_111 = arith.constant 0 : index
    %c0_112 = arith.constant 0 : index
    %77 = vector.load %arg5[%c0_111, %c0_112] : memref<24x216xbf16, #tpu.memory_space<vmem>>, vector<24x216xbf16>
    %c0_113 = arith.constant 0 : index
    %c0_114 = arith.constant 0 : index
    %78 = vector.load %arg13[%c0_113, %c0_114] : memref<216x384xbf16, #tpu.memory_space<vmem>>, vector<216x384xbf16>
    %cst_115 = arith.constant dense<0.000000e+00> : vector<24x384xf32>
    %79 = tpu.matmul %77, %78, %cst_115 {dimension_numbers = #tpu.dot_dimension_numbers<[1], [0], [0], [1], [0, 0, 1, 1], [], []>} : vector<24x216xbf16>, vector<216x384xbf16>, vector<24x384xf32> -> vector<24x384xf32>
    %c0_116 = arith.constant 0 : index
    %c0_117 = arith.constant 0 : index
    %c46_118 = arith.constant 46 : index
    %80 = vector.load %arg2[%c0_116, %c0_117, %c46_118] : memref<1x8x768xf32, #tpu.memory_space<vmem>>, vector<1x8x384xf32>
    %81 = vector.shape_cast %80 : vector<1x8x384xf32> to vector<8x384xf32>
    %82 = arith.truncf %81 : vector<8x384xf32> to vector<8x384xbf16>
    %c0_119 = arith.constant 0 : index
    %c0_120 = arith.constant 0 : index
    %83 = vector.load %arg14[%c0_119, %c0_120] : memref<72x384xbf16, #tpu.memory_space<vmem>>, vector<8x384xbf16>
    tpu.vector_store %arg14[%c0_119, %c0_120], %82 {strides = array<i32>} : memref<72x384xbf16, #tpu.memory_space<vmem>>, vector<8x384xbf16>,
    %c0_121 = arith.constant 0 : index
    %c0_122 = arith.constant 0 : index
    %c47 = arith.constant 47 : index
    %84 = vector.load %arg2[%c0_121, %c0_122, %c47] : memref<1x8x768xf32, #tpu.memory_space<vmem>>, vector<1x8x384xf32>
    %85 = vector.shape_cast %84 : vector<1x8x384xf32> to vector<8x384xf32>
    %86 = arith.truncf %85 : vector<8x384xf32> to vector<8x384xbf16>
    %c8_123 = arith.constant 8 : index
    %c0_124 = arith.constant 0 : index
    %87 = vector.load %arg14[%c8_123, %c0_124] : memref<72x384xbf16, #tpu.memory_space<vmem>>, vector<8x384xbf16>
    tpu.vector_store %arg14[%c8_123, %c0_124], %86 {strides = array<i32>} : memref<72x384xbf16, #tpu.memory_space<vmem>>, vector<8x384xbf16>,
    %c0_125 = arith.constant 0 : index
    %c0_126 = arith.constant 0 : index
    %c48_127 = arith.constant 48 : index
    %88 = vector.load %arg2[%c0_125, %c0_126, %c48_127] : memref<1x8x768xf32, #tpu.memory_space<vmem>>, vector<1x8x384xf32>
    %89 = vector.shape_cast %88 : vector<1x8x384xf32> to vector<8x384xf32>
    %90 = arith.truncf %89 : vector<8x384xf32> to vector<8x384xbf16>
    %c16_128 = arith.constant 16 : index
    %c0_129 = arith.constant 0 : index
    %91 = vector.load %arg14[%c16_128, %c0_129] : memref<72x384xbf16, #tpu.memory_space<vmem>>, vector<8x384xbf16>
    tpu.vector_store %arg14[%c16_128, %c0_129], %90 {strides = array<i32>} : memref<72x384xbf16, #tpu.memory_space<vmem>>, vector<8x384xbf16>,
    %c0_130 = arith.constant 0 : index
    %c0_131 = arith.constant 0 : index
    %c68 = arith.constant 68 : index
    %92 = vector.load %arg2[%c0_130, %c0_131, %c68] : memref<1x8x768xf32, #tpu.memory_space<vmem>>, vector<1x8x384xf32>
    %93 = vector.shape_cast %92 : vector<1x8x384xf32> to vector<8x384xf32>
    %94 = arith.truncf %93 : vector<8x384xf32> to vector<8x384xbf16>
    %c24_132 = arith.constant 24 : index
    %c0_133 = arith.constant 0 : index
    %95 = vector.load %arg14[%c24_132, %c0_133] : memref<72x384xbf16, #tpu.memory_space<vmem>>, vector<8x384xbf16>
    tpu.vector_store %arg14[%c24_132, %c0_133], %94 {strides = array<i32>} : memref<72x384xbf16, #tpu.memory_space<vmem>>, vector<8x384xbf16>,
    %c0_134 = arith.constant 0 : index
    %c0_135 = arith.constant 0 : index
    %c69 = arith.constant 69 : index
    %96 = vector.load %arg2[%c0_134, %c0_135, %c69] : memref<1x8x768xf32, #tpu.memory_space<vmem>>, vector<1x8x384xf32>
    %97 = vector.shape_cast %96 : vector<1x8x384xf32> to vector<8x384xf32>
    %98 = arith.truncf %97 : vector<8x384xf32> to vector<8x384xbf16>
    %c32_136 = arith.constant 32 : index
    %c0_137 = arith.constant 0 : index
    %99 = vector.load %arg14[%c32_136, %c0_137] : memref<72x384xbf16, #tpu.memory_space<vmem>>, vector<8x384xbf16>
    tpu.vector_store %arg14[%c32_136, %c0_137], %98 {strides = array<i32>} : memref<72x384xbf16, #tpu.memory_space<vmem>>, vector<8x384xbf16>,
    %c0_138 = arith.constant 0 : index
    %c0_139 = arith.constant 0 : index
    %c70 = arith.constant 70 : index
    %100 = vector.load %arg2[%c0_138, %c0_139, %c70] : memref<1x8x768xf32, #tpu.memory_space<vmem>>, vector<1x8x384xf32>
    %101 = vector.shape_cast %100 : vector<1x8x384xf32> to vector<8x384xf32>
    %102 = arith.truncf %101 : vector<8x384xf32> to vector<8x384xbf16>
    %c40 = arith.constant 40 : index
    %c0_140 = arith.constant 0 : index
    %103 = vector.load %arg14[%c40, %c0_140] : memref<72x384xbf16, #tpu.memory_space<vmem>>, vector<8x384xbf16>
    tpu.vector_store %arg14[%c40, %c0_140], %102 {strides = array<i32>} : memref<72x384xbf16, #tpu.memory_space<vmem>>, vector<8x384xbf16>,
    %c0_141 = arith.constant 0 : index
    %c0_142 = arith.constant 0 : index
    %c90 = arith.constant 90 : index
    %104 = vector.load %arg2[%c0_141, %c0_142, %c90] : memref<1x8x768xf32, #tpu.memory_space<vmem>>, vector<1x8x384xf32>
    %105 = vector.shape_cast %104 : vector<1x8x384xf32> to vector<8x384xf32>
    %106 = arith.truncf %105 : vector<8x384xf32> to vector<8x384xbf16>
    %c48_143 = arith.constant 48 : index
    %c0_144 = arith.constant 0 : index
    %107 = vector.load %arg14[%c48_143, %c0_144] : memref<72x384xbf16, #tpu.memory_space<vmem>>, vector<8x384xbf16>
    tpu.vector_store %arg14[%c48_143, %c0_144], %106 {strides = array<i32>} : memref<72x384xbf16, #tpu.memory_space<vmem>>, vector<8x384xbf16>,
    %c0_145 = arith.constant 0 : index
    %c0_146 = arith.constant 0 : index
    %c91 = arith.constant 91 : index
    %108 = vector.load %arg2[%c0_145, %c0_146, %c91] : memref<1x8x768xf32, #tpu.memory_space<vmem>>, vector<1x8x384xf32>
    %109 = vector.shape_cast %108 : vector<1x8x384xf32> to vector<8x384xf32>
    %110 = arith.truncf %109 : vector<8x384xf32> to vector<8x384xbf16>
    %c56 = arith.constant 56 : index
    %c0_147 = arith.constant 0 : index
    %111 = vector.load %arg14[%c56, %c0_147] : memref<72x384xbf16, #tpu.memory_space<vmem>>, vector<8x384xbf16>
    tpu.vector_store %arg14[%c56, %c0_147], %110 {strides = array<i32>} : memref<72x384xbf16, #tpu.memory_space<vmem>>, vector<8x384xbf16>,
    %c0_148 = arith.constant 0 : index
    %c0_149 = arith.constant 0 : index
    %c92 = arith.constant 92 : index
    %112 = vector.load %arg2[%c0_148, %c0_149, %c92] : memref<1x8x768xf32, #tpu.memory_space<vmem>>, vector<1x8x384xf32>
    %113 = vector.shape_cast %112 : vector<1x8x384xf32> to vector<8x384xf32>
    %114 = arith.truncf %113 : vector<8x384xf32> to vector<8x384xbf16>
    %c64 = arith.constant 64 : index
    %c0_150 = arith.constant 0 : index
    %115 = vector.load %arg14[%c64, %c0_150] : memref<72x384xbf16, #tpu.memory_space<vmem>>, vector<8x384xbf16>
    tpu.vector_store %arg14[%c64, %c0_150], %114 {strides = array<i32>} : memref<72x384xbf16, #tpu.memory_space<vmem>>, vector<8x384xbf16>,
    %c0_151 = arith.constant 0 : index
    %c0_152 = arith.constant 0 : index
    %116 = vector.load %arg6[%c0_151, %c0_152] : memref<24x72xbf16, #tpu.memory_space<vmem>>, vector<24x72xbf16>
    %c0_153 = arith.constant 0 : index
    %c0_154 = arith.constant 0 : index
    %117 = vector.load %arg14[%c0_153, %c0_154] : memref<72x384xbf16, #tpu.memory_space<vmem>>, vector<72x384xbf16>
    %cst_155 = arith.constant dense<0.000000e+00> : vector<24x384xf32>
    %118 = tpu.matmul %116, %117, %cst_155 {dimension_numbers = #tpu.dot_dimension_numbers<[1], [0], [0], [1], [0, 0, 1, 1], [], []>} : vector<24x72xbf16>, vector<72x384xbf16>, vector<24x384xf32> -> vector<24x384xf32>
    %c0_156 = arith.constant 0 : index
    %c0_157 = arith.constant 0 : index
    %119 = vector.load %arg7[%c0_156, %c0_157] : memref<24x384xf32, #tpu.memory_space<vmem>>, vector<24x384xf32>
    %120 = arith.addf %118, %119 : vector<24x384xf32>
    %121 = vector.extract_strided_slice %120 {offsets = [0, 0], sizes = [16, 384], strides = [1, 1]} : vector<24x384xf32> to vector<16x384xf32>
    %122 = vector.extract_strided_slice %79 {offsets = [0, 0], sizes = [16, 384], strides = [1, 1]} : vector<24x384xf32> to vector<16x384xf32>
    %123 = arith.addf %121, %122 : vector<16x384xf32>
    %124 = arith.negf %123 : vector<16x384xf32>
    %125 = math.exp %124 : vector<16x384xf32>
    %cst_158 = arith.constant 1.000000e+00 : f32
    %126 = vector.broadcast %cst_158 : f32 to vector<16x384xf32>
    %127 = arith.addf %126, %125 : vector<16x384xf32>
    %128 = arith.divf %126, %127 : vector<16x384xf32>
    %129 = vector.extract_strided_slice %128 {offsets = [0, 0], sizes = [8, 384], strides = [1, 1]} : vector<16x384xf32> to vector<8x384xf32>
    %130 = vector.extract_strided_slice %128 {offsets = [8, 0], sizes = [8, 384], strides = [1, 1]} : vector<16x384xf32> to vector<8x384xf32>
    %131 = vector.extract_strided_slice %120 {offsets = [16, 0], sizes = [8, 384], strides = [1, 1]} : vector<24x384xf32> to vector<8x384xf32>
    %132 = vector.extract_strided_slice %79 {offsets = [16, 0], sizes = [8, 384], strides = [1, 1]} : vector<24x384xf32> to vector<8x384xf32>
    %133 = arith.mulf %130, %132 : vector<8x384xf32>
    %134 = arith.addf %131, %133 : vector<8x384xf32>
    %cst_159 = arith.constant 0.000000e+00 : f32
    %135 = vector.broadcast %cst_159 : f32 to vector<8x384xf32>
    %136 = arith.cmpf oge, %134, %135 : vector<8x384xf32>
    %cst_160 = arith.constant 2.000000e-01 : f32
    %137 = vector.broadcast %cst_160 : f32 to vector<8x384xf32>
    %138 = arith.mulf %137, %134 : vector<8x384xf32>
    %139 = arith.select %136, %134, %138 : vector<8x384xi1>, vector<8x384xf32>
    %c0_161 = arith.constant 0 : index
    %c0_162 = arith.constant 0 : index
    %c69_163 = arith.constant 69 : index
    %140 = vector.load %arg2[%c0_161, %c0_162, %c69_163] : memref<1x8x768xf32, #tpu.memory_space<vmem>>, vector<1x8x384xf32>
    %141 = vector.shape_cast %140 : vector<1x8x384xf32> to vector<8x384xf32>
    %cst_164 = arith.constant 1.000000e+00 : f32
    %142 = vector.broadcast %cst_164 : f32 to vector<8x384xf32>
    %143 = arith.subf %142, %129 : vector<8x384xf32>
    %144 = arith.mulf %143, %139 : vector<8x384xf32>
    %145 = arith.mulf %129, %141 : vector<8x384xf32>
    %146 = arith.addf %144, %145 : vector<8x384xf32>
    %147 = vector.shape_cast %146 : vector<8x384xf32> to vector<1x8x384xf32>
    %c0_165 = arith.constant 0 : index
    %c0_166 = arith.constant 0 : index
    %c0_167 = arith.constant 0 : index
    %148 = vector.load %arg10[%c0_165, %c0_166, %c0_167] : memref<1x8x384xf32, #tpu.memory_space<vmem>>, vector<1x8x384xf32>
    tpu.vector_store %arg10[%c0_165, %c0_166, %c0_167], %147 {strides = array<i32>} : memref<1x8x384xf32, #tpu.memory_space<vmem>>, vector<1x8x384xf32>,
    return
  }
  func.func @transform_0(%arg0: i32) -> (i32, i32, i32) {
    %c0_i32 = arith.constant 0 : i32
    %c0_i32_0 = arith.constant 0 : i32
    %c0_i32_1 = arith.constant 0 : i32
    return %arg0, %c0_i32, %c0_i32_0 : i32, i32, i32
  }
  func.func @transform_1(%arg0: i32) -> (i32, i32, i32) {
    %c0_i32 = arith.constant 0 : i32
    %c0_i32_0 = arith.constant 0 : i32
    %c0_i32_1 = arith.constant 0 : i32
    return %arg0, %c0_i32, %c0_i32_0 : i32, i32, i32
  }
  func.func @transform_2(%arg0: i32) -> (i32, i32) {
    %c0_i32 = arith.constant 0 : i32
    %c0_i32_0 = arith.constant 0 : i32
    %c0_i32_1 = arith.constant 0 : i32
    return %c0_i32, %c0_i32_0 : i32, i32
  }
  func.func @transform_3(%arg0: i32) -> (i32, i32) {
    %c0_i32 = arith.constant 0 : i32
    %c0_i32_0 = arith.constant 0 : i32
    %c0_i32_1 = arith.constant 0 : i32
    return %c0_i32, %c0_i32_0 : i32, i32
  }
  func.func @transform_4(%arg0: i32) -> (i32, i32) {
    %c0_i32 = arith.constant 0 : i32
    %c0_i32_0 = arith.constant 0 : i32
    %c0_i32_1 = arith.constant 0 : i32
    return %c0_i32, %c0_i32_0 : i32, i32
  }
  func.func @transform_5(%arg0: i32) -> (i32, i32) {
    %c0_i32 = arith.constant 0 : i32
    %c0_i32_0 = arith.constant 0 : i32
    %c0_i32_1 = arith.constant 0 : i32
    return %c0_i32, %c0_i32_0 : i32, i32
  }
  func.func @transform_6(%arg0: i32) -> (i32, i32) {
    %c0_i32 = arith.constant 0 : i32
    %c0_i32_0 = arith.constant 0 : i32
    %c0_i32_1 = arith.constant 0 : i32
    return %c0_i32, %c0_i32_0 : i32, i32
  }
  func.func @transform_7(%arg0: i32) -> (i32, i32) {
    %c0_i32 = arith.constant 0 : i32
    %c0_i32_0 = arith.constant 0 : i32
    %c0_i32_1 = arith.constant 0 : i32
    return %c0_i32, %c0_i32_0 : i32, i32
  }
  func.func @transform_8(%arg0: i32) -> (i32, i32) {
    %c0_i32 = arith.constant 0 : i32
    %c0_i32_0 = arith.constant 0 : i32
    %c0_i32_1 = arith.constant 0 : i32
    return %c0_i32, %c0_i32_0 : i32, i32
  }
  func.func @transform_9(%arg0: i32) -> (i32, i32, i32) {
    %c0_i32 = arith.constant 0 : i32
    %c0_i32_0 = arith.constant 0 : i32
    %c0_i32_1 = arith.constant 0 : i32
    return %arg0, %c0_i32, %c0_i32_0 : i32, i32, i32
  }
}

</mosaic_0001>

<bundles_post_ra>
// kernel: tpu_custom_call.1
= control target key start
LH: loop header
LB: loop body
LE: loop exit
PB: predicated region body
PF: predicated region fallthrough
CT: control target
= control target key end

     0   :  { %s6221_s0 = inlined_call_operand.hbm [shape: bf16[2,4,768], index: 0, kind: input, shape index: {}]   ;;  %s6222_s1 = inlined_call_operand.hbm [shape: f32[2,8,768], index: 1, kind: input, shape index: {}]   ;;  %s6223_s2 = inlined_call_operand.hbm [shape: bf16[24,36], index: 2, kind: input, shape index: {}]   ;;  %s6224_s3 = inlined_call_operand.hbm [shape: bf16[24,216], index: 3, kind: input, shape index: {}]   ;;  %s6225_s4 = inlined_call_operand.hbm [shape: bf16[24,216], index: 4, kind: input, shape index: {}]   ;;  %s6226_s5 = inlined_call_operand.vmem [shape: bf16[24,72], index: 5, kind: input, shape index: {}]   ;;  %s6227_s6 = inlined_call_operand.hbm [shape: f32[24,384], index: 6, kind: input, shape index: {}]   ;;  %s6228_s7 = inlined_call_operand.hbm [shape: f32[24,640], index: 7, kind: input, shape index: {}]   ;;  %s6229_s8 = inlined_call_operand.hbm [shape: f32[24,512], index: 8, kind: input, shape index: {}]   ;;  %s6230_s9 = inlined_call_operand.hbm [shape: f32[2,8,384], index: 9, kind: output, shape index: {}]  }
   0x1   :  { %6238 = sst [smem:[#allocation30_spill]] %s6221_s0 }
   0x2   :  { %6239 = sst [smem:[#allocation31_spill]] %s6223_s2 }
   0x3   :  { %6240 = sst [smem:[#allocation32_spill]] %s6224_s3 }
   0x4   :  { %6241 = sst [smem:[#allocation33_spill]] %s6225_s4 }
   0x5   :  { %6242 = sst [smem:[#allocation34_spill]] %s6230_s9 }
   0x6   :  { %14 = vsyncpa [#allocation9], 0 }
   0x7   :  { %16 = vsyncpa [#allocation9 + $0x1], 0 }
   0x8   :  { %17 = vsyncpa [#allocation12], 0 }
   0x9   :  { %19 = vsyncpa [#allocation12 + $0x1], 0 }
   0xa   :  { %20 = vsyncpa [#allocation15], 0 }
   0xb   :  { %21 = vsyncpa [#allocation18], 0 }
   0xc   :  { %22 = vsyncpa [#allocation21], 0 }
   0xd   :  { %23 = vsyncpa [#allocation10], 0 }
   0xe   :  { %25 = vsyncpa [#allocation10 + $0x1], 0  ;;  %s4884_s30 = smov 0   ;;  %s4886_s10 = smov 0  }
   0xf   :  { %s4888_s11 = smov 0   ;;  %s4890_s12 = smov 0  }
  0x10 LB: > { %s4797_s13 = smov [#allocation13]   ;;  %s4905_s15 = sadd.s32 4294967295, %s4795_s12   ;;  %s4795_s12 = sphi %s4890_s12, %s6275_s12   ;;  %s4791_s11 = sphi %s4888_s11, %s6274_s11   ;;  %s4787_s10 = sphi %s4886_s10, %s6273_s10   ;;  %s4783_s30 = sphi %s4884_s30, %s6272_s30  }
  0x11   : > { %s273_s14 = sshll.u32 %s4797_s13, 4  ;;  %p3937_p0 = scmp.ge.s32.totalorder %s4795_s12, 1  ;;  %s4910_s14 = int_to_ptr.vmem [resolvable:$true] %s273_s14 }
  0x12   : > { %p6232_p1 = scmp.eq.s32.totalorder %s4905_s15, 0  ;;  %p261_p2 = scmp.lt.s32.totalorder %s4795_s12, 3 }
  0x13   : > { %s4798_s17 = smov [#allocation14]   ;;  %s4799_s20 = smov [#allocation17]  }
  0x14   : > { %p4912_p3 = pnand %p3937_p0, %p261_p2  ;;  %s286_s18 = sshll.u32 %s4798_s17, 4  ;;  %s4925_s18 = int_to_ptr.vmem [resolvable:$true] %s286_s18 }
  0x15   : > { %s4927_s21 = sshll.u32 %s4799_s20, 4  ;;  %s6245_s2 = sld [smem:[#allocation31_spill]]  ;;  %s316_s21 = int_to_ptr.vmem [resolvable:$true] %s4927_s21 }
  0x16   : > { %s6243_s16 = scalar_select %p4912_p3, 1, 0 }
  0x17   : > { %p4284_p5 = pneg %p4912_p3 }
  0x19   : > { %p4921_p6 = pnand %p4284_p5, %p6232_p1 }
  0x1b   : > { %s4481_s24 = scalar_lea.hbm %s6245_s2, 192  ;;  %p4937_p8 = pneg %p4921_p6 }
  0x1c   : > { %p4482_p7 = scmp.ne.s32.totalorder %s6245_s2, %s4481_s24  ;;  %p4488_p11 = scmp.lt.u32.totalorder %s4481_s24, %s6245_s2 }
  0x1e   : > { %p4484_p9 = pnand %p4937_p8, %p4482_p7 }
  0x20   : > { %p4485_p10 = pneg %p4484_p9 }
  0x22   : > { %p4490_p12 = pnand %p4488_p11, %p4485_p10 }
  0x24   : > { %4493 = shalt.err (!%p4490_p12)
}
  0x25   : > { %s4494_s13 = scalar_lea.vmem %s4910_s14, 192  ;;  %p4502_p5 = scmp.lt.s32.totalorder %s4910_s14, %s4910_s14 }
  0x26   : > { %p4495_p13 = scmp.ne.s32.totalorder %s4910_s14, %s4494_s13  ;;  %p4503_p4 = scmp.lt.s32.totalorder %s4494_s13, %s4494_s13 }
  0x28   : > { %p4497_p0 = pnand %p4495_p13, %p4937_p8  ;;  %p4504_p7 = por %p4503_p4, %p4502_p5 }
  0x2a   : > { %p4498_p2 = pneg %p4497_p0 }
  0x2c   : > { %p4505_p9 = pnand %p4504_p7, %p4498_p2 }
  0x2e   : > { %4508 = shalt.err (!%p4505_p9)
}
  0x2f   : > { %s4800_s17 = smov 64   ;;  %s4801_s20 = smov 4  }
  0x30   : > { %4287 = dma.hbm_to_vmem [thread:$0]  (!%p4921_p6), %s6245_s2, 192, %s4910_s14, [#allocation12], %s4800_s17, %s4800_s17, %s4801_s20  }
  0x31   : > { %s6247_s3 = sld [smem:[#allocation32_spill]] }
  0x37   : > { %s4509_s26 = scalar_lea.hbm %s6247_s3, 384 }
  0x38   : > { %p4510_p4 = scmp.ne.s32.totalorder %s6247_s3, %s4509_s26  ;;  %p4516_p12 = scmp.lt.u32.totalorder %s4509_s26, %s6247_s3 }
  0x3a   : > { %p4512_p10 = pnand %p4510_p4, %p4937_p8 }
  0x3c   : > { %p4513_p11 = pneg %p4512_p10 }
  0x3e   : > { %p4518_p13 = pnand %p4516_p12, %p4513_p11 }
  0x40   : > { %4521 = shalt.err (!%p4518_p13)
}
  0x41   : > { %s4522_s14 = scalar_lea.vmem %s4925_s18, 384  ;;  %p4530_p7 = scmp.lt.s32.totalorder %s4925_s18, %s4925_s18 }
  0x42   : > { %p4523_p0 = scmp.ne.s32.totalorder %s4925_s18, %s4522_s14  ;;  %p4531_p9 = scmp.lt.s32.totalorder %s4522_s14, %s4522_s14 }
  0x44   : > { %p4525_p2 = pnand %p4523_p0, %p4937_p8  ;;  %p4532_p4 = por %p4531_p9, %p4530_p7 }
  0x46   : > { %p4526_p5 = pneg %p4525_p2 }
  0x48   : > { %p4533_p10 = pnand %p4532_p4, %p4526_p5 }
  0x4a   : > { %4536 = shalt.err (!%p4533_p10)
}
  0x4b   : > { %s6234_s17 = smov 128   ;;  %s6235_s9 = smov 8  }
  0x4c   : > { %4290 = dma.hbm_to_vmem [thread:$0]  (!%p4921_p6), %s6247_s3, 384, %s4925_s18, [#allocation15], %s6234_s17, %s6234_s17, %s6235_s9  }
  0x4d   : > { %s4537_s25 = scalar_lea.hbm %s6227_s6, 1152 }
  0x4e   : > { %p4538_p11 = scmp.ne.s32.totalorder %s6227_s6, %s4537_s25  ;;  %p4544_p0 = scmp.lt.u32.totalorder %s4537_s25, %s6227_s6 }
  0x50   : > { %p4540_p12 = pnand %p4538_p11, %p4937_p8 }
  0x52   : > { %p4541_p13 = pneg %p4540_p12 }
  0x54   : > { %p4546_p2 = pnand %p4544_p0, %p4541_p13 }
  0x56   : > { %4549 = shalt.err (!%p4546_p2)
}
  0x57   : > { %s4550_s14 = scalar_lea.vmem %s316_s21, 1152  ;;  %p4558_p4 = scmp.lt.s32.totalorder %s316_s21, %s316_s21 }
  0x58   : > { %p4551_p5 = scmp.ne.s32.totalorder %s316_s21, %s4550_s14  ;;  %p4559_p10 = scmp.lt.s32.totalorder %s4550_s14, %s4550_s14 }
  0x5a   : > { %p4553_p7 = pnand %p4551_p5, %p4937_p8  ;;  %p4560_p1 = por %p4559_p10, %p4558_p4 }
  0x5c   : > { %p4554_p9 = pneg %p4553_p7 }
  0x5e   : > { %p4561_p3 = pnand %p4560_p1, %p4554_p9 }
  0x60   : > { %4564 = shalt.err (!%p4561_p3)
}
  0x61   : > { %s4804_s18 = smov 384   ;;  %s4805_s20 = smov 24  }
  0x62   : > { %4296 = dma.hbm_to_vmem [thread:$0]  (!%p4921_p6), %s6227_s6, 1152, %s316_s21, [#allocation18], %s4804_s18, %s4804_s18, %s4805_s20  }
  0x63   : > { %s4806_s24 = smov [#allocation16]   ;;  %s4807_s26 = smov [#allocation19]  }
  0x64   : > { %s299_s25 = sshll.u32 %s4806_s24, 4  ;;  %s328_s28 = sshll.u32 %s4807_s26, 4  ;;  %s300_s25 = int_to_ptr.vmem [resolvable:$true] %s299_s25  ;;  %s329_s28 = int_to_ptr.vmem [resolvable:$true] %s328_s28 }
  0x65   : > { %s6248_s4 = sld [smem:[#allocation33_spill]] }
  0x6b   : > { %s4565_s14 = scalar_lea.hbm %s6248_s4, 384 }
  0x6c   : > { %p4566_p1 = scmp.ne.s32.totalorder %s6248_s4, %s4565_s14  ;;  %p4572_p12 = scmp.lt.u32.totalorder %s4565_s14, %s6248_s4 }
  0x6e   : > { %p4568_p3 = pnand %p4566_p1, %p4937_p8 }
  0x70   : > { %p4569_p11 = pneg %p4568_p3 }
  0x72   : > { %p4574_p13 = pnand %p4572_p12, %p4569_p11 }
  0x74   : > { %4577 = shalt.err (!%p4574_p13)
}
  0x75   : > { %s4578_s21 = scalar_lea.vmem %s300_s25, 384  ;;  %p4586_p7 = scmp.lt.s32.totalorder %s300_s25, %s300_s25 }
  0x76   : > { %p4579_p0 = scmp.ne.s32.totalorder %s300_s25, %s4578_s21  ;;  %p4587_p9 = scmp.lt.s32.totalorder %s4578_s21, %s4578_s21 }
  0x78   : > { %p4581_p2 = pnand %p4579_p0, %p4937_p8  ;;  %p4588_p4 = por %p4587_p9, %p4586_p7 }
  0x7a   : > { %p4582_p5 = pneg %p4581_p2 }
  0x7c   : > { %p4589_p10 = pnand %p4588_p4, %p4582_p5 }
  0x7e   : > { %4592 = shalt.err (!%p4589_p10)
}
  0x7f   : > { %s6249_s17 = smov 8   ;;  %s6250_s9 = smov 128  }
  0x80   : > { %4293 = dma.hbm_to_vmem [thread:$0]  (!%p4921_p6), %s6248_s4, 384, %s300_s25, [#allocation15], %s6250_s9, %s6250_s9, %s6249_s17  }
  0x81   : > { %s4593_s22 = scalar_lea.hbm %s6228_s7, 1920 }
  0x82   : > { %p4594_p1 = scmp.ne.s32.totalorder %s6228_s7, %s4593_s22  ;;  %p4600_p12 = scmp.lt.u32.totalorder %s4593_s22, %s6228_s7 }
  0x84   : > { %p4596_p3 = pnand %p4594_p1, %p4937_p8 }
  0x86   : > { %p4597_p11 = pneg %p4596_p3 }
  0x88   : > { %p4602_p13 = pnand %p4600_p12, %p4597_p11 }
  0x8a   : > { %4605 = shalt.err (!%p4602_p13)
}
  0x8b   : > { %s4606_s13 = scalar_lea.vmem %s329_s28, 1920  ;;  %p4614_p7 = scmp.lt.s32.totalorder %s329_s28, %s329_s28 }
  0x8c   : > { %p4607_p0 = scmp.ne.s32.totalorder %s329_s28, %s4606_s13  ;;  %p4615_p9 = scmp.lt.s32.totalorder %s4606_s13, %s4606_s13 }
  0x8e   : > { %p4609_p2 = pnand %p4607_p0, %p4937_p8  ;;  %p4616_p4 = por %p4615_p9, %p4614_p7 }
  0x90   : > { %p4610_p5 = pneg %p4609_p2 }
  0x92   : > { %p4617_p10 = pnand %p4616_p4, %p4610_p5 }
  0x94   : > { %4620 = shalt.err (!%p4617_p10)
}
  0x95   : > { %s4808_s25 = smov 640   ;;  %s4809_s14 = smov 40  }
  0x96   : > { %4299 = dma.hbm_to_vmem [thread:$0]  (!%p4921_p6), %s6228_s7, 1920, %s329_s28, [#allocation18], %s4808_s25, %s4808_s25, %s4809_s14  }
  0x97   : > { %s4810_s9 = smov [#allocation20]   ;;  %s4621_s20 = scalar_lea.hbm %s6229_s8, 1536 }
  0x98   : > { %s341_s2 = sshll.u32 %s4810_s9, 4  ;;  %p4622_p1 = scmp.ne.s32.totalorder %s6229_s8, %s4621_s20  ;;  %s342_s2 = int_to_ptr.vmem [resolvable:$true] %s341_s2 }
  0x99   : > { %p4628_p12 = scmp.lt.u32.totalorder %s4621_s20, %s6229_s8 }
  0x9a   : > { %p4624_p3 = pnand %p4622_p1, %p4937_p8 }
  0x9c   : > { %p4625_p11 = pneg %p4624_p3 }
  0x9e   : > { %p4630_p13 = pnand %p4628_p12, %p4625_p11 }
  0xa0   : > { %4633 = shalt.err (!%p4630_p13)
}
  0xa1   : > { %s4634_s28 = scalar_lea.vmem %s342_s2, 1536  ;;  %p4642_p7 = scmp.lt.s32.totalorder %s342_s2, %s342_s2 }
  0xa2   : > { %p4635_p0 = scmp.ne.s32.totalorder %s342_s2, %s4634_s28  ;;  %p4643_p9 = scmp.lt.s32.totalorder %s4634_s28, %s4634_s28 }
  0xa4   : > { %p4637_p2 = pnand %p4635_p0, %p4937_p8  ;;  %p4644_p4 = por %p4643_p9, %p4642_p7 }
  0xa6   : > { %p4638_p5 = pneg %p4637_p2 }
  0xa8   : > { %p4645_p10 = pnand %p4644_p4, %p4638_p5 }
  0xaa   : > { %4648 = shalt.err (!%p4645_p10)
}
  0xab   : > { %s4811_s29 = smov 512   ;;  %s4812_s27 = smov 32  }
  0xac   : > { %4302 = dma.hbm_to_vmem [thread:$0]  (!%p4921_p6), %s6229_s8, 1536, %s342_s2, [#allocation21], %s4811_s29, %s4811_s29, %s4812_s27  }
  0xad   : > { %s3936_s14 = sadd.s32 4294967294, %s4795_s12   ;;  %s5062_s21 = sadd.s32 1, %s4795_s12  }
  0xae   : > { %s35_s17 = ssub.s32 %s4795_s12, %s5062_s21  ;;  %s38_s9 = sadd.s32 1, %s4791_s11 }
  0xaf   : > { %p36_p8 = scmp.eq.s32.totalorder %s35_s17, 0  ;;  %p45_p1 = scmp.ne.s32.totalorder %s4791_s11, %s4787_s10 }
  0xb0   : > { %p46_p3 = scmp.eq.s32.totalorder %s4795_s12, 0  ;;  %p51_p11 = scmp.ne.s32.totalorder %s4787_s10, %s4783_s30 }
  0xb1   : > { %s5073_s3 = scalar_select %p36_p8, %s4791_s11, %s38_s9  }
  0xb2   : > { %p47_p12 = por %p46_p3, %p45_p1  ;;  %p6251_p13 = scmp.eq.s32.totalorder %s4905_s15, 0 }
  0xb3   : > { %p248_p6 = scmp.eq.s32.totalorder %s4905_s15, 1  ;;  %p254_p2 = scmp.eq.s32.totalorder %s3936_s14, 1 }
  0xb4   : > { %p5077_p0 = por %p6251_p13, %p51_p11  ;;  %p4320_p5 = scmp.lt.s32.totalorder %s4795_s12, 2 }
  0xb5   : > { %s5084_s2 = sand.u32 1, %s4791_s11   ;;  %p5086_p7 = por %p248_p6, %p45_p1 }
  0xb6   : > { %s6252_s19 = scalar_select %p5077_p0, 1, 0 }
  0xb7   : > { %s6253_s18 = scalar_select %p5086_p7, 1, 0 }
  0xb8   : > { %p5090_p9 = por %p254_p2, %p51_p11  ;;  %s4246_s22 = smul.u32 12, %s5084_s2 }
  0xb9   : > { %s4247_s23 = smul.u32 192, %s4795_s12  ;;  %p5096_p4 = pnand %p4320_p5, %p47_p12 }
  0xba   : > { %s6254_s20 = scalar_select %p5090_p9, 1, 0 }
  0xbb   : > { %s6256_s0 = sld [smem:[#allocation30_spill]]  ;;  %s359_s13 = scalar_lea.vmem [#allocation8], %s4246_s22 }
  0xbc   : > { %s367_s25 = sshll.u32 %s359_s13, 4  ;;  %s356_s14 = scalar_lea.sflag [#allocation9], %s5084_s2  ;;  %s5106_s25 = int_to_ptr.vmem [resolvable:$true] %s367_s25 }
  0xbd   : > { %p4651_p8 = pneg %p5096_p4 }
  0xc1   : > { %s5104_s27 = scalar_lea.hbm %s6256_s0, %s4247_s23  ;;  %s4654_s28 = scalar_lea.hbm %s6256_s0, 384 }
  0xc2   : > { %s4649_s17 = scalar_lea.hbm %s5104_s27, 192  ;;  %p4655_p11 = scmp.lt.u32.totalorder %s5104_s27, %s6256_s0 }
  0xc3   : > { %p4650_p10 = scmp.ne.s32.totalorder %s5104_s27, %s4649_s17  ;;  %p4656_p12 = scmp.lt.u32.totalorder %s4654_s28, %s4649_s17 }
  0xc4   : > { %p4658_p6 = scmp.lt.u32.totalorder %s4649_s17, %s5104_s27 }
  0xc5   : > { %p4652_p1 = pnand %p4651_p8, %p4650_p10  ;;  %p4657_p13 = por %p4656_p12, %p4655_p11 }
  0xc7   : > { %p4653_p3 = pneg %p4652_p1  ;;  %p4659_p2 = por %p4658_p6, %p4657_p13 }
  0xc9   : > { %p4660_p5 = pnand %p4659_p2, %p4653_p3 }
  0xcb   : > { %4663 = shalt.err (!%p4660_p5)
}
  0xcc   : > { %s4664_s22 = scalar_lea.vmem %s5106_s25, 192  ;;  %s4813_s13 = smov [#allocation8]  }
  0xcd   : > { %p4665_p10 = scmp.ne.s32.totalorder %s5106_s25, %s4664_s22  ;;  %s4669_s9 = sshll.u32 %s4813_s13, 4  ;;  %s4670_s9 = int_to_ptr.vmem [resolvable:$false] %s4669_s9 }
  0xce   : > { %s4671_s26 = scalar_lea.vmem %s4670_s9, 384  ;;  %p4672_p7 = scmp.lt.s32.totalorder %s5106_s25, %s4670_s9 }
  0xcf   : > { %p4667_p1 = pnand %p4665_p10, %p4651_p8  ;;  %p4673_p11 = scmp.lt.s32.totalorder %s4671_s26, %s4664_s22 }
  0xd1   : > { %p4668_p9 = pneg %p4667_p1  ;;  %p4674_p12 = por %p4673_p11, %p4672_p7 }
  0xd3   : > { %p4675_p13 = pnand %p4674_p12, %p4668_p9 }
  0xd5   : > { %4678 = shalt.err (!%p4675_p13)
}
  0xd6   : > { %4306 = dma.hbm_to_vmem [thread:$0]  (!%p5096_p4), %s5104_s27, 192, %s5106_s25, %s356_s14  }
  0xd7   : > { %s4248_s17 = smul.u32 48, %s5084_s2  ;;  %s6257_s26 = sand.u32 1, %s4795_s12  }
  0xd8   : > { %s4249_s23 = smul.u32 768, %s4795_s12  ;;  %s375_s0 = scalar_lea.sflag [#allocation12], %s6257_s26 }
  0xd9   : > { %s378_s22 = scalar_lea.vmem [#allocation11], %s4248_s17  ;;  %s4684_s25 = scalar_lea.hbm %s6222_s1, 1536 }
  0xda   : > { %s5139_s13 = scalar_lea.hbm %s6222_s1, %s4249_s23  ;;  %s386_s9 = sshll.u32 %s378_s22, 4  ;;  %s387_s9 = int_to_ptr.vmem [resolvable:$true] %s386_s9 }
  0xdb   : > { %s4679_s4 = scalar_lea.hbm %s5139_s13, 768  ;;  %p4685_p6 = scmp.lt.u32.totalorder %s5139_s13, %s6222_s1 }
  0xdc   : > { %p4680_p7 = scmp.ne.s32.totalorder %s5139_s13, %s4679_s4  ;;  %p4686_p2 = scmp.lt.u32.totalorder %s4684_s25, %s4679_s4 }
  0xdd   : > { %p4688_p10 = scmp.lt.u32.totalorder %s4679_s4, %s5139_s13 }
  0xde   : > { %p4682_p9 = pnand %p4680_p7, %p4651_p8  ;;  %p4687_p5 = por %p4686_p2, %p4685_p6 }
  0xe0   : > { %p4683_p3 = pneg %p4682_p9  ;;  %p4689_p1 = por %p4688_p10, %p4687_p5 }
  0xe2   : > { %p4690_p11 = pnand %p4689_p1, %p4683_p3 }
  0xe4   : > { %4693 = shalt.err (!%p4690_p11)
}
  0xe5   : > { %s4694_s17 = scalar_lea.vmem %s387_s9, 768  ;;  %s4814_s28 = smov [#allocation11]  }
  0xe6   : > { %p4695_p12 = scmp.ne.s32.totalorder %s387_s9, %s4694_s17  ;;  %s4699_s29 = sshll.u32 %s4814_s28, 4  ;;  %s4700_s29 = int_to_ptr.vmem [resolvable:$false] %s4699_s29 }
  0xe7   : > { %s4701_s22 = scalar_lea.vmem %s4700_s29, 1536  ;;  %p4702_p9 = scmp.lt.s32.totalorder %s387_s9, %s4700_s29 }
  0xe8   : > { %p4697_p13 = pnand %p4695_p12, %p4651_p8  ;;  %p4703_p0 = scmp.lt.s32.totalorder %s4701_s22, %s4694_s17 }
  0xea   : > { %p4698_p7 = pneg %p4697_p13  ;;  %p4704_p2 = por %p4703_p0, %p4702_p9 }
  0xec   : > { %p4705_p6 = pnand %p4704_p2, %p4698_p7 }
  0xee   : > { %4708 = shalt.err (!%p4705_p6)
}
  0xef   : > { %4309 = dma.hbm_to_vmem [thread:$0]  (!%p5096_p4), %s5139_s13, 768, %s387_s9, %s375_s0  }
  0xf0   : > { %p6258_p3 = scmp.ne.s32.totalorder %s6243_s16, 0 }
  0xf1   : > { %s5165_s4 = sand.u32 (!%p6258_p3), 1, %s4787_s10   ;;  %p6259_p0 = scmp.ne.s32.totalorder (!%p6258_p3), %s6252_s19, 0 }
  0xf2   : > { %395 = sbr.rel (%p6258_p3) target bundleno = 1682 (0x692), region = 56  ;;  %s398_s2 = scalar_lea.sflag (!%p6258_p3), [#allocation9], %s5165_s4 }
  0xf3   : > { %s4250_s26 = smul.u32 (!%p6258_p3), 12, %s5165_s4 }
  0xf5   : > { %s5169_s27 = scalar_lea.vmem (!%p6258_p3), [#allocation8], %s4250_s26 }
  0xf9   : > { %4754 = dma.done.wait (%p6259_p0), %s398_s2, 192  }
  0xfa   : > { %4756 = vsyncadd (%p6259_p0), %s398_s2, 4294967104  ;;  %s406_s0 = sand.u32 1, %s4905_s15   ;;  %s4251_s16 = smul.u32 48, %s5165_s4 }
  0xfb   : > { %s407_s24 = scalar_lea.sflag [#allocation12], %s406_s0 }
  0xfc   : > { %s5177_s13 = scalar_lea.vmem [#allocation11], %s4251_s16 }
  0xfd   : > { %4758 = dma.done.wait (%p6259_p0), %s407_s24, 768  }
  0xfe   : > { %4760 = vsyncadd (%p6259_p0), %s407_s24, 4294966528  ;;  %p6260_p4 = scmp.eq.s32.totalorder %s4905_s15, 0 }
 0x100   : > { %4762 = dma.done.wait (%p6260_p4), [#allocation12], 192   ;;  %p6261_p8 = pmov %p6260_p4 }
 0x101   : > { %p6262_p5 = pmov %p6260_p4 }
 0x102   : > { %4764 = vsyncadd (%p6261_p8), [#allocation12], 4294967104 }
 0x103   : > { %4766 = dma.done.wait (%p6262_p5), [#allocation15], 768   ;;  %p6263_p10 = pmov %p6260_p4 }
 0x104   : > { %p6264_p1 = pmov %p6260_p4 }
 0x105   : > { %4768 = vsyncadd (%p6263_p10), [#allocation15], 4294966528 }
 0x106   : > { %4770 = dma.done.wait (%p6264_p1), [#allocation18], 3072   ;;  %p6265_p11 = pmov %p6264_p1 }
 0x107   : > { %p6266_p12 = pmov %p6264_p1 }
 0x108   : > { %4772 = vsyncadd (%p6265_p11), [#allocation18], 4294964224 }
 0x109   : > { %4774 = dma.done.wait (%p6266_p12), [#allocation21], 1536   ;;  %p6267_p13 = pmov %p6264_p1 }
 0x10a   : > { %v515_v0 = vlaneseq  ;;  %v4815_v1 = vmov 1983009808   ;;  %v556_v6 = vld [vmem:[%s5169_s27] sm:$0xff]  ;;  %s4816_s19 = smov 126   ;;  %s4817_s9 = smov 127   ;;  %v4824_v21 = vmov 0  }
 0x10b   : > { %4776 = vsyncadd (%p6267_p13), [#allocation21], 4294965760  ;;  %v513_v2 = vunpack.c.l.s4 %v4815_v1  ;;  %v560_v8 = vcombine.high %v556_v6, %v556_v6  ;;  %3955 = vst.sshfl [vmem:[#allocation2] sm:$0xf pattern:$0x76325410] %v556_v6  ;;  %v511_v9 = vcombine.low %v556_v6, %v556_v6  ;;  %1034 = vmatprep.mubr.bf16.mxu0 %v4824_v21  ;;  %1085 = vmatprep.mubr.bf16.mxu1 %v4824_v21 }
 0x10c   : > { %v516_v3 = vshrl.u32 %v515_v0, 7  ;;  %s4818_s25 = smov 106   ;;  %s4819_s14 = smov 105   ;;  %v4396_v13 = vld [vmem:[%s5169_s27 + $0x8] ss:$0 sps:$4 sm:$0xff]   ;;  %vm543_vm0 = vcmask 1043456  }
 0x10d   : > { %v514_v4 = vunpack.c.0.s8 %v513_v2  ;;  %3956 = vst.sshfl [vmem:[#allocation2 + $0x8] sm:$0xf pattern:$0x76325410] %v560_v8  ;;  %s4820_s23 = smov 104   ;;  %s4821_s17 = smov 84  }
 0x10e   : > { %v3954_v12 = vld.sshfl [vmem:[%s5169_s27 + $0x8] sm:$0x3 pattern:$0x76325410]  ;;  %s4822_s28 = smov 83   ;;  %s4823_s29 = smov 82  }
 0x10f   : > { %v517_v5 = vsub.s32 %v514_v4, %v516_v3  ;;  %506 = vst [vmem:[#allocation2 + $0x10] sm:$0x3] %v3954_v12  ;;  %v4397_v15 = vld [vmem:[%s5169_s27 + $0x8] ss:$0 sps:$4 sm:$0xff]   ;;  %vm592_vm1 = vcmask 1031168   ;;  %vm545_vm2 = vcmask 1039360  }
 0x110   : > { %v3957_v16 = vld.sshfl [vmem:[%s5169_s27 + $0x8] sm:$0x33 pattern:$0x76325410]  ;;  %vm687_vm3 = vcmask 859136   ;;  %vm640_vm4 = vcmask 867328  }
 0x111   : > { %v567_v7 = vrot.slane %v556_v6, %v517_v5  ;;  %v574_v10 = vrot.slane %v560_v8, %v517_v5  ;;  %v518_v11 = vrot.slane %v511_v9, %v517_v5  ;;  %v533_v14 = vrot.slane %v4396_v13, %v517_v5  ;;  %v4398_v18 = vld [vmem:[%s5169_s27 + $0x8] ss:$0 sps:$4 sm:$0xff]   ;;  %s4825_s22 = smov 81   ;;  %s4826_s26 = smov 80  }
 0x112   : > { %v629_v17 = vrot.slane %v4397_v15, %v517_v5  ;;  %v724_v19 = vrot.slane %v4398_v18, %v517_v5  ;;  %v4399_v20 = vld [vmem:[%s5169_s27 + $0x8] ss:$0 sps:$4 sm:$0xff]   ;;  %vm735_vm5 = vcmask 850944   ;;  %vm782_vm6 = vcmask 687104   ;;  %s4827_s2 = smov 60   ;;  %s4828_s27 = smov 59  }
 0x113   : > { %582 = vrot.lane.b32.xlu1 %v567_v7, %s4816_s19  ;;  %536 = vrot.lane.b32.xlu0 %v567_v7, %s4817_s9  ;;  %v819_v22 = vrot.slane %v4399_v20, %v517_v5  ;;  %vm830_vm7 = vcmask 678912   ;;  %vm877_vm8 = vcmask 670720   ;;  %vm986_vm9 = vcmask 1041408   ;;  %s4829_s0 = smov 58   ;;  %s4830_s16 = smov 38  }
 0x114   : > { %vm979_vm10 = vcmask 293888   ;;  %vm2150_vm11 = vcmask 719872   ;;  %s4831_s24 = smov 37   ;;  %vm3220_vm12 = vcmask 662528   ;;  %vm3252_vm13 = vcmask 654336   ;;  %p6269_p9 = scmp.ne.s32.totalorder %s6253_s18, 0 }
 0x115   : > { %vm3284_vm14 = vcmask 490496   ;;  %vm3316_vm15 = vcmask 482304  }
 0x117   : > { %632 = vrot.lane.b32.xlu1 %v567_v7, %s4818_s25  ;;  %677 = vrot.lane.b32.xlu0 %v567_v7, %s4819_s14 }
 0x11b   : > { %584 = vrot.lane.b32.xlu1 %v574_v10, %s4816_s19  ;;  %534 = vrot.lane.b32.xlu0 %v518_v11, %s4817_s9 }
 0x11f   : > { %679 = vrot.lane.b32.xlu1 %v574_v10, %s4819_s14  ;;  %630 = vrot.lane.b32.xlu0 %v518_v11, %s4818_s25 }
 0x123   : > { %727 = vrot.lane.b32.xlu1 %v567_v7, %s4820_s23  ;;  %725 = vrot.lane.b32.xlu0 %v518_v11, %s4820_s23 }
 0x127   : > { %774 = vrot.lane.b32.xlu1 %v574_v10, %s4821_s17  ;;  %772 = vrot.lane.b32.xlu0 %v567_v7, %s4821_s17 }
 0x12b   : > { %822 = vrot.lane.b32.xlu1 %v567_v7, %s4822_s28  ;;  %820 = vrot.lane.b32.xlu0 %v518_v11, %s4822_s28 }
 0x12f   : > { %869 = vrot.lane.b32.xlu1 %v574_v10, %s4823_s29  ;;  %867 = vrot.lane.b32.xlu0 %v567_v7, %s4823_s29 }
 0x133   : > { %586 = vrot.lane.b32.xlu1 %v3957_v16, %s4816_s19  ;;  %538 = vrot.lane.b32.xlu0 %v533_v14, %s4817_s9 }
 0x137   : > { %681 = vrot.lane.b32.xlu1 %v3957_v16, %s4819_s14  ;;  %634 = vrot.lane.b32.xlu0 %v629_v17, %s4818_s25 }
 0x13b   : > { %776 = vrot.lane.b32.xlu1 %v3957_v16, %s4821_s17  ;;  %729 = vrot.lane.b32.xlu0 %v724_v19, %s4820_s23 }
 0x13f   : > { %871 = vrot.lane.b32.xlu1 %v3957_v16, %s4823_s29  ;;  %824 = vrot.lane.b32.xlu0 %v819_v22, %s4822_s28 }
 0x185   : > { %v583_v23 = vpop.permute.xlu1 %582  ;;  %v5232_v24 = vpop.permute.xlu0 %536 }
 0x186   : > { %v588_v29 = vrot.slane %v583_v23, 4  ;;  %v541_v30 = vrot.slane %v5232_v24, 4 }
 0x189   : > { %v5234_v25 = vpop.permute.xlu1 %632  ;;  %v678_v26 = vpop.permute.xlu0 %677 }
 0x18a   : > { %v637_v39 = vrot.slane %v5234_v25, 4  ;;  %v683_v40 = vrot.slane %v678_v26, 4 }
 0x18d   : > { %v5236_v27 = vpop.permute.xlu1 %584  ;;  %v535_v28 = vpop.permute.xlu0 %534 }
 0x18e   : > { %v589_v31 = vrot.slane %v5236_v27, 4  ;;  %v540_v32 = vrot.slane %v535_v28, 4 }
 0x190   : > { %v591_v33 = vsel %vm543_vm0, %v588_v29, %v589_v31  ;;  %v544_v34 = vsel %vm543_vm0, %v540_v32, %v541_v30 }
 0x191   : > { %v593_v35 = vsel %vm592_vm1, %v583_v23, %v591_v33  ;;  %v546_v36 = vsel %vm545_vm2, %v535_v28, %v544_v34  ;;  %v5248_v37 = vpop.permute.xlu1 %679  ;;  %v631_v38 = vpop.permute.xlu0 %630 }
 0x192   : > { %600 = vst [vmem:[#allocation2 + $0x14] sm:$0x33] %v593_v35  ;;  %553 = vst [vmem:[#allocation2] sm:$0xcc] %v546_v36  ;;  %v684_v41 = vrot.slane %v5248_v37, 4  ;;  %v636_v42 = vrot.slane %v631_v38, 4 }
 0x194   : > { %v686_v43 = vsel %vm543_vm0, %v683_v40, %v684_v41  ;;  %v639_v44 = vsel %vm543_vm0, %v636_v42, %v637_v39 }
 0x195   : > { %v688_v45 = vsel %vm687_vm3, %v678_v26, %v686_v43  ;;  %v641_v46 = vsel %vm640_vm4, %v631_v38, %v639_v44  ;;  %v5260_v47 = vpop.permute.xlu1 %727  ;;  %v726_v48 = vpop.permute.xlu0 %725 }
 0x196   : > { %695 = vst [vmem:[#allocation2 + $0x28] sm:$0x33] %v688_v45  ;;  %648 = vst [vmem:[#allocation2 + $0x14] sm:$0xcc] %v641_v46  ;;  %v732_v49 = vrot.slane %v5260_v47, 4  ;;  %v731_v50 = vrot.slane %v726_v48, 4 }
 0x198   : > { %v734_v51 = vsel %vm543_vm0, %v731_v50, %v732_v49 }
 0x199   : > { %v736_v52 = vsel %vm735_vm5, %v726_v48, %v734_v51  ;;  %v5267_v53 = vpop.permute.xlu1 %774  ;;  %v773_v54 = vpop.permute.xlu0 %772 }
 0x19a   : > { %743 = vst [vmem:[#allocation2 + $0x28] sm:$0xcc] %v736_v52  ;;  %v779_v55 = vrot.slane %v5267_v53, 4  ;;  %v778_v56 = vrot.slane %v773_v54, 4  ;;  %v4408_v52 = vld [vmem:[#allocation13] sm:$0xff]  }
 0x19c   : > { %v781_v57 = vsel %vm543_vm0, %v778_v56, %v779_v55 }
 0x19d   : > { %v783_v58 = vsel %vm782_vm6, %v773_v54, %v781_v57  ;;  %v5274_v59 = vpop.permute.xlu1 %822  ;;  %v821_v60 = vpop.permute.xlu0 %820  ;;  %v4400_v61 = vld [vmem:[#allocation2 + $0x4] ss:$20 sps:$4 sm:$0xff]   ;;  %v4402_v62 = vld [vmem:[#allocation2] ss:$20 sps:$4 sm:$0xff]  }
 0x19e   : > { %790 = vst [vmem:[#allocation2 + $0x3c] sm:$0x33] %v783_v58  ;;  %v827_v63 = vrot.slane %v5274_v59, 4  ;;  %v826_v0 = vrot.slane %v821_v60, 4  ;;  %1002 = vmatprep.subr.bf16.mxu0 %v4400_v61 }
 0x19f   : > { %1003 = vmatpush1.bf16.msra.mxu0 %v4402_v62 }
 0x1a0   : > { %v829_v1 = vsel %vm543_vm0, %v826_v0, %v827_v63 }
 0x1a1   : > { %v831_v2 = vsel %vm830_vm7, %v821_v60, %v829_v1  ;;  %v5281_v3 = vpop.permute.xlu1 %869  ;;  %v868_v4 = vpop.permute.xlu0 %867  ;;  %v897_v22 = vld [vmem:[#allocation2 + $0x28] sm:$0xff] }
 0x1a2   : > { %838 = vst [vmem:[#allocation2 + $0x3c] sm:$0xcc] %v831_v2  ;;  %v874_v5 = vrot.slane %v5281_v3, 4  ;;  %v873_v6 = vrot.slane %v868_v4, 4 }
 0x1a4   : > { %v876_v7 = vsel %vm543_vm0, %v873_v6, %v874_v5 }
 0x1a5   : > { %v878_v8 = vsel %vm877_vm8, %v868_v4, %v876_v7  ;;  %v587_v9 = vpop.permute.xlu1 %586  ;;  %v539_v10 = vpop.permute.xlu0 %538 }
 0x1a6   : > { %885 = vst [vmem:[#allocation2 + $0x50] sm:$0x33] %v878_v8  ;;  %v590_v11 = vrot.slane %v587_v9, 4  ;;  %v542_v12 = vrot.slane %v539_v10, 4  ;;  %v1152_v8 = vld [vmem:[#allocation19] sm:$0xff] }
 0x1a8   : > { %v594_v13 = vsel %vm543_vm0, %v589_v31, %v590_v11  ;;  %v596_v14 = vsel %vm592_vm1, %v587_v9, %v590_v11  ;;  %v547_v15 = vsel %vm543_vm0, %v541_v30, %v542_v12  ;;  %v549_v16 = vsel %vm545_vm2, %v539_v10, %v542_v12  ;;  %v1153_v9 = vld [vmem:[#allocation19 + $0x8] sm:$0xff] }
 0x1a9   : > { %v595_v17 = vsel %vm592_vm1, %v5236_v27, %v594_v13  ;;  %602 = vst [vmem:[#allocation2 + $0x24] sm:$0x3] %v596_v14  ;;  %v548_v18 = vsel %vm545_vm2, %v5232_v24, %v547_v15  ;;  %555 = vst [vmem:[#allocation2 + $0x10] sm:$0xc] %v549_v16  ;;  %v682_v19 = vpop.permute.xlu1 %681  ;;  %v635_v20 = vpop.permute.xlu0 %634  ;;  %v900_v23 = vld [vmem:[#allocation2 + $0x3c] sm:$0xff]  ;;  %v1157_v11 = vld [vmem:[#allocation19 + $0x28] sm:$0xff] }
 0x1aa   : > { %v4403_v26 = vld [vmem:[#allocation2 + $0x2c] ss:$20 sps:$4 sm:$0xff]   ;;  %601 = vst [vmem:[#allocation2 + $0x1c] sm:$0x33] %v595_v17  ;;  %554 = vst [vmem:[#allocation2 + $0x8] sm:$0xcc] %v548_v18  ;;  %v3968_v30 = vcombine.low %v897_v22, %v900_v23 }
 0x1ab   : > { %v685_v28 = vrot.slane %v682_v19, 4  ;;  %v638_v29 = vrot.slane %v635_v20, 4  ;;  %1004 = vmatprep.subr.bf16.mxu0 %v4403_v26  ;;  %v1158_v14 = vld [vmem:[#allocation19 + $0x30] sm:$0xff]  ;;  %v1163_v26 = vld [vmem:[#allocation19 + $0x58] sm:$0xff] }
 0x1ac   : > { %1005 = vmatpush1.bf16.msra.mxu0 %v3968_v30  ;;  %v1162_v23 = vld [vmem:[#allocation19 + $0x50] sm:$0xff] }
 0x1ad   : > { %v689_v27 = vsel %vm543_vm0, %v684_v41, %v685_v28  ;;  %v691_v31 = vsel %vm687_vm3, %v682_v19, %v685_v28  ;;  %v642_v24 = vsel %vm543_vm0, %v637_v39, %v638_v29  ;;  %v644_v32 = vsel %vm640_vm4, %v635_v20, %v638_v29  ;;  %v777_v35 = vpop.permute.xlu1 %776  ;;  %v730_v36 = vpop.permute.xlu0 %729  ;;  %v903_v38 = vld [vmem:[#allocation2 + $0x50] sm:$0x33] }
 0x1ae   : > { %v690_v33 = vsel %vm687_vm3, %v5248_v37, %v689_v27  ;;  %697 = vst [vmem:[#allocation2 + $0x38] sm:$0x3] %v691_v31  ;;  %v643_v34 = vsel %vm640_vm4, %v5234_v25, %v642_v24  ;;  %650 = vst [vmem:[#allocation2 + $0x24] sm:$0xc] %v644_v32  ;;  %v780_v40 = vrot.slane %v777_v35, 4  ;;  %v733_v41 = vrot.slane %v730_v36, 4 }
 0x1af   : > { %696 = vst [vmem:[#allocation2 + $0x30] sm:$0x33] %v690_v33  ;;  %649 = vst [vmem:[#allocation2 + $0x1c] sm:$0xcc] %v643_v34  ;;  %v3974_v39 = vcombine.high %v903_v38, %v903_v38  ;;  %v3973_v42 = vcombine.low %v903_v38, %v903_v38  ;;  %v1156_v38 = vld [vmem:[#allocation19 + $0x20] sm:$0xff] }
 0x1b0   : > { %v784_v43 = vsel %vm543_vm0, %v779_v55, %v780_v40  ;;  %v786_v37 = vsel %vm782_vm6, %v777_v35, %v780_v40  ;;  %v737_v25 = vsel %vm543_vm0, %v732_v49, %v733_v41  ;;  %v739_v44 = vsel %vm735_vm5, %v730_v36, %v733_v41  ;;  %v1166_v35 = vld [vmem:[#allocation19 + $0x70] sm:$0xff]  ;;  %v1155_v40 = vld [vmem:[#allocation19 + $0x18] sm:$0xff] }
 0x1b1   : > { %3978 = vmatprep.subr.msk.bf16.mxu0 %vm986_vm9, %v3974_v39  ;;  %v785_v45 = vsel %vm782_vm6, %v5267_v53, %v784_v43  ;;  %792 = vst [vmem:[#allocation2 + $0x4c] sm:$0x3] %v786_v37  ;;  %v738_v46 = vsel %vm735_vm5, %v5260_v47, %v737_v25  ;;  %745 = vst [vmem:[#allocation2 + $0x38] sm:$0xc] %v739_v44  ;;  %v872_v48 = vpop.permute.xlu1 %871  ;;  %v825_v50 = vpop.permute.xlu0 %824  ;;  %v988_v51 = vsel %vm986_vm9, %v3973_v42, 0  ;;  %v1154_v36 = vld [vmem:[#allocation19 + $0x10] sm:$0xff] }
 0x1b2   : > { %791 = vst [vmem:[#allocation2 + $0x44] sm:$0x33] %v785_v45  ;;  %744 = vst [vmem:[#allocation2 + $0x30] sm:$0xcc] %v738_v46  ;;  %v875_v49 = vrot.slane %v872_v48, 4  ;;  %v828_v54 = vrot.slane %v825_v50, 4  ;;  %1007 = vmatpush1.bf16.msra.mxu0 %v988_v51 }
 0x1b3   : > { %v1159_v42 = vld [vmem:[#allocation19 + $0x38] sm:$0xff]  ;;  %v1161_v25 = vld [vmem:[#allocation19 + $0x48] sm:$0xff]  ;;  %v1160_v46 = vld [vmem:[#allocation19 + $0x40] sm:$0xff] }
 0x1b4   : > { %v879_v53 = vsel %vm543_vm0, %v874_v5, %v875_v49  ;;  %v881_v55 = vsel %vm877_vm8, %v872_v48, %v875_v49  ;;  %v832_v47 = vsel %vm543_vm0, %v827_v63, %v828_v54  ;;  %v834_v56 = vsel %vm830_vm7, %v825_v50, %v828_v54  ;;  %v4419_v63 = vld [vmem:[#allocation13 + $0x8] ss:$0 sps:$4 sm:$0xff]  }
 0x1b5   : > { %v4407_v57 = vld [vmem:[#allocation2 + $0x10] ss:$20 sps:$4 sm:$0xff]   ;;  %v880_v58 = vsel %vm877_vm8, %v5281_v3, %v879_v53  ;;  %887 = vst [vmem:[#allocation2 + $0x60] sm:$0x3] %v881_v55  ;;  %v833_v60 = vsel %vm830_vm7, %v5274_v59, %v832_v47  ;;  %840 = vst [vmem:[#allocation2 + $0x4c] sm:$0xc] %v834_v56  ;;  %3979 = vmatmul.mubr.msk.bf16.vlgmr.msra.gmra.mrb[0].mxu0 %vm979_vm10, %v4408_v52 }
 0x1b6   : > { %v4409_v61 = vld [vmem:[#allocation2 + $0xc] ss:$20 sps:$4 sm:$0xff]   ;;  %v4411_v62 = vld [vmem:[#allocation2 + $0x8] ss:$20 sps:$4 sm:$0xff]   ;;  %886 = vst [vmem:[#allocation2 + $0x58] sm:$0x33] %v880_v58  ;;  %4212 = vmatprep.subr.bf16.mxu0 %v4407_v57  ;;  %1044 = vmatprep.mubr.bf16.mxu0 %v4824_v21 }
 0x1b7   : > { %839 = vst [vmem:[#allocation2 + $0x44] sm:$0xcc] %v833_v60  ;;  %1053 = vmatprep.subr.bf16.mxu1 %v4409_v61  ;;  %4213 = vmatpush3.bf16.msra.mxu0 %v4407_v57 }
 0x1b8   : > { %1054 = vmatpush1.bf16.msra.mxu1 %v4411_v62  ;;  %v1164_v62 = vld [vmem:[#allocation19 + $0x60] sm:$0xff] }
 0x1bc   : > { %v4412_v0 = vld [vmem:[#allocation2 + $0x38] ss:$20 sps:$4 sm:$0xff]   ;;  %v4416_v59 = vld [vmem:[#allocation2 + $0x60] ss:$0 sps:$4 sm:$0x33]  }
 0x1bd   : > { %3980 = vmatmul.mubr.msk.bf16.gmra.mrb[4].mxu0 %vm979_vm10, %v4419_v63  ;;  %4214 = vmatprep.subr.bf16.mxu0 %v4412_v0  ;;  %v904_v3 = vld [vmem:[#allocation2 + $0x58] sm:$0x33]  ;;  %v1000_v6 = vsel %vm986_vm9, %v4416_v59, 0 }
 0x1be   : > { %v4413_v1 = vld [vmem:[#allocation2 + $0x34] ss:$20 sps:$4 sm:$0xff]   ;;  %v4415_v2 = vld [vmem:[#allocation2 + $0x30] ss:$20 sps:$4 sm:$0xff]   ;;  %4218 = vmatprep.mubr.msk.bf16.mxu0 %vm979_vm10, %v4408_v52  ;;  %4215 = vmatpush3.bf16.msra.mxu0 %v4412_v0  ;;  %v3976_v4 = vcombine.high %v904_v3, %v904_v3  ;;  %v3975_v5 = vcombine.low %v904_v3, %v904_v3 }
 0x1bf   : > { %1055 = vmatprep.subr.bf16.mxu1 %v4413_v1  ;;  %4244 = vmatprep.subr.msk.bf16.mxu0 %vm986_vm9, %v4416_v59 }
 0x1c0   : > { %1056 = vmatpush1.bf16.msra.mxu1 %v4415_v2  ;;  %v994_v7 = vsel %vm986_vm9, %v3975_v5, 0 }
 0x1c1   : > { %3981 = vmatprep.subr.msk.bf16.mxu1 %vm986_vm9, %v3976_v4 }
 0x1c2   : > { %4217 = vmatpush3.bf16.msra.mxu0 %v1000_v6 }
 0x1c4   : > { %1058 = vmatpush1.bf16.msra.mxu1 %v994_v7 }
 0x1c5   : > { %4219 = vmatmul.mubr.msk.bf16.vlgmr.msra.gmra.mrb[8].mxu0 %vm979_vm10, %v4419_v63 }
 0x1c7   : > { %3982 = vmatmul.mubr.msk.bf16.vlgmr.msra.gmra.mrb[0].mxu1 %vm979_vm10, %v4408_v52 }
 0x1c8   : > { %1095 = vmatprep.mubr.bf16.mxu1 %v4824_v21 }
 0x1cf   : > { %3983 = vmatmul.mubr.msk.bf16.gmra.mrb[4].mxu1 %vm979_vm10, %v4419_v63  ;;  %v1165_v63 = vld [vmem:[#allocation19 + $0x68] sm:$0xff] }
 0x288   : > { %v1036_v10 = vpop.f32.mrb[0].mxu0 }
 0x289   : > { %v1167_v12 = vmul.f32 %v1152_v8, %v1036_v10  ;;  %v1038_v13 = vpop.f32.mrb[1].mxu0 }
 0x28a   : > { %v1168_v15 = vmul.f32 %v1153_v9, %v1038_v13  ;;  %v1040_v16 = vpop.f32.mrb[2].mxu0 }
 0x28b   : > { %v1172_v17 = vmul.f32 %v1157_v11, %v1040_v16  ;;  %v1042_v18 = vpop.f32.mrb[3].mxu0 }
 0x28c   : > { %v5350_v19 = vpack.c.bf16 %v1168_v15, %v1167_v12  ;;  %v1173_v20 = vmul.f32 %v1158_v14, %v1042_v18 }
 0x28d   : > { %v4475_v28 = vpack.c.bf16 %v1172_v17, %v1167_v12 }
 0x28e   : > { %v5352_v22 = vpack.c.bf16 %v1173_v20, %v1172_v17  ;;  %1274 = vrot.lane.b32.xlu0 %v5350_v19, %s4817_s9  ;;  %v4476_v29 = vpack.c.bf16 %v1173_v20, %v1168_v15 }
 0x290   : > { %v1046_v30 = vpop.f32.mrb[4].mxu0  ;;  %2170 = vmatprep.subr.bf16.mxu1 %v4476_v29 }
 0x291   : > { %v1177_v27 = vmul.f32 %v1162_v23, %v1046_v30  ;;  %v1048_v31 = vpop.f32.mrb[5].mxu0  ;;  %2171 = vmatpush1.bf16.msra.mxu1 %v4475_v28 }
 0x292   : > { %v1178_v24 = vmul.f32 %v1163_v26, %v1048_v31  ;;  %v1050_v32 = vpop.f32.mrb[6].mxu0 }
 0x293   : > { %v1051_v33 = vpop.f32.mrb[7].mxu0 }
 0x294   : > { %v5356_v34 = vpack.c.bf16 %v1178_v24, %v1177_v27 }
 0x298   : > { %v4220_v41 = vpop.f32.mrb[8].mxu0 }
 0x299   : > { %v1181_v43 = vmul.f32 %v4220_v41, %v1166_v35  ;;  %v1138_v37 = vpop.f32.mrb[9].mxu0 }
 0x29a   : > { %v1087_v39 = vpop.f32.mrb[0].mxu1  ;;  %v1171_v48 = vmul.f32 %v1156_v38, %v1138_v37  ;;  %v4221_v50 = vpop.f32.mrb[10].mxu0 }
 0x29b   : > { %v1169_v44 = vmul.f32 %v1154_v36, %v1087_v39  ;;  %v1089_v45 = vpop.f32.mrb[1].mxu1  ;;  %v4175_v49 = vpack.c.bf16 %v1181_v43, %v1181_v43  ;;  %v1141_v54 = vpop.f32.mrb[11].mxu0 }
 0x29c   : > { %v1170_v51 = vmul.f32 %v1155_v40, %v1089_v45  ;;  %v1091_v52 = vpop.f32.mrb[2].mxu1  ;;  %v4169_v47 = vpack.c.bf16 %v1171_v48, %v1171_v48  ;;  %v1176_v56 = vmul.f32 %v1161_v25, %v1141_v54 }
 0x29d   : > { %v1174_v53 = vmul.f32 %v1159_v42, %v1091_v52  ;;  %v1093_v55 = vpop.f32.mrb[3].mxu1  ;;  %1243 = vst [vmem:[#allocation6 + $0x38] sm:$0xf] %v4175_v49 }
 0x29e   : > { %v5358_v57 = vpack.c.bf16 %v1170_v51, %v1169_v44  ;;  %v1175_v58 = vmul.f32 %v1160_v46, %v1093_v55  ;;  %1237 = vst [vmem:[#allocation6 + $0x10] sm:$0xf] %v4169_v47  ;;  %v4172_v60 = vpack.c.bf16 %v1176_v56, %v1176_v56 }
 0x29f   : > { %v4477_v0 = vpack.c.bf16 %v1174_v53, %v1169_v44 }
 0x2a0   : > { %v5360_v61 = vpack.c.bf16 %v1175_v58, %v1174_v53  ;;  %1345 = vrot.lane.b32.xlu0 %v5358_v57, %s4816_s19  ;;  %1276 = vrot.lane.b32.xlu1 %v5358_v57, %s4817_s9  ;;  %1240 = vst [vmem:[#allocation6 + $0x24] sm:$0xf] %v4172_v60  ;;  %v4478_v1 = vpack.c.bf16 %v1175_v58, %v1170_v51  ;;  %v4422_v51 = vld [vmem:[#allocation14 + $0x4] ss:$8 sps:$4 sm:$0xff]  }
 0x2a1   : > { %4056 = vmatprep.mubr.msk.bf16.mxu1 %vm2150_vm11, %v4422_v51  ;;  %4059 = vmatprep.mubr.msk.bf16.mxu0 %vm2150_vm11, %v4422_v51 }
 0x2a2   : > { %v1097_v2 = vpop.f32.mrb[4].mxu1  ;;  %2221 = vmatprep.subr.bf16.mxu0 %v4478_v1 }
 0x2a3   : > { %v1179_v59 = vmul.f32 %v1164_v62, %v1097_v2  ;;  %v1099_v3 = vpop.f32.mrb[5].mxu1  ;;  %2222 = vmatpush1.bf16.msra.mxu0 %v4477_v0 }
 0x2a4   : > { %1412 = vrot.lane.b32.xlu0 %v5350_v19, %s4818_s25  ;;  %1343 = vrot.lane.b32.xlu1 %v5350_v19, %s4816_s19  ;;  %v1180_v4 = vmul.f32 %v1165_v63, %v1099_v3  ;;  %v1101_v5 = vpop.f32.mrb[6].mxu1  ;;  %v1264_v8 = vld [vmem:[#allocation6 + $0x38] sm:$0xf] }
 0x2a5   : > { %v1102_v6 = vpop.f32.mrb[7].mxu1  ;;  %v1333_v9 = vld [vmem:[#allocation6 + $0x38] sm:$0xf]  ;;  %v1258_v14 = vld [vmem:[#allocation6 + $0x10] sm:$0xf] }
 0x2a6   : > { %v5370_v7 = vpack.c.bf16 %v1180_v4, %v1179_v59  ;;  %v1402_v10 = vld [vmem:[#allocation6 + $0x38] sm:$0xf]  ;;  %v1327_v15 = vld [vmem:[#allocation6 + $0x10] sm:$0xf] }
 0x2a7   : > { %v1471_v11 = vld [vmem:[#allocation6 + $0x38] sm:$0xf]  ;;  %v1396_v16 = vld [vmem:[#allocation6 + $0x10] sm:$0xf]  ;;  %v1330_v23 = vld [vmem:[#allocation6 + $0x24] sm:$0xf] }
 0x2a8   : > { %1483 = vrot.lane.b32.xlu0 %v5358_v57, %s4819_s14  ;;  %1414 = vrot.lane.b32.xlu1 %v5358_v57, %s4818_s25  ;;  %v1540_v12 = vld [vmem:[#allocation6 + $0x38] sm:$0xf]  ;;  %v1465_v17 = vld [vmem:[#allocation6 + $0x10] sm:$0xf]  ;;  %v1261_v26 = vld [vmem:[#allocation6 + $0x24] sm:$0xf] }
 0x2a9   : > { %v1609_v13 = vld [vmem:[#allocation6 + $0x38] sm:$0xf]  ;;  %v1534_v18 = vld [vmem:[#allocation6 + $0x10] sm:$0xf]  ;;  %v1468_v29 = vld [vmem:[#allocation6 + $0x24] sm:$0xf] }
 0x2aa   : > { %v1603_v20 = vld [vmem:[#allocation6 + $0x10] sm:$0xf]  ;;  %v1399_v30 = vld [vmem:[#allocation6 + $0x24] sm:$0xf]  ;;  %v1678_v35 = vld [vmem:[#allocation6 + $0x38] sm:$0xf] }
 0x2ab   : > { %v1672_v28 = vld [vmem:[#allocation6 + $0x10] sm:$0xf]  ;;  %v1606_v39 = vld [vmem:[#allocation6 + $0x24] sm:$0xf]  ;;  %v1747_v47 = vld [vmem:[#allocation6 + $0x38] sm:$0xf] }
 0x2ac   : > { %1550 = vrot.lane.b32.xlu0 %v5350_v19, %s4820_s23  ;;  %1481 = vrot.lane.b32.xlu1 %v5350_v19, %s4819_s14  ;;  %v1537_v42 = vld [vmem:[#allocation6 + $0x24] sm:$0xf]  ;;  %v1741_v44 = vld [vmem:[#allocation6 + $0x10] sm:$0xf] }
 0x2ad   : > { %v1744_v52 = vld [vmem:[#allocation6 + $0x24] sm:$0xf] }
 0x2ae   : > { %v1675_v49 = vld [vmem:[#allocation6 + $0x24] sm:$0xf] }
 0x2b0   : > { %1621 = vrot.lane.b32.xlu0 %v5358_v57, %s4821_s17  ;;  %1552 = vrot.lane.b32.xlu1 %v5358_v57, %s4820_s23 }
 0x2b4   : > { %1688 = vrot.lane.b32.xlu0 %v5350_v19, %s4822_s28  ;;  %1619 = vrot.lane.b32.xlu1 %v5350_v19, %s4821_s17 }
 0x2b8   : > { %1280 = vrot.lane.b32.xlu1 %v5352_v22, %s4817_s9  ;;  %1282 = vrot.lane.b32.xlu0 %v5360_v61, %s4817_s9 }
 0x2bc   : > { %1351 = vrot.lane.b32.xlu1 %v5360_v61, %s4816_s19  ;;  %1349 = vrot.lane.b32.xlu0 %v5352_v22, %s4816_s19 }
 0x2c0   : > { %1418 = vrot.lane.b32.xlu1 %v5352_v22, %s4818_s25  ;;  %1420 = vrot.lane.b32.xlu0 %v5360_v61, %s4818_s25 }
 0x2c4   : > { %1489 = vrot.lane.b32.xlu1 %v5360_v61, %s4819_s14  ;;  %1487 = vrot.lane.b32.xlu0 %v5352_v22, %s4819_s14 }
 0x2c8   : > { %1556 = vrot.lane.b32.xlu1 %v5352_v22, %s4820_s23  ;;  %1558 = vrot.lane.b32.xlu0 %v5360_v61, %s4820_s23 }
 0x2cc   : > { %1627 = vrot.lane.b32.xlu1 %v5360_v61, %s4821_s17  ;;  %1625 = vrot.lane.b32.xlu0 %v5352_v22, %s4821_s17 }
 0x2d0   : > { %1286 = vrot.lane.b32.xlu0 %v5356_v34, %s4817_s9  ;;  %1288 = vrot.lane.b32.xlu1 %v5370_v7, %s4817_s9 }
 0x2d4   : > { %1357 = vrot.lane.b32.xlu0 %v5370_v7, %s4816_s19  ;;  %1355 = vrot.lane.b32.xlu1 %v5356_v34, %s4816_s19 }
 0x2d8   : > { %1424 = vrot.lane.b32.xlu0 %v5356_v34, %s4818_s25  ;;  %1426 = vrot.lane.b32.xlu1 %v5370_v7, %s4818_s25 }
 0x2dc   : > { %1495 = vrot.lane.b32.xlu0 %v5370_v7, %s4819_s14  ;;  %1493 = vrot.lane.b32.xlu1 %v5356_v34, %s4819_s14 }
 0x2e0   : > { %1562 = vrot.lane.b32.xlu0 %v5356_v34, %s4820_s23  ;;  %1564 = vrot.lane.b32.xlu1 %v5370_v7, %s4820_s23 }
 0x2e4   : > { %1633 = vrot.lane.b32.xlu0 %v5370_v7, %s4821_s17  ;;  %1631 = vrot.lane.b32.xlu1 %v5356_v34, %s4821_s17 }
 0x2e8   : > { %1290 = vrot.lane.b32.xlu0 %v1264_v8, %s4817_s9  ;;  %1359 = vrot.lane.b32.xlu1 %v1333_v9, %s4816_s19 }
 0x2ec   : > { %1428 = vrot.lane.b32.xlu0 %v1402_v10, %s4818_s25  ;;  %1497 = vrot.lane.b32.xlu1 %v1471_v11, %s4819_s14 }
 0x2f0   : > { %1566 = vrot.lane.b32.xlu0 %v1540_v12, %s4820_s23  ;;  %1635 = vrot.lane.b32.xlu1 %v1609_v13, %s4821_s17 }
 0x2f4   : > { %1278 = vrot.lane.b32.xlu0 %v1258_v14, %s4817_s9  ;;  %1347 = vrot.lane.b32.xlu1 %v1327_v15, %s4816_s19 }
 0x2f8   : > { %1416 = vrot.lane.b32.xlu0 %v1396_v16, %s4818_s25  ;;  %1485 = vrot.lane.b32.xlu1 %v1465_v17, %s4819_s14 }
 0x2fc   : > { %1554 = vrot.lane.b32.xlu0 %v1534_v18, %s4820_s23  ;;  %1623 = vrot.lane.b32.xlu1 %v1603_v20, %s4821_s17 }
 0x300   : > { %1353 = vrot.lane.b32.xlu0 %v1330_v23, %s4816_s19  ;;  %1284 = vrot.lane.b32.xlu1 %v1261_v26, %s4817_s9  ;;  %v1275_v27 = vpop.permute.xlu0 %1274 }
 0x301   : > { %v1292_v32 = vrot.slane %v1275_v27, 4 }
 0x304   : > { %1692 = vrot.lane.b32.xlu0 %v1672_v28, %s4822_s28  ;;  %1690 = vrot.lane.b32.xlu1 %v5358_v57, %s4822_s28 }
 0x308   : > { %1696 = vrot.lane.b32.xlu0 %v5360_v61, %s4822_s28  ;;  %1694 = vrot.lane.b32.xlu1 %v5352_v22, %s4822_s28 }
 0x30c   : > { %1491 = vrot.lane.b32.xlu0 %v1468_v29, %s4819_s14  ;;  %1422 = vrot.lane.b32.xlu1 %v1399_v30, %s4818_s25 }
 0x310   : > { %1700 = vrot.lane.b32.xlu0 %v5356_v34, %s4822_s28  ;;  %1702 = vrot.lane.b32.xlu1 %v5370_v7, %s4822_s28 }
 0x312   : > { %v5463_v31 = vpop.permute.xlu0 %1345  ;;  %v5465_v24 = vpop.permute.xlu1 %1276 }
 0x313   : > { %v1293_v33 = vrot.slane %v5465_v24, 4  ;;  %v1362_v6 = vrot.slane %v5463_v31, 4 }
 0x314   : > { %1704 = vrot.lane.b32.xlu0 %v1678_v35, %s4822_s28  ;;  %1757 = vrot.lane.b32.xlu1 %v5350_v19, %s4823_s29 }
 0x315   : > { %v1301_v36 = vsel %vm543_vm0, %v1292_v32, %v1293_v33 }
 0x316   : > { %v5474_v38 = vpop.permute.xlu0 %1412  ;;  %v5476_v40 = vpop.permute.xlu1 %1343  ;;  %v1302_v41 = vsel %vm545_vm2, %v1275_v27, %v1301_v36 }
 0x317   : > { %v4003_v43 = vcombine.low %v5356_v34, %v1302_v41  ;;  %v4004_v37 = vcombine.high %v5356_v34, %v1302_v41  ;;  %v1361_v5 = vrot.slane %v5476_v40, 4  ;;  %v1430_v17 = vrot.slane %v5474_v38, 4 }
 0x318   : > { %1629 = vrot.lane.b32.xlu0 %v1606_v39, %s4821_s17  ;;  %1560 = vrot.lane.b32.xlu1 %v1537_v42, %s4820_s23 }
 0x319   : > { %2172 = vmatprep.subr.bf16.mxu1 %v4004_v37  ;;  %v1370_v15 = vsel %vm543_vm0, %v1361_v5, %v1362_v6 }
 0x31a   : > { %v5483_v19 = vpop.permute.xlu0 %1483  ;;  %2173 = vmatpush1.bf16.msra.mxu1 %v4003_v43  ;;  %v5485_v25 = vpop.permute.xlu1 %1414  ;;  %v1371_v35 = vsel %vm592_vm1, %v5476_v40, %v1370_v15 }
 0x31b   : > { %v1431_v14 = vrot.slane %v5485_v25, 4  ;;  %v1500_v15 = vrot.slane %v5483_v19, 4 }
 0x31c   : > { %1759 = vrot.lane.b32.xlu0 %v5358_v57, %s4823_s29  ;;  %1761 = vrot.lane.b32.xlu1 %v1741_v44, %s4823_s29 }
 0x31d   : > { %v1439_v36 = vsel %vm543_vm0, %v1430_v17, %v1431_v14 }
 0x31e   : > { %v5490_v45 = vpop.permute.xlu0 %1550  ;;  %v5492_v46 = vpop.permute.xlu1 %1481 }
 0x320   : > { %1763 = vrot.lane.b32.xlu0 %v5352_v22, %s4823_s29  ;;  %1765 = vrot.lane.b32.xlu1 %v5360_v61, %s4823_s29 }
 0x322   : > { %v5498_v48 = vpop.permute.xlu0 %1621  ;;  %v5500_v50 = vpop.permute.xlu1 %1552 }
 0x324   : > { %1767 = vrot.lane.b32.xlu0 %v1744_v52, %s4823_s29  ;;  %1698 = vrot.lane.b32.xlu1 %v1675_v49, %s4822_s28 }
 0x326   : > { %v5506_v22 = vpop.permute.xlu0 %1688  ;;  %v5508_v54 = vpop.permute.xlu1 %1619 }
 0x328   : > { %1771 = vrot.lane.b32.xlu0 %v5370_v7, %s4823_s29  ;;  %1769 = vrot.lane.b32.xlu1 %v5356_v34, %s4823_s29 }
 0x32a   : > { %v1281_v53 = vpop.permute.xlu1 %1280  ;;  %v5514_v55 = vpop.permute.xlu0 %1282 }
 0x32b   : > { %v1295_v2 = vrot.slane %v1281_v53, 4  ;;  %v1296_v59 = vrot.slane %v5514_v55, 4 }
 0x32c   : > { %1773 = vrot.lane.b32.xlu1 %v1747_v47, %s4823_s29 }
 0x32d   : > { %v1305_v13 = vsel %vm543_vm0, %v1295_v2, %v1296_v59  ;;  %v1499_v2 = vrot.slane %v5492_v46, 4 }
 0x32e   : > { %v5517_v56 = vpop.permute.xlu1 %1351  ;;  %v1350_v57 = vpop.permute.xlu0 %1349  ;;  %v1306_v26 = vsel %vm545_vm2, %v1281_v53, %v1305_v13 }
 0x32f   : > { %v1365_v3 = vrot.slane %v5517_v56, 4  ;;  %v1364_v4 = vrot.slane %v1350_v57, 4 }
 0x331   : > { %v1374_v10 = vsel %vm543_vm0, %v1364_v4, %v1365_v3 }
 0x332   : > { %v5519_v58 = vpop.permute.xlu1 %1418  ;;  %v5521_v60 = vpop.permute.xlu0 %1420  ;;  %v1375_v18 = vsel %vm592_vm1, %v1350_v57, %v1374_v10  ;;  %v1440_v57 = vsel %vm640_vm4, %v5474_v38, %v1439_v36  ;;  %v1568_v36 = vrot.slane %v5490_v45, 4 }
 0x333   : > { %v1433_v41 = vrot.slane %v5519_v58, 4  ;;  %v1434_v39 = vrot.slane %v5521_v60, 4  ;;  %v4012_v43 = vcombine.high %v1371_v35, %v1375_v18  ;;  %v4011_v47 = vcombine.low %v1371_v35, %v1375_v18 }
 0x335   : > { %v1443_v5 = vsel %vm543_vm0, %v1433_v41, %v1434_v39 }
 0x336   : > { %v5523_v61 = vpop.permute.xlu1 %1489  ;;  %v5525_v62 = vpop.permute.xlu0 %1487 }
 0x337   : > { %v1503_v40 = vrot.slane %v5523_v61, 4  ;;  %v1502_v52 = vrot.slane %v5525_v62, 4 }
 0x339   : > { %v1512_v38 = vsel %vm543_vm0, %v1502_v52, %v1503_v40 }
 0x33a   : > { %v5527_v63 = vpop.permute.xlu1 %1556  ;;  %v5529_v34 = vpop.permute.xlu0 %1558 }
 0x33e   : > { %v5531_v0 = vpop.permute.xlu1 %1627  ;;  %v5533_v1 = vpop.permute.xlu0 %1625 }
 0x342   : > { %v1287_v8 = vpop.permute.xlu0 %1286  ;;  %v5539_v9 = vpop.permute.xlu1 %1288 }
 0x343   : > { %v1298_v11 = vrot.slane %v1287_v8, 4  ;;  %v1299_v12 = vrot.slane %v5539_v9, 4 }
 0x345   : > { %v1309_v16 = vsel %vm543_vm0, %v1298_v11, %v1299_v12 }
 0x346   : > { %v5557_v20 = vpop.permute.xlu0 %1357  ;;  %v1356_v23 = vpop.permute.xlu1 %1355  ;;  %v1310_v28 = vsel %vm545_vm2, %v1287_v8, %v1309_v16 }
 0x347   : > { %v1368_v29 = vrot.slane %v5557_v20, 4  ;;  %v1367_v30 = vrot.slane %v1356_v23, 4  ;;  %v4007_v27 = vcombine.low %v1306_v26, %v1310_v28  ;;  %v4008_v32 = vcombine.high %v1306_v26, %v1310_v28 }
 0x348   : > { %v1508_v26 = vsel %vm543_vm0, %v1499_v2, %v1500_v15  ;;  %v1569_v28 = vrot.slane %v5500_v50, 4 }
 0x349   : > { %v1378_v42 = vsel %vm543_vm0, %v1367_v30, %v1368_v29  ;;  %2174 = vmatprep.subr.bf16.mxu1 %v4008_v32 }
 0x34a   : > { %v1379_v37 = vsel %vm592_vm1, %v1356_v23, %v1378_v42  ;;  %v1425_v44 = vpop.permute.xlu0 %1424  ;;  %2175 = vmatpush1.bf16.msra.mxu1 %v4007_v27  ;;  %v5573_v51 = vpop.permute.xlu1 %1426  ;;  %v1444_v23 = vsel %vm640_vm4, %v5519_v58, %v1443_v5  ;;  %v1513_v27 = vsel %vm687_vm3, %v5525_v62, %v1512_v38  ;;  %v1571_v62 = vrot.slane %v5527_v63, 4 }
 0x34b   : > { %v1436_v49 = vrot.slane %v1425_v44, 4  ;;  %v1437_v53 = vrot.slane %v5573_v51, 4  ;;  %2176 = vmatprep.subr.bf16.mxu1 %v4012_v43  ;;  %v4016_v4 = vcombine.high %v1379_v37, %v1440_v57  ;;  %v4015_v18 = vcombine.low %v1379_v37, %v1440_v57 }
 0x34c   : > { %v1509_v43 = vsel %vm687_vm3, %v5492_v46, %v1508_v26  ;;  %v1577_v52 = vsel %vm543_vm0, %v1568_v36, %v1569_v28  ;;  %v1640_v46 = vrot.slane %v5533_v1, 4 }
 0x34d   : > { %v1447_v8 = vsel %vm543_vm0, %v1436_v49, %v1437_v53  ;;  %v4024_v49 = vcombine.high %v1509_v43, %v1513_v27 }
 0x34e   : > { %v5587_v10 = vpop.permute.xlu0 %1495  ;;  %2177 = vmatpush1.bf16.msra.mxu1 %v4011_v47  ;;  %v1494_v11 = vpop.permute.xlu1 %1493  ;;  %v1448_v13 = vsel %vm640_vm4, %v1425_v44, %v1447_v8  ;;  %v1572_v44 = vrot.slane %v5529_v34, 4  ;;  %v4023_v8 = vcombine.low %v1509_v43, %v1513_v27 }
 0x34f   : > { %v1506_v16 = vrot.slane %v5587_v10, 4  ;;  %v1505_v17 = vrot.slane %v1494_v11, 4  ;;  %2178 = vmatprep.subr.bf16.mxu1 %v4016_v4  ;;  %v4020_v30 = vcombine.high %v1444_v23, %v1448_v13  ;;  %v4019_v37 = vcombine.low %v1444_v23, %v1448_v13 }
 0x350   : > { %v1641_v4 = vrot.slane %v5531_v0, 4  ;;  %v1578_v13 = vsel %vm735_vm5, %v5490_v45, %v1577_v52 }
 0x351   : > { %v1516_v58 = vsel %vm543_vm0, %v1505_v17, %v1506_v16  ;;  %v1581_v17 = vsel %vm543_vm0, %v1571_v62, %v1572_v44 }
 0x352   : > { %v1563_v32 = vpop.permute.xlu0 %1562  ;;  %2179 = vmatpush1.bf16.msra.mxu1 %v4015_v18  ;;  %v5603_v35 = vpop.permute.xlu1 %1564  ;;  %v1517_v47 = vsel %vm687_vm3, %v1494_v11, %v1516_v58  ;;  %v1637_v11 = vrot.slane %v5508_v54, 4  ;;  %v1650_v27 = vsel %vm543_vm0, %v1640_v46, %v1641_v4  ;;  %v1582_v36 = vsel %vm735_vm5, %v5527_v63, %v1581_v17 }
 0x353   : > { %v1574_v41 = vrot.slane %v1563_v32, 4  ;;  %v1575_v42 = vrot.slane %v5603_v35, 4  ;;  %2180 = vmatprep.subr.bf16.mxu1 %v4020_v30  ;;  %v4028_v38 = vcombine.high %v1517_v47, %v1578_v13  ;;  %v1638_v30 = vrot.slane %v5498_v48, 4 }
 0x354   : > { %v4027_v45 = vcombine.low %v1517_v47, %v1578_v13  ;;  %v1651_v43 = vsel %vm782_vm6, %v5533_v1, %v1650_v27 }
 0x355   : > { %v1585_v5 = vsel %vm543_vm0, %v1574_v41, %v1575_v42  ;;  %v1646_v58 = vsel %vm543_vm0, %v1637_v11, %v1638_v30 }
 0x356   : > { %v5618_v57 = vpop.permute.xlu0 %1633  ;;  %2181 = vmatpush1.bf16.msra.mxu1 %v4019_v37  ;;  %v5620_v2 = vpop.permute.xlu1 %1631  ;;  %v1586_v26 = vsel %vm735_vm5, %v1563_v32, %v1585_v5  ;;  %v1647_v62 = vsel %vm782_vm6, %v5508_v54, %v1646_v58 }
 0x357   : > { %2182 = vmatprep.subr.bf16.mxu1 %v4024_v49  ;;  %v4032_v41 = vcombine.high %v1582_v36, %v1586_v26  ;;  %v4031_v52 = vcombine.low %v1582_v36, %v1586_v26  ;;  %v4036_v49 = vcombine.high %v1647_v62, %v1651_v43  ;;  %v4035_v46 = vcombine.low %v1647_v62, %v1651_v43 }
 0x35a   : > { %v1291_v18 = vpop.permute.xlu0 %1290  ;;  %2183 = vmatpush1.bf16.msra.mxu1 %v4023_v8  ;;  %v5633_v23 = vpop.permute.xlu1 %1359 }
 0x35b   : > { %2184 = vmatprep.subr.bf16.mxu1 %v4028_v38  ;;  %v1300_v36 = vrot.slane %v1291_v18, 4 }
 0x35d   : > { %v1311_v43 = vsel %vm543_vm0, %v1299_v12, %v1300_v36 }
 0x35e   : > { %v5647_v32 = vpop.permute.xlu0 %1428  ;;  %2185 = vmatpush1.bf16.msra.mxu1 %v4027_v45  ;;  %v5649_v37 = vpop.permute.xlu1 %1497 }
 0x35f   : > { %2186 = vmatprep.subr.bf16.mxu1 %v4032_v41  ;;  %v1438_v36 = vrot.slane %v5647_v32, 4 }
 0x362   : > { %v5653_v63 = vpop.permute.xlu0 %1566  ;;  %2187 = vmatpush1.bf16.msra.mxu1 %v4031_v52  ;;  %v5655_v47 = vpop.permute.xlu1 %1635 }
 0x363   : > { %2188 = vmatprep.subr.bf16.mxu1 %v4036_v49  ;;  %v1644_v49 = vrot.slane %v5618_v57, 4 }
 0x366   : > { %v1279_v5 = vpop.permute.xlu0 %1278  ;;  %2189 = vmatpush1.bf16.msra.mxu1 %v4035_v46  ;;  %v1348_v1 = vpop.permute.xlu1 %1347  ;;  %v1369_v46 = vrot.slane %v5633_v23, 4 }
 0x367   : > { %v1294_v8 = vrot.slane %v1279_v5, 4  ;;  %v1363_v58 = vrot.slane %v1348_v1, 4  ;;  %v1706_v1 = vrot.slane %v5506_v22, 4 }
 0x369   : > { %v1303_v13 = vsel %vm543_vm0, %v1293_v33, %v1294_v8  ;;  %v1372_v18 = vsel %vm543_vm0, %v1362_v6, %v1363_v58  ;;  %v1312_v6 = vsel %vm545_vm2, %v5539_v9, %v1311_v43  ;;  %v1380_v9 = vsel %vm543_vm0, %v1368_v29, %v1369_v46 }
 0x36a   : > { %v1417_v11 = vpop.permute.xlu0 %1416  ;;  %v5660_v38 = vpop.permute.xlu1 %1485  ;;  %v1304_v54 = vsel %vm545_vm2, %v5465_v24, %v1303_v13  ;;  %v1381_v32 = vsel %vm592_vm1, %v5557_v20, %v1380_v9  ;;  %v1507_v20 = vrot.slane %v5649_v37, 4 }
 0x36b   : > { %v4005_v17 = vcombine.low %v5370_v7, %v1304_v54  ;;  %v4006_v26 = vcombine.high %v5370_v7, %v1304_v54  ;;  %v1432_v62 = vrot.slane %v1417_v11, 4  ;;  %v1643_v7 = vrot.slane %v5620_v2, 4 }
 0x36d   : > { %2223 = vmatprep.subr.bf16.mxu0 %v4006_v26  ;;  %v1654_v26 = vsel %vm543_vm0, %v1643_v7, %v1644_v49 }
 0x36e   : > { %v5666_v27 = vpop.permute.xlu0 %1554  ;;  %v5668_v45 = vpop.permute.xlu1 %1623  ;;  %2224 = vmatpush1.bf16.msra.mxu0 %v4005_v17  ;;  %v1655_v29 = vsel %vm782_vm6, %v5620_v2, %v1654_v26 }
 0x36f   : > { %v1570_v46 = vrot.slane %v5666_v27, 4 }
 0x371   : > { %v1579_v37 = vsel %vm543_vm0, %v1569_v28, %v1570_v46 }
 0x372   : > { %v1354_v41 = vpop.permute.xlu0 %1353  ;;  %v1285_v33 = vpop.permute.xlu1 %1284 }
 0x373   : > { %v1366_v24 = vrot.slane %v1354_v41, 4  ;;  %v1297_v52 = vrot.slane %v1285_v33, 4 }
 0x375   : > { %v1376_v5 = vsel %vm543_vm0, %v1365_v3, %v1366_v24  ;;  %v1307_v12 = vsel %vm543_vm0, %v1296_v59, %v1297_v52  ;;  %v1441_v3 = vsel %vm543_vm0, %v1431_v14, %v1432_v62  ;;  %v1501_v52 = vrot.slane %v5660_v38, 4 }
 0x376   : > { %v5686_v8 = vpop.permute.xlu0 %1692  ;;  %v5688_v13 = vpop.permute.xlu1 %1690  ;;  %v1308_v23 = vsel %vm545_vm2, %v5514_v55, %v1307_v12  ;;  %v1377_v11 = vsel %vm592_vm1, %v5517_v56, %v1376_v5  ;;  %v1373_v55 = vsel %vm592_vm1, %v5463_v31, %v1372_v18  ;;  %v1442_v31 = vsel %vm640_vm4, %v5485_v25, %v1441_v3 }
 0x377   : > { %v1707_v59 = vrot.slane %v5688_v13, 4  ;;  %v4009_v54 = vcombine.low %v1308_v23, %v1312_v6  ;;  %v4010_v17 = vcombine.high %v1308_v23, %v1312_v6  ;;  %v4014_v14 = vcombine.high %v1373_v55, %v1377_v11 }
 0x378   : > { %v4013_v43 = vcombine.low %v1373_v55, %v1377_v11  ;;  %v4018_v7 = vcombine.high %v1381_v32, %v1442_v31  ;;  %v4017_v38 = vcombine.low %v1381_v32, %v1442_v31  ;;  %v1518_v55 = vsel %vm543_vm0, %v1506_v16, %v1507_v20 }
 0x379   : > { %v1715_v56 = vsel %vm543_vm0, %v1706_v1, %v1707_v59  ;;  %2225 = vmatprep.subr.bf16.mxu0 %v4010_v17 }
 0x37a   : > { %v5712_v58 = vpop.permute.xlu0 %1696  ;;  %v1695_v41 = vpop.permute.xlu1 %1694  ;;  %2226 = vmatpush1.bf16.msra.mxu0 %v4009_v54  ;;  %v1716_v33 = vsel %vm830_vm7, %v5506_v22, %v1715_v56  ;;  %v1449_v22 = vsel %vm543_vm0, %v1437_v53, %v1438_v36  ;;  %v1510_v53 = vsel %vm543_vm0, %v1500_v15, %v1501_v52 }
 0x37b   : > { %2227 = vmatprep.subr.bf16.mxu0 %v4014_v14  ;;  %v4039_v62 = vcombine.low %v1655_v29, %v1716_v33  ;;  %v4040_v24 = vcombine.high %v1655_v29, %v1716_v33  ;;  %v1710_v25 = vrot.slane %v5712_v58, 4  ;;  %v1709_v18 = vrot.slane %v1695_v41, 4 }
 0x37c   : > { %v1450_v6 = vsel %vm640_vm4, %v5573_v51, %v1449_v22  ;;  %v1511_v28 = vsel %vm687_vm3, %v5483_v19, %v1510_v53  ;;  %v1580_v19 = vsel %vm735_vm5, %v5500_v50, %v1579_v37  ;;  %v1576_v33 = vrot.slane %v5653_v63, 4 }
 0x37d   : > { %2190 = vmatprep.subr.bf16.mxu1 %v4040_v24  ;;  %v1719_v11 = vsel %vm543_vm0, %v1709_v18, %v1710_v25  ;;  %v1708_v63 = vrot.slane %v5686_v8, 4 }
 0x37e   : > { %v1492_v2 = vpop.permute.xlu0 %1491  ;;  %v1423_v5 = vpop.permute.xlu1 %1422  ;;  %2228 = vmatpush1.bf16.msra.mxu0 %v4013_v43  ;;  %2191 = vmatpush1.bf16.msra.mxu1 %v4039_v62  ;;  %v1519_v43 = vsel %vm687_vm3, %v5587_v10, %v1518_v55  ;;  %v1639_v62 = vrot.slane %v5668_v45, 4  ;;  %v1587_v50 = vsel %vm543_vm0, %v1575_v42, %v1576_v33  ;;  %v1645_v10 = vrot.slane %v5655_v47, 4 }
 0x37f   : > { %v1504_v12 = vrot.slane %v1492_v2, 4  ;;  %v1435_v1 = vrot.slane %v1423_v5, 4  ;;  %2229 = vmatprep.subr.bf16.mxu0 %v4018_v7  ;;  %v4029_v22 = vcombine.low %v1519_v43, %v1580_v19  ;;  %v1588_v47 = vsel %vm735_vm5, %v5603_v35, %v1587_v50 }
 0x380   : > { %v1648_v45 = vsel %vm543_vm0, %v1638_v30, %v1639_v62 }
 0x381   : > { %v1514_v27 = vsel %vm543_vm0, %v1503_v40, %v1504_v12  ;;  %v1445_v23 = vsel %vm543_vm0, %v1434_v39, %v1435_v1 }
 0x382   : > { %v1701_v15 = vpop.permute.xlu0 %1700  ;;  %v5746_v3 = vpop.permute.xlu1 %1702  ;;  %2230 = vmatpush1.bf16.msra.mxu0 %v4017_v38  ;;  %v1446_v40 = vsel %vm640_vm4, %v5521_v60, %v1445_v23  ;;  %v1515_v39 = vsel %vm687_vm3, %v5523_v61, %v1514_v27  ;;  %v1720_v61 = vsel %vm830_vm7, %v1695_v41, %v1719_v11  ;;  %v4030_v41 = vcombine.high %v1519_v43, %v1580_v19 }
 0x383   : > { %v1712_v54 = vrot.slane %v1701_v15, 4  ;;  %v1713_v51 = vrot.slane %v5746_v3, 4  ;;  %v4021_v17 = vcombine.low %v1446_v40, %v1450_v6  ;;  %v4022_v26 = vcombine.high %v1446_v40, %v1450_v6 }
 0x384   : > { %v4026_v60 = vcombine.high %v1511_v28, %v1515_v39  ;;  %v4025_v29 = vcombine.low %v1511_v28, %v1515_v39 }
 0x385   : > { %v1723_v9 = vsel %vm543_vm0, %v1712_v54, %v1713_v51  ;;  %2231 = vmatprep.subr.bf16.mxu0 %v4022_v26 }
 0x386   : > { %v1705_v56 = vpop.permute.xlu0 %1704  ;;  %v1758_v14 = vpop.permute.xlu1 %1757  ;;  %2232 = vmatpush1.bf16.msra.mxu0 %v4021_v17  ;;  %v1724_v36 = vsel %vm830_vm7, %v1701_v15, %v1723_v9 }
 0x387   : > { %2233 = vmatprep.subr.bf16.mxu0 %v4026_v60  ;;  %v4043_v16 = vcombine.low %v1720_v61, %v1724_v36  ;;  %v4044_v31 = vcombine.high %v1720_v61, %v1724_v36  ;;  %v1775_v20 = vrot.slane %v1758_v14, 4  ;;  %v1714_v38 = vrot.slane %v1705_v56, 4 }
 0x389   : > { %2192 = vmatprep.subr.bf16.mxu1 %v4044_v31 }
 0x38a   : > { %v1630_v24 = vpop.permute.xlu0 %1629  ;;  %2193 = vmatpush1.bf16.msra.mxu1 %v4043_v16  ;;  %v1561_v32 = vpop.permute.xlu1 %1560  ;;  %2234 = vmatpush1.bf16.msra.mxu0 %v4025_v29 }
 0x38b   : > { %v1642_v52 = vrot.slane %v1630_v24, 4  ;;  %v1573_v7 = vrot.slane %v1561_v32, 4  ;;  %2235 = vmatprep.subr.bf16.mxu0 %v4030_v41 }
 0x38d   : > { %v1652_v46 = vsel %vm543_vm0, %v1641_v4, %v1642_v52  ;;  %v1583_v42 = vsel %vm543_vm0, %v1572_v44, %v1573_v7  ;;  %v1717_v4 = vsel %vm543_vm0, %v1707_v59, %v1708_v63  ;;  %v1649_v44 = vsel %vm782_vm6, %v5498_v48, %v1648_v45 }
 0x38e   : > { %v1760_v18 = vpop.permute.xlu0 %1759  ;;  %v1762_v8 = vpop.permute.xlu1 %1761  ;;  %2236 = vmatpush1.bf16.msra.mxu0 %v4029_v22  ;;  %v1584_v2 = vsel %vm735_vm5, %v5529_v34, %v1583_v42  ;;  %v1653_v30 = vsel %vm782_vm6, %v5531_v0, %v1652_v46  ;;  %v1656_v34 = vsel %vm543_vm0, %v1644_v49, %v1645_v10  ;;  %v1718_v0 = vsel %vm830_vm7, %v5688_v13, %v1717_v4  ;;  %v4420_v10 = vld [vmem:[#allocation14] ss:$8 sps:$4 sm:$0xff]  }
 0x38f   : > { %v1776_v5 = vrot.slane %v1760_v18, 4  ;;  %v4033_v12 = vcombine.low %v1584_v2, %v1588_v47  ;;  %v4034_v1 = vcombine.high %v1584_v2, %v1588_v47  ;;  %v4038_v35 = vcombine.high %v1649_v44, %v1653_v30  ;;  %v2272_v47 = vld [vmem:[#allocation20] sm:$0xff] }
 0x390   : > { %v1657_v48 = vsel %vm782_vm6, %v5618_v57, %v1656_v34  ;;  %v4037_v37 = vcombine.low %v1649_v44, %v1653_v30  ;;  %v1777_v11 = vrot.slane %v1762_v8, 4  ;;  %v1725_v13 = vsel %vm543_vm0, %v1713_v51, %v1714_v38  ;;  %v2273_v30 = vld [vmem:[#allocation20 + $0x8] sm:$0xff] }
 0x391   : > { %2237 = vmatprep.subr.bf16.mxu0 %v4034_v1  ;;  %v1784_v59 = vsel %vm543_vm0, %v1775_v20, %v1776_v5  ;;  %v4042_v49 = vcombine.high %v1657_v48, %v1718_v0  ;;  %v4041_v9 = vcombine.low %v1657_v48, %v1718_v0  ;;  %v1726_v19 = vsel %vm830_vm7, %v5746_v3, %v1725_v13  ;;  %v1810_v3 = vld [vmem:[#allocation14 + $0x10] sm:$0xff]  ;;  %v2277_v44 = vld [vmem:[#allocation20 + $0x28] sm:$0xff] }
 0x392   : > { %v1764_v53 = vpop.permute.xlu0 %1763  ;;  %v1766_v27 = vpop.permute.xlu1 %1765  ;;  %2238 = vmatpush1.bf16.msra.mxu0 %v4033_v12  ;;  %v1785_v54 = vsel %vm877_vm8, %v1758_v14, %v1784_v59  ;;  %v1786_v60 = vsel %vm543_vm0, %v1776_v5, %v1777_v11  ;;  %v3998_v46 = vcombine.high %v1810_v3, %v1810_v3  ;;  %v3997_v2 = vcombine.low %v1810_v3, %v1810_v3  ;;  %v2276_v5 = vld [vmem:[#allocation20 + $0x20] sm:$0xff] }
 0x393   : > { %v1778_v23 = vrot.slane %v1764_v53, 4  ;;  %v1779_v6 = vrot.slane %v1766_v27, 4  ;;  %2239 = vmatprep.subr.bf16.mxu0 %v4038_v35  ;;  %v1787_v62 = vsel %vm877_vm8, %v1760_v18, %v1786_v60  ;;  %v2274_v35 = vld [vmem:[#allocation20 + $0x10] sm:$0xff] }
 0x394   : > { %v3197_v3 = vld [vmem:[%s5177_s13 + $0x10] sm:$0xff] }
 0x395   : > { %v1788_v15 = vsel %vm543_vm0, %v1778_v23, %v1779_v6 }
 0x396   : > { %v1768_v40 = vpop.permute.xlu0 %1767  ;;  %v1699_v39 = vpop.permute.xlu1 %1698  ;;  %2240 = vmatpush1.bf16.msra.mxu0 %v4037_v37  ;;  %v1789_v17 = vsel %vm877_vm8, %v1764_v53, %v1788_v15  ;;  %v2275_v53 = vld [vmem:[#allocation20 + $0x18] sm:$0xff] }
 0x397   : > { %v1780_v26 = vrot.slane %v1768_v40, 4  ;;  %v1711_v28 = vrot.slane %v1699_v39, 4  ;;  %2241 = vmatprep.subr.bf16.mxu0 %v4042_v49  ;;  %v4047_v57 = vcombine.low %v1785_v54, %v1789_v17  ;;  %v4048_v55 = vcombine.high %v1785_v54, %v1789_v17  ;;  %v2279_v49 = vld [vmem:[#allocation20 + $0x38] sm:$0xff]  ;;  %v2280_v40 = vld [vmem:[#allocation20 + $0x40] sm:$0xff]  ;;  %v2281_v17 = vld [vmem:[#allocation20 + $0x48] sm:$0xff] }
 0x399   : > { %v1790_v61 = vsel %vm543_vm0, %v1779_v6, %v1780_v26  ;;  %v1721_v51 = vsel %vm543_vm0, %v1710_v25, %v1711_v28  ;;  %2194 = vmatprep.subr.bf16.mxu1 %v4048_v55  ;;  %v2278_v6 = vld [vmem:[#allocation20 + $0x30] sm:$0xff] }
 0x39a   : > { %v1772_v56 = vpop.permute.xlu0 %1771  ;;  %2195 = vmatpush1.bf16.msra.mxu1 %v4047_v57  ;;  %v1770_v14 = vpop.permute.xlu1 %1769  ;;  %2242 = vmatpush1.bf16.msra.mxu0 %v4041_v9  ;;  %v1722_v36 = vsel %vm830_vm7, %v5712_v58, %v1721_v51  ;;  %v1791_v33 = vsel %vm877_vm8, %v1766_v27, %v1790_v61 }
 0x39b   : > { %v1782_v16 = vrot.slane %v1772_v56, 4  ;;  %v1781_v31 = vrot.slane %v1770_v14, 4  ;;  %v4045_v29 = vcombine.low %v1722_v36, %v1726_v19  ;;  %v4046_v43 = vcombine.high %v1722_v36, %v1726_v19  ;;  %v2283_v19 = vld [vmem:[#allocation20 + $0x58] sm:$0xff] }
 0x39c   : > { %v4050_v41 = vcombine.high %v1787_v62, %v1791_v33  ;;  %v4049_v52 = vcombine.low %v1787_v62, %v1791_v33 }
 0x39d   : > { %v1792_v25 = vsel %vm543_vm0, %v1781_v31, %v1782_v16  ;;  %2243 = vmatprep.subr.bf16.mxu0 %v4046_v43 }
 0x39e   : > { %v1793_v24 = vsel %vm877_vm8, %v1770_v14, %v1792_v25  ;;  %v1774_v32 = vpop.permute.xlu1 %1773  ;;  %2244 = vmatpush1.bf16.msra.mxu0 %v4045_v29  ;;  %v2282_v14 = vld [vmem:[#allocation20 + $0x50] sm:$0xff] }
 0x39f   : > { %v4051_v58 = vcombine.low %v1793_v24, %v1793_v24  ;;  %v4052_v50 = vcombine.high %v1793_v24, %v1793_v24  ;;  %v1783_v63 = vrot.slane %v1774_v32, 4  ;;  %2245 = vmatprep.subr.bf16.mxu0 %v4050_v41 }
 0x3a1   : > { %v1794_v7 = vsel %vm543_vm0, %v1782_v16, %v1783_v63  ;;  %4055 = vmatprep.subr.msk.bf16.mxu1 %vm543_vm0, %v4052_v50  ;;  %v2159_v22 = vsel %vm543_vm0, %v4051_v58, 0 }
 0x3a2   : > { %v1795_v45 = vsel %vm877_vm8, %v1772_v56, %v1794_v7  ;;  %2197 = vmatpush1.bf16.msra.mxu1 %v2159_v22  ;;  %2246 = vmatpush1.bf16.msra.mxu0 %v4049_v52  ;;  %v3198_v52 = vld [vmem:[%s5177_s13 + $0x18] sm:$0xff]  ;;  %v3195_v22 = vld [vmem:[%s5177_s13] sm:$0xff] }
 0x3a3   : > { %v4054_v42 = vcombine.high %v1795_v45, %v1795_v45  ;;  %v4053_v18 = vcombine.low %v1795_v45, %v1795_v45  ;;  %v4185_v7 = vpack.c.bf16 %v3198_v52, %v3197_v3 }
 0x3a5   : > { %2203 = vmatmul.mubr.bf16.vlgmr.msra.gmra.mrb[8].mxu1 %v4420_v10  ;;  %4058 = vmatprep.subr.msk.bf16.mxu0 %vm543_vm0, %v4054_v42  ;;  %v2165_v8 = vsel %vm543_vm0, %v4053_v18, 0 }
 0x3a6   : > { %2248 = vmatpush1.bf16.msra.mxu0 %v2165_v8  ;;  %4057 = vmatprep.mubr.msk.bf16.mxu1 %vm2150_vm11, %v3998_v46 }
 0x3a7   : > { %3116 = vmatprep.subr.bf16.mxu0 %v4824_v21 }
 0x3a9   : > { %2254 = vmatmul.mubr.bf16.vlgmr.msra.gmra.mrb[12].mxu0 %v4420_v10  ;;  %v3196_v10 = vld [vmem:[%s5177_s13 + $0x8] sm:$0xff] }
 0x3aa   : > { %4060 = vmatprep.mubr.msk.bf16.mxu0 %vm2150_vm11, %v3998_v46  ;;  %v5909_v45 = vpack.c.bf16 %v3196_v10, %v3195_v22  ;;  %v4442_v46 = vld [vmem:[#allocation16 + $0x4] ss:$8 sps:$4 sm:$0xff]  }
 0x3ad   : > { %2213 = vmatmul.mubr.bf16.gmra.mrb[12].mxu1 %v3997_v2 }
 0x3ae   : > { %4114 = vmatprep.mubr.msk.bf16.mxu1 %vm2150_vm11, %v4442_v46 }
 0x3b1   : > { %2264 = vmatmul.mubr.bf16.gmra.mrb[16].mxu0 %v3997_v2 }
 0x3b2   : > { %4116 = vmatprep.mubr.msk.bf16.mxu0 %vm2150_vm11, %v4442_v46 }
 0x478   : > { %v2204_v4 = vpop.f32.mrb[8].mxu1 }
 0x479   : > { %v2284_v12 = vmul.f32 %v2272_v47, %v2204_v4  ;;  %v2206_v1 = vpop.f32.mrb[9].mxu1 }
 0x47a   : > { %v2285_v34 = vmul.f32 %v2273_v30, %v2206_v1  ;;  %v2208_v20 = vpop.f32.mrb[10].mxu1 }
 0x47b   : > { %v2288_v0 = vmul.f32 %v2276_v5, %v2208_v20  ;;  %v2210_v38 = vpop.f32.mrb[11].mxu1 }
 0x47c   : > { %v4176_v27 = vpack.c.bf16 %v2285_v34, %v2284_v12  ;;  %v2289_v59 = vmul.f32 %v2277_v44, %v2210_v38  ;;  %v2255_v23 = vpop.f32.mrb[12].mxu0 }
 0x47d   : > { %v2286_v48 = vmul.f32 %v2274_v35, %v2255_v23  ;;  %v2257_v37 = vpop.f32.mrb[13].mxu0  ;;  %v4479_v57 = vpack.c.bf16 %v2288_v0, %v2284_v12 }
 0x47e   : > { %v5830_v11 = vpack.c.bf16 %v2289_v59, %v2288_v0  ;;  %v2287_v15 = vmul.f32 %v2275_v53, %v2257_v37  ;;  %v2259_v13 = vpop.f32.mrb[14].mxu0  ;;  %2366 = vrot.lane.b32.xlu0 %v4176_v27, %s4817_s9  ;;  %v4480_v55 = vpack.c.bf16 %v2289_v59, %v2285_v34 }
 0x47f   : > { %v2290_v39 = vmul.f32 %v2278_v6, %v2259_v13  ;;  %v2261_v54 = vpop.f32.mrb[15].mxu0 }
 0x480   : > { %v4177_v26 = vpack.c.bf16 %v2287_v15, %v2286_v48  ;;  %v2291_v28 = vmul.f32 %v2279_v49, %v2261_v54  ;;  %v2214_v9 = vpop.f32.mrb[12].mxu1  ;;  %3065 = vmatprep.subr.bf16.mxu1 %v4480_v55 }
 0x481   : > { %v2292_v60 = vmul.f32 %v2280_v40, %v2214_v9  ;;  %v2216_v61 = vpop.f32.mrb[13].mxu1  ;;  %3066 = vmatpush1.bf16.msra.mxu1 %v4479_v57 }
 0x482   : > { %2337 = vst [vmem:[#allocation7 + $0x8] sm:$0xff] %v4177_v26  ;;  %v4179_v51 = vpack.c.bf16 %v2291_v28, %v2290_v39  ;;  %2368 = vrot.lane.b32.xlu1 %v4177_v26, %s4817_s9  ;;  %2417 = vrot.lane.b32.xlu0 %v4176_v27, %s4816_s19  ;;  %v2293_v56 = vmul.f32 %v2281_v17, %v2216_v61  ;;  %v2218_v36 = vpop.f32.mrb[14].mxu1 }
 0x483   : > { %v2219_v33 = vpop.f32.mrb[15].mxu1 }
 0x484   : > { %2339 = vst [vmem:[#allocation7 + $0x18] sm:$0xff] %v4179_v51  ;;  %v5835_v16 = vpack.c.bf16 %v2293_v56, %v2292_v60  ;;  %v2265_v31 = vpop.f32.mrb[16].mxu0  ;;  %v3733_v56 = vld [vmem:[%s5177_s13] sm:$0xff] }
 0x485   : > { %v2294_v29 = vmul.f32 %v2282_v14, %v2265_v31  ;;  %v2267_v43 = vpop.f32.mrb[17].mxu0  ;;  %v3736_v31 = vld [vmem:[%s5177_s13 + $0x18] sm:$0xff] }
 0x486   : > { %2419 = vrot.lane.b32.xlu1 %v4177_v26, %s4816_s19  ;;  %2468 = vrot.lane.b32.xlu0 %v4176_v27, %s4818_s25  ;;  %v2295_v62 = vmul.f32 %v2283_v19, %v2267_v43  ;;  %v2269_v25 = vpop.f32.mrb[18].mxu0 }
 0x487   : > { %v2270_v41 = vpop.f32.mrb[19].mxu0 }
 0x488   : > { %v5839_v24 = vpack.c.bf16 %v2295_v62, %v2294_v29  ;;  %v3735_v29 = vld [vmem:[%s5177_s13 + $0x10] sm:$0xff] }
 0x489   : > { %v2343_v32 = vld [vmem:[#allocation7 + $0x8] sm:$0xf] }
 0x48a   : > { %2349 = vst [vmem:[#allocation4 + $0x8] sm:$0xf] %v2343_v32  ;;  %2470 = vrot.lane.b32.xlu1 %v4177_v26, %s4818_s25  ;;  %2519 = vrot.lane.b32.xlu0 %v4176_v27, %s4819_s14  ;;  %2341 = vst [vmem:[#allocation7 + $0x28] sm:$0xff] %v5839_v24 }
 0x48b   : > { %v2345_v58 = vld [vmem:[#allocation7 + $0x18] sm:$0xf] }
 0x48c   : > { %2351 = vst [vmem:[#allocation4 + $0x14] sm:$0xf] %v2345_v58 }
 0x48e   : > { %2521 = vrot.lane.b32.xlu1 %v4177_v26, %s4819_s14  ;;  %2570 = vrot.lane.b32.xlu0 %v4176_v27, %s4820_s23 }
 0x491   : > { %v2347_v50 = vld [vmem:[#allocation7 + $0x28] sm:$0xf] }
 0x492   : > { %2572 = vrot.lane.b32.xlu1 %v4177_v26, %s4820_s23  ;;  %2621 = vrot.lane.b32.xlu0 %v4176_v27, %s4821_s17  ;;  %2353 = vst [vmem:[#allocation4 + $0x20] sm:$0xf] %v2347_v50 }
 0x493   : > { %v4425_v63 = vld [vmem:[#allocation4 + $0x8] ss:$12 sps:$4 sm:$0xff]  }
 0x494   : > { %3117 = vmatpush1.bf16.msra.mxu0 %v4425_v63 }
 0x495   : > { %3118 = vmatprep.subr.bf16.mxu0 %v4824_v21 }
 0x496   : > { %2623 = vrot.lane.b32.xlu1 %v4177_v26, %s4821_s17  ;;  %2672 = vrot.lane.b32.xlu0 %v4176_v27, %s4822_s28 }
 0x49a   : > { %2674 = vrot.lane.b32.xlu1 %v4177_v26, %s4822_s28  ;;  %2723 = vrot.lane.b32.xlu0 %v4176_v27, %s4823_s29 }
 0x49e   : > { %2725 = vrot.lane.b32.xlu1 %v4177_v26, %s4823_s29  ;;  %2370 = vrot.lane.b32.xlu0 %v5830_v11, %s4817_s9 }
 0x4a2   : > { %2372 = vrot.lane.b32.xlu1 %v4179_v51, %s4817_s9  ;;  %2421 = vrot.lane.b32.xlu0 %v5830_v11, %s4816_s19 }
 0x4a6   : > { %2423 = vrot.lane.b32.xlu1 %v4179_v51, %s4816_s19  ;;  %2472 = vrot.lane.b32.xlu0 %v5830_v11, %s4818_s25 }
 0x4aa   : > { %2474 = vrot.lane.b32.xlu1 %v4179_v51, %s4818_s25  ;;  %2523 = vrot.lane.b32.xlu0 %v5830_v11, %s4819_s14 }
 0x4ae   : > { %2525 = vrot.lane.b32.xlu1 %v4179_v51, %s4819_s14  ;;  %2574 = vrot.lane.b32.xlu0 %v5830_v11, %s4820_s23 }
 0x4b2   : > { %2576 = vrot.lane.b32.xlu1 %v4179_v51, %s4820_s23  ;;  %2625 = vrot.lane.b32.xlu0 %v5830_v11, %s4821_s17 }
 0x4b6   : > { %2627 = vrot.lane.b32.xlu1 %v4179_v51, %s4821_s17  ;;  %2676 = vrot.lane.b32.xlu0 %v5830_v11, %s4822_s28 }
 0x4ba   : > { %2678 = vrot.lane.b32.xlu1 %v4179_v51, %s4822_s28  ;;  %2727 = vrot.lane.b32.xlu0 %v5830_v11, %s4823_s29 }
 0x4be   : > { %2729 = vrot.lane.b32.xlu1 %v4179_v51, %s4823_s29  ;;  %2374 = vrot.lane.b32.xlu0 %v5835_v16, %s4817_s9  ;;  %v3734_v51 = vld [vmem:[%s5177_s13 + $0x8] sm:$0xff] }
 0x4c2   : > { %2376 = vrot.lane.b32.xlu1 %v5839_v24, %s4817_s9  ;;  %2425 = vrot.lane.b32.xlu0 %v5835_v16, %s4816_s19 }
 0x4c6   : > { %2731 = vrot.lane.b32.xlu1 %v5835_v16, %s4823_s29  ;;  %2476 = vrot.lane.b32.xlu0 %v5835_v16, %s4818_s25 }
 0x4ca   : > { %2427 = vrot.lane.b32.xlu1 %v5839_v24, %s4816_s19  ;;  %2527 = vrot.lane.b32.xlu0 %v5835_v16, %s4819_s14  ;;  %s4832_s19 = smov 36  }
 0x4ce   : > { %2478 = vrot.lane.b32.xlu1 %v5839_v24, %s4818_s25  ;;  %2578 = vrot.lane.b32.xlu0 %v5835_v16, %s4820_s23 }
 0x4d2   : > { %3215 = vrot.lane.b32.xlu1 %v4185_v7, %s4825_s22  ;;  %2629 = vrot.lane.b32.xlu0 %v5835_v16, %s4821_s17 }
 0x4d6   : > { %2529 = vrot.lane.b32.xlu1 %v5839_v24, %s4819_s14  ;;  %2680 = vrot.lane.b32.xlu0 %v5835_v16, %s4822_s28 }
 0x4da   : > { %2580 = vrot.lane.b32.xlu1 %v5839_v24, %s4820_s23  ;;  %3184 = vrot.lane.b32.xlu0 %v4185_v7, %s4823_s29  ;;  %s4252_s23 = smul.u32 24, %s5165_s4 }
 0x4de   : > { %3213 = vrot.lane.b32.xlu1 %v5909_v45, %s4825_s22  ;;  %3182 = vrot.lane.b32.xlu0 %v5909_v45, %s4823_s29 }
 0x4e2   : > { %2631 = vrot.lane.b32.xlu1 %v5839_v24, %s4821_s17  ;;  %3247 = vrot.lane.b32.xlu0 %v4185_v7, %s4826_s26  ;;  %s473_s17 = scalar_lea.vmem [#allocation22], %s4252_s23 }
 0x4e6   : > { %2682 = vrot.lane.b32.xlu1 %v5839_v24, %s4822_s28  ;;  %3245 = vrot.lane.b32.xlu0 %v5909_v45, %s4826_s26  ;;  %s4253_s28 = smul.u32 384, %s4905_s15  ;;  %s4833_s15 = smov [#allocation22]  }
 0x4ea   : > { %3279 = vrot.lane.b32.xlu1 %v4185_v7, %s4827_s2  ;;  %2733 = vrot.lane.b32.xlu0 %v5839_v24, %s4823_s29  ;;  %s3786_s29 = sshll.u32 %s473_s17, 4  ;;  %s6179_s29 = int_to_ptr.vmem [resolvable:$true] %s3786_s29 }
 0x4ee   : > { %3277 = vrot.lane.b32.xlu1 %v5909_v45, %s4827_s2  ;;  %3311 = vrot.lane.b32.xlu0 %v4185_v7, %s4828_s27  ;;  %s6268_s2 = sld [smem:[#allocation34_spill]] }
 0x4f0   : > { %v2367_v42 = vpop.permute.xlu0 %2366 }
 0x4f1   : > { %v2378_v2 = vrot.slane %v2367_v42, 4 }
 0x4f2   : > { %3343 = vrot.lane.b32.xlu1 %v4185_v7, %s4829_s0  ;;  %3309 = vrot.lane.b32.xlu0 %v5909_v45, %s4828_s27 }
 0x4f4   : > { %v2369_v18 = vpop.permute.xlu1 %2368  ;;  %v2418_v8 = vpop.permute.xlu0 %2417 }
 0x4f5   : > { %v2379_v47 = vrot.slane %v2369_v18, 4  ;;  %v2429_v44 = vrot.slane %v2418_v8, 4 }
 0x4f6   : > { %3341 = vrot.lane.b32.xlu1 %v5909_v45, %s4829_s0  ;;  %3375 = vrot.lane.b32.xlu0 %v4185_v7, %s4830_s16  ;;  %s3772_s0 = scalar_lea.sflag [#allocation10], %s5165_s4 }
 0x4f7   : > { %v2384_v30 = vsel %vm543_vm0, %v2378_v2, %v2379_v47  ;;  %v2386_v4 = vsel %vm545_vm2, %v2369_v18, %v2379_v47 }
 0x4f8   : > { %v2385_v5 = vsel %vm545_vm2, %v2367_v42, %v2384_v30  ;;  %2400 = vst [vmem:[#allocation4 + $0x2c] sm:$0xf] %v2386_v4  ;;  %v2420_v12 = vpop.permute.xlu1 %2419  ;;  %v2469_v1 = vpop.permute.xlu0 %2468 }
 0x4f9   : > { %v2430_v34 = vrot.slane %v2420_v12, 4  ;;  %v4074_v20 = vcombine.low %v5835_v16, %v2385_v5  ;;  %v4075_v35 = vcombine.high %v5835_v16, %v2385_v5  ;;  %v2480_v23 = vrot.slane %v2469_v1, 4 }
 0x4fa   : > { %3407 = vrot.lane.b32.xlu1 %v4185_v7, %s4831_s24  ;;  %3373 = vrot.lane.b32.xlu0 %v5909_v45, %s4830_s16  ;;  %s4709_s16 = scalar_lea.vmem %s6179_s29, 384 }
 0x4fb   : > { %v2435_v0 = vsel %vm543_vm0, %v2429_v44, %v2430_v34  ;;  %v2437_v38 = vsel %vm592_vm1, %v2420_v12, %v2430_v34  ;;  %3067 = vmatprep.subr.bf16.mxu1 %v4075_v35  ;;  %p4710_p7 = scmp.ne.s32.totalorder %s6179_s29, %s4709_s16 }
 0x4fc   : > { %v5937_v53 = vsel %vm592_vm1, %v2418_v8, %v2435_v0  ;;  %2451 = vst [vmem:[#allocation4 + $0x50] sm:$0xf] %v2437_v38  ;;  %v2471_v27 = vpop.permute.xlu1 %2470  ;;  %v2520_v59 = vpop.permute.xlu0 %2519  ;;  %3068 = vmatpush1.bf16.msra.mxu1 %v4074_v20 }
 0x4fd   : > { %v2481_v6 = vrot.slane %v2471_v27, 4  ;;  %v2531_v40 = vrot.slane %v2520_v59, 4  ;;  %p4711_p2 = pnand %p4710_p7, %p6269_p9 }
 0x4fe   : > { %3405 = vrot.lane.b32.xlu1 %v5909_v45, %s4831_s24  ;;  %3439 = vrot.lane.b32.xlu0 %v4185_v7, %s4832_s19  ;;  %s4713_s24 = sshll.u32 %s4833_s15, 4  ;;  %s4714_s24 = int_to_ptr.vmem [resolvable:$false] %s4713_s24 }
 0x4ff   : > { %v2486_v48 = vsel %vm543_vm0, %v2480_v23, %v2481_v6  ;;  %v2488_v37 = vsel %vm640_vm4, %v2471_v27, %v2481_v6  ;;  %v4426_v49 = vld [vmem:[#allocation4 + $0x20] ss:$12 sps:$4 sm:$0xff]   ;;  %p4712_p6 = pneg %p4711_p2  ;;  %p4716_p3 = scmp.lt.s32.totalorder %s6179_s29, %s4714_s24 }
 0x500   : > { %v5943_v11 = vsel %vm640_vm4, %v2469_v1, %v2486_v48  ;;  %2502 = vst [vmem:[#allocation4 + $0x74] sm:$0xf] %v2488_v37  ;;  %v2522_v15 = vpop.permute.xlu1 %2521  ;;  %v2571_v13 = vpop.permute.xlu0 %2570  ;;  %3119 = vmatpush1.bf16.msra.mxu0 %v4426_v49 }
 0x501   : > { %v2532_v39 = vrot.slane %v2522_v15, 4  ;;  %3120 = vmatprep.subr.bf16.mxu0 %v4824_v21  ;;  %v2582_v55 = vrot.slane %v2571_v13, 4 }
 0x502   : > { %3437 = vrot.lane.b32.xlu1 %v5909_v45, %s4832_s19  ;;  %3747 = vrot.lane.b32.xlu0 %v3733_v56, %s4828_s27  ;;  %s4715_s19 = scalar_lea.vmem %s4714_s24, 768 }
 0x503   : > { %v2537_v54 = vsel %vm543_vm0, %v2531_v40, %v2532_v39  ;;  %v2539_v17 = vsel %vm687_vm3, %v2522_v15, %v2532_v39  ;;  %p4717_p0 = scmp.lt.s32.totalorder %s4715_s19, %s4709_s16 }
 0x504   : > { %v5950_v26 = vsel %vm687_vm3, %v2520_v59, %v2537_v54  ;;  %2553 = vst [vmem:[#allocation4 + $0x98] sm:$0xf] %v2539_v17  ;;  %v2573_v28 = vpop.permute.xlu1 %2572  ;;  %v2622_v57 = vpop.permute.xlu0 %2621 }
 0x505   : > { %v2583_v9 = vrot.slane %v2573_v28, 4  ;;  %v2633_v33 = vrot.slane %v2622_v57, 4  ;;  %p4718_p4 = por %p4717_p0, %p4716_p3 }
 0x506   : > { %3749 = vrot.lane.b32.xlu1 %v3734_v51, %s4828_s27  ;;  %3751 = vrot.lane.b32.xlu0 %v3735_v29, %s4828_s27 }
 0x507   : > { %v2588_v60 = vsel %vm543_vm0, %v2582_v55, %v2583_v9  ;;  %v2590_v61 = vsel %vm735_vm5, %v2573_v28, %v2583_v9  ;;  %p4719_p8 = pnand %p4718_p4, %p4712_p6 }
 0x508   : > { %v5957_v14 = vsel %vm735_vm5, %v2571_v13, %v2588_v60  ;;  %2604 = vst [vmem:[#allocation4 + $0xbc] sm:$0xf] %v2590_v61  ;;  %v2624_v36 = vpop.permute.xlu1 %2623  ;;  %v2673_v19 = vpop.permute.xlu0 %2672 }
 0x509   : > { %v2634_v16 = vrot.slane %v2624_v36, 4  ;;  %v2684_v32 = vrot.slane %v2673_v19, 4 }
 0x50a   : > { %3753 = vrot.lane.b32.xlu1 %v3736_v31, %s4828_s27  ;;  %s6177_s27 = scalar_lea.hbm %s6268_s2, %s4253_s28 }
 0x50b   : > { %v2639_v43 = vsel %vm543_vm0, %v2633_v33, %v2634_v16  ;;  %v2641_v62 = vsel %vm782_vm6, %v2624_v36, %v2634_v16 }
 0x50c   : > { %v5966_v25 = vsel %vm782_vm6, %v2622_v57, %v2639_v43  ;;  %2655 = vst [vmem:[#allocation4 + $0xe0] sm:$0xf] %v2641_v62  ;;  %v2675_v41 = vpop.permute.xlu1 %2674  ;;  %v2724_v24 = vpop.permute.xlu0 %2723 }
 0x50d   : > { %v2685_v58 = vrot.slane %v2675_v41, 4  ;;  %v2735_v22 = vrot.slane %v2724_v24, 4 }
 0x50f   : > { %v2690_v50 = vsel %vm543_vm0, %v2684_v32, %v2685_v58  ;;  %v2692_v63 = vsel %vm830_vm7, %v2675_v41, %v2685_v58 }
 0x510   : > { %v5973_v3 = vsel %vm830_vm7, %v2673_v19, %v2690_v50  ;;  %2706 = vst [vmem:[#allocation4 + $0x104] sm:$0xf] %v2692_v63  ;;  %v2726_v52 = vpop.permute.xlu1 %2725  ;;  %v2371_v7 = vpop.permute.xlu0 %2370 }
 0x511   : > { %v2736_v10 = vrot.slane %v2726_v52, 4  ;;  %v2380_v2 = vrot.slane %v2371_v7, 4 }
 0x513   : > { %v2741_v45 = vsel %vm543_vm0, %v2735_v22, %v2736_v10  ;;  %v2743_v46 = vsel %vm877_vm8, %v2726_v52, %v2736_v10 }
 0x514   : > { %v5978_v42 = vsel %vm877_vm8, %v2724_v24, %v2741_v45  ;;  %2757 = vst [vmem:[#allocation4 + $0x128] sm:$0xf] %v2743_v46  ;;  %v2373_v18 = vpop.permute.xlu1 %2372  ;;  %v2422_v8 = vpop.permute.xlu0 %2421 }
 0x515   : > { %v2381_v47 = vrot.slane %v2373_v18, 4  ;;  %v2431_v44 = vrot.slane %v2422_v8, 4 }
 0x517   : > { %v2387_v30 = vsel %vm543_vm0, %v2380_v2, %v2381_v47  ;;  %v2389_v4 = vsel %vm545_vm2, %v2373_v18, %v2381_v47 }
 0x518   : > { %v5983_v5 = vsel %vm545_vm2, %v2371_v7, %v2387_v30  ;;  %2402 = vst [vmem:[#allocation4 + $0x38] sm:$0xf] %v2389_v4  ;;  %v2424_v12 = vpop.permute.xlu1 %2423  ;;  %v2473_v1 = vpop.permute.xlu0 %2472 }
 0x519   : > { %v2432_v34 = vrot.slane %v2424_v12, 4  ;;  %v2482_v59 = vrot.slane %v2473_v1, 4 }
 0x51b   : > { %v2438_v20 = vsel %vm543_vm0, %v2431_v44, %v2432_v34  ;;  %v2440_v35 = vsel %vm592_vm1, %v2424_v12, %v2432_v34 }
 0x51c   : > { %v5988_v0 = vsel %vm592_vm1, %v2422_v8, %v2438_v20  ;;  %2453 = vst [vmem:[#allocation4 + $0x5c] sm:$0xf] %v2440_v35  ;;  %v2475_v38 = vpop.permute.xlu1 %2474  ;;  %v2524_v27 = vpop.permute.xlu0 %2523 }
 0x51d   : > { %v2483_v23 = vrot.slane %v2475_v38, 4  ;;  %v2533_v13 = vrot.slane %v2524_v27, 4  ;;  %v4081_v35 = vcombine.high %v5937_v53, %v5988_v0 }
 0x51f   : > { %v2489_v6 = vsel %vm543_vm0, %v2482_v59, %v2483_v23  ;;  %v2491_v48 = vsel %vm640_vm4, %v2475_v38, %v2483_v23 }
 0x520   : > { %v5993_v37 = vsel %vm640_vm4, %v2473_v1, %v2489_v6  ;;  %2504 = vst [vmem:[#allocation4 + $0x80] sm:$0xf] %v2491_v48  ;;  %v2526_v49 = vpop.permute.xlu1 %2525  ;;  %v2575_v15 = vpop.permute.xlu0 %2574  ;;  %v4080_v6 = vcombine.low %v5937_v53, %v5988_v0 }
 0x521   : > { %v2534_v40 = vrot.slane %v2526_v49, 4  ;;  %v2584_v55 = vrot.slane %v2575_v15, 4 }
 0x523   : > { %v2540_v39 = vsel %vm543_vm0, %v2533_v13, %v2534_v40  ;;  %v2542_v54 = vsel %vm687_vm3, %v2526_v49, %v2534_v40 }
 0x524   : > { %v5998_v17 = vsel %vm687_vm3, %v2524_v27, %v2540_v39  ;;  %2555 = vst [vmem:[#allocation4 + $0xa4] sm:$0xf] %v2542_v54  ;;  %v2577_v28 = vpop.permute.xlu1 %2576  ;;  %v2626_v57 = vpop.permute.xlu0 %2625 }
 0x525   : > { %v2585_v9 = vrot.slane %v2577_v28, 4  ;;  %v2635_v19 = vrot.slane %v2626_v57, 4 }
 0x527   : > { %v2591_v60 = vsel %vm543_vm0, %v2584_v55, %v2585_v9  ;;  %v2593_v61 = vsel %vm735_vm5, %v2577_v28, %v2585_v9  ;;  %v4428_v55 = vld [vmem:[#allocation4 + $0x50] ss:$12 sps:$4 sm:$0xff]  }
 0x528   : > { %v6003_v51 = vsel %vm735_vm5, %v2575_v15, %v2591_v60  ;;  %2606 = vst [vmem:[#allocation4 + $0xc8] sm:$0xf] %v2593_v61  ;;  %v2628_v56 = vpop.permute.xlu1 %2627  ;;  %v2677_v36 = vpop.permute.xlu0 %2676 }
 0x529   : > { %v2636_v33 = vrot.slane %v2628_v56, 4  ;;  %v2686_v41 = vrot.slane %v2677_v36, 4 }
 0x52b   : > { %v2642_v16 = vsel %vm543_vm0, %v2635_v19, %v2636_v33  ;;  %v2644_v31 = vsel %vm782_vm6, %v2628_v56, %v2636_v33 }
 0x52c   : > { %v6008_v29 = vsel %vm782_vm6, %v2626_v57, %v2642_v16  ;;  %2657 = vst [vmem:[#allocation4 + $0xec] sm:$0xf] %v2644_v31  ;;  %v2679_v43 = vpop.permute.xlu1 %2678  ;;  %v2728_v62 = vpop.permute.xlu0 %2727  ;;  %v4090_v16 = vcombine.high %v5950_v26, %v5998_v17 }
 0x52d   : > { %v2687_v24 = vrot.slane %v2679_v43, 4  ;;  %v2737_v7 = vrot.slane %v2728_v62, 4 }
 0x52f   : > { %v2693_v32 = vsel %vm543_vm0, %v2686_v41, %v2687_v24  ;;  %v2695_v58 = vsel %vm830_vm7, %v2679_v43, %v2687_v24 }
 0x530   : > { %v6013_v50 = vsel %vm830_vm7, %v2677_v36, %v2693_v32  ;;  %2708 = vst [vmem:[#allocation4 + $0x110] sm:$0xf] %v2695_v58  ;;  %v2730_v63 = vpop.permute.xlu1 %2729  ;;  %v2375_v52 = vpop.permute.xlu0 %2374 }
 0x531   : > { %v2738_v22 = vrot.slane %v2730_v63, 4  ;;  %v2382_v2 = vrot.slane %v2375_v52, 4 }
 0x533   : > { %v2744_v10 = vsel %vm543_vm0, %v2737_v7, %v2738_v22  ;;  %v2746_v45 = vsel %vm877_vm8, %v2730_v63, %v2738_v22 }
 0x534   : > { %v6018_v46 = vsel %vm877_vm8, %v2728_v62, %v2744_v10  ;;  %2759 = vst [vmem:[#allocation4 + $0x134] sm:$0xf] %v2746_v45  ;;  %v2377_v18 = vpop.permute.xlu1 %2376  ;;  %v2426_v8 = vpop.permute.xlu0 %2425 }
 0x535   : > { %v2383_v47 = vrot.slane %v2377_v18, 4  ;;  %v2433_v59 = vrot.slane %v2426_v8, 4 }
 0x537   : > { %v2390_v30 = vsel %vm543_vm0, %v2382_v2, %v2383_v47  ;;  %v2392_v4 = vsel %vm545_vm2, %v2377_v18, %v2383_v47  ;;  %v4431_v47 = vld [vmem:[#allocation4 + $0x98] ss:$12 sps:$4 sm:$0xff]  }
 0x538   : > { %v2391_v12 = vsel %vm545_vm2, %v2375_v52, %v2390_v30  ;;  %2404 = vst [vmem:[#allocation4 + $0x44] sm:$0xf] %v2392_v4  ;;  %v6023_v1 = vpop.permute.xlu1 %2731  ;;  %v2477_v44 = vpop.permute.xlu0 %2476  ;;  %vm3380_vm2 = vcmask 310272  }
 0x539   : > { %v4077_v34 = vcombine.low %v5983_v5, %v2391_v12  ;;  %v4078_v20 = vcombine.high %v5983_v5, %v2391_v12  ;;  %v2484_v39 = vrot.slane %v2477_v44, 4 }
 0x53b   : > { %3069 = vmatprep.subr.bf16.mxu1 %v4078_v20 }
 0x53c   : > { %v2428_v38 = vpop.permute.xlu1 %2427  ;;  %v2528_v27 = vpop.permute.xlu0 %2527  ;;  %3070 = vmatpush1.bf16.msra.mxu1 %v4077_v34 }
 0x53d   : > { %v2434_v23 = vrot.slane %v2428_v38, 4  ;;  %3071 = vmatprep.subr.bf16.mxu1 %v4081_v35  ;;  %v2535_v62 = vrot.slane %v2528_v27, 4 }
 0x53f   : > { %v2441_v48 = vsel %vm543_vm0, %v2433_v59, %v2434_v23  ;;  %v2443_v49 = vsel %vm592_vm1, %v2428_v38, %v2434_v23  ;;  %v4427_v15 = vld [vmem:[#allocation4 + $0x38] ss:$12 sps:$4 sm:$0xff]   ;;  %v4099_v59 = vcombine.high %v5966_v25, %v6008_v29 }
 0x540   : > { %v2442_v5 = vsel %vm592_vm1, %v2426_v8, %v2441_v48  ;;  %2455 = vst [vmem:[#allocation4 + $0x68] sm:$0xf] %v2443_v49  ;;  %v2479_v13 = vpop.permute.xlu1 %2478  ;;  %v2579_v40 = vpop.permute.xlu0 %2578  ;;  %3072 = vmatpush1.bf16.msra.mxu1 %v4080_v6  ;;  %3121 = vmatpush1.bf16.msra.mxu0 %v4427_v15  ;;  %vm3348_vm1 = vcmask 474112  }
 0x541   : > { %v2485_v54 = vrot.slane %v2479_v13, 4  ;;  %v4083_v28 = vcombine.low %v2442_v5, %v5943_v11  ;;  %v4084_v57 = vcombine.high %v2442_v5, %v5943_v11  ;;  %3122 = vmatprep.subr.bf16.mxu0 %v4824_v21  ;;  %v2586_v63 = vrot.slane %v2579_v40, 4 }
 0x543   : > { %v2492_v53 = vsel %vm543_vm0, %v2484_v39, %v2485_v54  ;;  %v2494_v0 = vsel %vm640_vm4, %v2479_v13, %v2485_v54  ;;  %3073 = vmatprep.subr.bf16.mxu1 %v4084_v57  ;;  %v4098_v13 = vcombine.low %v5966_v25, %v6008_v29 }
 0x544   : > { %v2493_v9 = vsel %vm640_vm4, %v2477_v44, %v2492_v53  ;;  %2506 = vst [vmem:[#allocation4 + $0x8c] sm:$0xf] %v2494_v0  ;;  %v3216_v60 = vpop.permute.xlu1 %3215  ;;  %v6040_v61 = vpop.permute.xlu0 %2629  ;;  %3074 = vmatpush1.bf16.msra.mxu1 %v4083_v28  ;;  %3123 = vmatpush1.bf16.msra.mxu0 %v4428_v55  ;;  %vm3561_vm4 = vcmask 588800  }
 0x545   : > { %v3218_v56 = vrot.slane %v3216_v60, 4  ;;  %v4086_v11 = vcombine.low %v5993_v37, %v2493_v9  ;;  %v4087_v36 = vcombine.high %v5993_v37, %v2493_v9  ;;  %3124 = vmatprep.subr.bf16.mxu0 %v4824_v21  ;;  %v4089_v37 = vcombine.low %v5950_v26, %v5998_v17 }
 0x546   : > { %v2637_v49 = vrot.slane %v6040_v61, 4 }
 0x547   : > { %v3222_v19 = vsel %vm3220_vm12, %v3216_v60, %v3218_v56  ;;  %v4429_v33 = vld [vmem:[#allocation4 + $0x68] ss:$12 sps:$4 sm:$0xff]   ;;  %3075 = vmatprep.subr.bf16.mxu1 %v4087_v36  ;;  %v4434_v36 = vld [vmem:[#allocation4 + $0xe0] ss:$12 sps:$4 sm:$0xff]  }
 0x548   : > { %3226 = vst [vmem:[#allocation5 + $0x14] sm:$0xf] %v3222_v19  ;;  %v2530_v31 = vpop.permute.xlu1 %2529  ;;  %v6048_v43 = vpop.permute.xlu0 %2680  ;;  %3076 = vmatpush1.bf16.msra.mxu1 %v4086_v11  ;;  %3125 = vmatpush1.bf16.msra.mxu0 %v4429_v33  ;;  %v2739_v19 = vrot.slane %v6023_v1, 4 }
 0x549   : > { %v2536_v41 = vrot.slane %v2530_v31, 4  ;;  %3077 = vmatprep.subr.bf16.mxu1 %v4090_v16  ;;  %3126 = vmatprep.subr.bf16.mxu0 %v4824_v21  ;;  %v2688_v57 = vrot.slane %v6048_v43, 4 }
 0x54b   : > { %v2543_v24 = vsel %vm543_vm0, %v2535_v62, %v2536_v41  ;;  %v2545_v32 = vsel %vm687_vm3, %v2530_v31, %v2536_v41  ;;  %v4430_v58 = vld [vmem:[#allocation4 + $0x80] ss:$12 sps:$4 sm:$0xff]  }
 0x54c   : > { %v2544_v52 = vsel %vm687_vm3, %v2528_v27, %v2543_v24  ;;  %2557 = vst [vmem:[#allocation4 + $0xb0] sm:$0xf] %v2545_v32  ;;  %v2581_v7 = vpop.permute.xlu1 %2580  ;;  %v3185_v22 = vpop.permute.xlu0 %3184  ;;  %3078 = vmatpush1.bf16.msra.mxu1 %v4089_v37  ;;  %3127 = vmatpush1.bf16.msra.mxu0 %v4430_v58  ;;  %vm3412_vm3 = vcmask 302080  }
 0x54d   : > { %v2587_v10 = vrot.slane %v2581_v7, 4  ;;  %v3187_v45 = vrot.slane %v3185_v22, 4  ;;  %v4092_v18 = vcombine.low %v2544_v52, %v5957_v14  ;;  %v4093_v8 = vcombine.high %v2544_v52, %v5957_v14  ;;  %3128 = vmatprep.subr.bf16.mxu0 %v4824_v21 }
 0x54e   : > { %v4108_v52 = vcombine.high %v5978_v42, %v6018_v46 }
 0x54f   : > { %v2594_v26 = vsel %vm543_vm0, %v2586_v63, %v2587_v10  ;;  %v2596_v17 = vsel %vm735_vm5, %v2581_v7, %v2587_v10  ;;  %v3190_v2 = vsel %vm877_vm8, %v3185_v22, %v3187_v45  ;;  %3079 = vmatprep.subr.bf16.mxu1 %v4093_v8 }
 0x550   : > { %v2595_v30 = vsel %vm735_vm5, %v2579_v40, %v2594_v26  ;;  %2608 = vst [vmem:[#allocation4 + $0xd4] sm:$0xf] %v2596_v17  ;;  %3194 = vst [vmem:[#allocation5 + $0x8] sm:$0xf] %v3190_v2  ;;  %v3214_v4 = vpop.permute.xlu1 %3213  ;;  %v3183_v12 = vpop.permute.xlu0 %3182  ;;  %3080 = vmatpush1.bf16.msra.mxu1 %v4092_v18  ;;  %3129 = vmatpush1.bf16.msra.mxu0 %v4431_v47  ;;  %v4107_v18 = vcombine.low %v5978_v42, %v6018_v46  ;;  %v2764_v42 = vld [vmem:[#allocation16 + $0x10] sm:$0xff] }
 0x551   : > { %v3217_v44 = vrot.slane %v3214_v4, 4  ;;  %v3186_v34 = vrot.slane %v3183_v12, 4  ;;  %v4095_v14 = vcombine.low %v6003_v51, %v2595_v30  ;;  %v4096_v20 = vcombine.high %v6003_v51, %v2595_v30  ;;  %3130 = vmatprep.subr.bf16.mxu0 %v4824_v21  ;;  %v4437_v46 = vld [vmem:[#allocation4 + $0x128] ss:$12 sps:$4 sm:$0xff]  }
 0x553   : > { %v3219_v35 = vsel %vm543_vm0, %v3217_v44, %v3218_v56  ;;  %v3188_v38 = vsel %vm543_vm0, %v3186_v34, %v3187_v45  ;;  %v4432_v27 = vld [vmem:[#allocation4 + $0xb0] ss:$12 sps:$4 sm:$0xff]   ;;  %3081 = vmatprep.subr.bf16.mxu1 %v4096_v20  ;;  %v4440_v34 = vld [vmem:[#allocation16] ss:$8 sps:$4 sm:$0xff]  }
 0x554   : > { %v6071_v23 = vsel %vm3220_vm12, %v3214_v4, %v3219_v35  ;;  %v6074_v6 = vsel %vm877_vm8, %v3183_v12, %v3188_v38  ;;  %v2632_v48 = vpop.permute.xlu1 %2631  ;;  %v3248_v51 = vpop.permute.xlu0 %3247  ;;  %3082 = vmatpush1.bf16.msra.mxu1 %v4095_v14  ;;  %3131 = vmatpush1.bf16.msra.mxu0 %v4432_v27 }
 0x555   : > { %v2638_v15 = vrot.slane %v2632_v48, 4  ;;  %v3250_v5 = vrot.slane %v3248_v51, 4  ;;  %3083 = vmatprep.subr.bf16.mxu1 %v4099_v59  ;;  %3132 = vmatprep.subr.bf16.mxu0 %v4824_v21  ;;  %v4139_v38 = vcombine.high %v6074_v6, %v6071_v23 }
 0x557   : > { %v2645_v40 = vsel %vm543_vm0, %v2637_v49, %v2638_v15  ;;  %v2647_v39 = vsel %vm782_vm6, %v2632_v48, %v2638_v15  ;;  %v3254_v54 = vsel %vm3252_vm13, %v3248_v51, %v3250_v5  ;;  %v4433_v28 = vld [vmem:[#allocation4 + $0xc8] ss:$12 sps:$4 sm:$0xff]   ;;  %v4070_v49 = vcombine.high %v2764_v42, %v2764_v42 }
 0x558   : > { %v2646_v53 = vsel %vm782_vm6, %v6040_v61, %v2645_v40  ;;  %2659 = vst [vmem:[#allocation4 + $0xf8] sm:$0xf] %v2647_v39  ;;  %3258 = vst [vmem:[#allocation5 + $0x20] sm:$0xf] %v3254_v54  ;;  %v2683_v0 = vpop.permute.xlu1 %2682  ;;  %v3246_v55 = vpop.permute.xlu0 %3245  ;;  %3084 = vmatpush1.bf16.msra.mxu1 %v4098_v13  ;;  %3133 = vmatpush1.bf16.msra.mxu0 %v4433_v28  ;;  %v4138_v13 = vcombine.low %v6074_v6, %v6071_v23 }
 0x559   : > { %v2689_v9 = vrot.slane %v2683_v0, 4  ;;  %v3249_v60 = vrot.slane %v3246_v55, 4  ;;  %v4101_v25 = vcombine.low %v2646_v53, %v5973_v3  ;;  %v4102_v29 = vcombine.high %v2646_v53, %v5973_v3  ;;  %3134 = vmatprep.subr.bf16.mxu0 %v4824_v21 }
 0x55b   : > { %v2696_v56 = vsel %vm543_vm0, %v2688_v57, %v2689_v9  ;;  %v2698_v11 = vsel %vm830_vm7, %v2683_v0, %v2689_v9  ;;  %v3251_v61 = vsel %vm543_vm0, %v3249_v60, %v3250_v5  ;;  %3085 = vmatprep.subr.bf16.mxu1 %v4102_v29  ;;  %v4069_v29 = vcombine.low %v2764_v42, %v2764_v42 }
 0x55c   : > { %v2697_v33 = vsel %vm830_vm7, %v6048_v43, %v2696_v56  ;;  %2710 = vst [vmem:[#allocation4 + $0x11c] sm:$0xf] %v2698_v11  ;;  %v6096_v16 = vsel %vm3252_vm13, %v3246_v55, %v3251_v61  ;;  %v3280_v3 = vpop.permute.xlu1 %3279  ;;  %v2734_v31 = vpop.permute.xlu0 %2733  ;;  %3086 = vmatpush1.bf16.msra.mxu1 %v4101_v25  ;;  %3135 = vmatpush1.bf16.msra.mxu0 %v4434_v36  ;;  %v4439_v55 = vld [vmem:[#allocation5 + $0x8] ss:$12 sps:$4 sm:$0xff]  }
 0x55d   : > { %v3282_v62 = vrot.slane %v3280_v3, 4  ;;  %v2740_v41 = vrot.slane %v2734_v31, 4  ;;  %v4104_v37 = vcombine.low %v6013_v50, %v2697_v33  ;;  %v4105_v24 = vcombine.high %v6013_v50, %v2697_v33  ;;  %3136 = vmatprep.subr.bf16.mxu0 %v4824_v21 }
 0x55f   : > { %v3286_v32 = vsel %vm3284_vm14, %v3280_v3, %v3282_v62  ;;  %v2747_v43 = vsel %vm543_vm0, %v2739_v19, %v2740_v41  ;;  %v2749_v58 = vsel %vm877_vm8, %v2734_v31, %v2740_v41  ;;  %v4435_v63 = vld [vmem:[#allocation4 + $0xf8] ss:$12 sps:$4 sm:$0xff]   ;;  %3087 = vmatprep.subr.bf16.mxu1 %v4105_v24 }
 0x560   : > { %3290 = vst [vmem:[#allocation5 + $0x2c] sm:$0xf] %v3286_v32  ;;  %v2748_v7 = vsel %vm877_vm8, %v6023_v1, %v2747_v43  ;;  %2761 = vst [vmem:[#allocation4 + $0x140] sm:$0xf] %v2749_v58  ;;  %v3278_v22 = vpop.permute.xlu1 %3277  ;;  %v3312_v50 = vpop.permute.xlu0 %3311  ;;  %3088 = vmatpush1.bf16.msra.mxu1 %v4104_v37  ;;  %3137 = vmatpush1.bf16.msra.mxu0 %v4435_v63 }
 0x561   : > { %v3281_v10 = vrot.slane %v3278_v22, 4  ;;  %v3314_v45 = vrot.slane %v3312_v50, 4  ;;  %3089 = vmatprep.subr.bf16.mxu1 %v4108_v52  ;;  %3138 = vmatprep.subr.bf16.mxu0 %v4824_v21  ;;  %v4111_v1 = vcombine.high %v2748_v7, %v2748_v7  ;;  %v4110_v2 = vcombine.low %v2748_v7, %v2748_v7  ;;  %v4449_v7 = vld [vmem:[%s6226_s5] sm:$0xff]  }
 0x563   : > { %v3283_v8 = vsel %vm543_vm0, %v3281_v10, %v3282_v62  ;;  %v3318_v26 = vsel %vm3316_vm15, %v3312_v50, %v3314_v45  ;;  %v4436_v17 = vld [vmem:[#allocation4 + $0x110] ss:$12 sps:$4 sm:$0xff]   ;;  %v3057_v35 = vsel %vm543_vm0, %v4110_v2, 0 }
 0x564   : > { %v3285_v47 = vsel %vm3284_vm14, %v3278_v22, %v3283_v8  ;;  %3322 = vst [vmem:[#allocation5 + $0x38] sm:$0xf] %v3318_v26  ;;  %v3344_v30 = vpop.permute.xlu1 %3343  ;;  %v3310_v4 = vpop.permute.xlu0 %3309  ;;  %3090 = vmatpush1.bf16.msra.mxu1 %v4107_v18  ;;  %3139 = vmatpush1.bf16.msra.mxu0 %v4436_v17  ;;  %v4450_v26 = vld [vmem:[%s6226_s5 + $0x8] ss:$0 sps:$4 sm:$0xff]  }
 0x565   : > { %v3346_v12 = vrot.slane %v3344_v30, 4  ;;  %v3313_v44 = vrot.slane %v3310_v4, 4  ;;  %4113 = vmatprep.subr.msk.bf16.mxu1 %vm543_vm0, %v4111_v1  ;;  %3140 = vmatprep.subr.bf16.mxu0 %v4824_v21  ;;  %v4142_v54 = vcombine.high %v6096_v16, %v3285_v47  ;;  %v4141_v9 = vcombine.low %v6096_v16, %v3285_v47 }
 0x567   : > { %v3350_v14 = vsel %vm3348_vm1, %v3344_v30, %v3346_v12  ;;  %v3315_v20 = vsel %vm543_vm0, %v3313_v44, %v3314_v45  ;;  %v4438_v51 = vld [vmem:[#allocation4 + $0x140] ss:$0 sps:$4 sm:$0xff]   ;;  %v4443_v36 = vld [vmem:[#allocation5 + $0x20] ss:$12 sps:$4 sm:$0xff]  }
 0x568   : > { %3354 = vst [vmem:[#allocation5 + $0x44] sm:$0xf] %v3350_v14  ;;  %v3317_v27 = vsel %vm3316_vm15, %v3310_v4, %v3315_v20  ;;  %v3342_v59 = vpop.permute.xlu1 %3341  ;;  %v3376_v48 = vpop.permute.xlu0 %3375  ;;  %3092 = vmatpush1.bf16.msra.mxu1 %v3057_v35  ;;  %3141 = vmatpush1.bf16.msra.mxu0 %v4437_v46  ;;  %v3063_v0 = vsel %vm543_vm0, %v4438_v51, 0  ;;  %v3472_v14 = vld [vmem:[#allocation17] sm:$0xff]  ;;  %v3473_v20 = vld [vmem:[#allocation17 + $0x8] sm:$0xff] }
 0x569   : > { %v3345_v15 = vrot.slane %v3342_v59, 4  ;;  %v3378_v5 = vrot.slane %v3376_v48, 4  ;;  %3577 = vmatprep.subr.bf16.mxu1 %v4139_v38  ;;  %3142 = vmatprep.subr.bf16.mxu0 %v4824_v21  ;;  %v3475_v38 = vld [vmem:[#allocation17 + $0x18] sm:$0xff] }
 0x56b   : > { %v3347_v40 = vsel %vm543_vm0, %v3345_v15, %v3346_v12  ;;  %v3382_v39 = vsel %vm3380_vm2, %v3376_v48, %v3378_v5  ;;  %3098 = vmatmul.mubr.bf16.vlgmr.msra.gmra.mrb[16].mxu1 %v4440_v34  ;;  %v3476_v48 = vld [vmem:[#allocation17 + $0x20] sm:$0xff] }
 0x56c   : > { %v3349_v28 = vsel %vm3348_vm1, %v3342_v59, %v3347_v40  ;;  %3386 = vst [vmem:[#allocation5 + $0x50] sm:$0xf] %v3382_v39  ;;  %v3408_v57 = vpop.permute.xlu1 %3407  ;;  %v3374_v53 = vpop.permute.xlu0 %3373  ;;  %3578 = vmatpush1.bf16.msra.mxu1 %v4138_v13  ;;  %4115 = vmatprep.mubr.msk.bf16.mxu1 %vm2150_vm11, %v4070_v49  ;;  %v3474_v40 = vld [vmem:[#allocation17 + $0x10] sm:$0xff] }
 0x56d   : > { %v3410_v23 = vrot.slane %v3408_v57, 4  ;;  %v3377_v6 = vrot.slane %v3374_v53, 4  ;;  %3143 = vmatpush1.bf16.msra.mxu0 %v3063_v0  ;;  %3579 = vmatprep.subr.bf16.mxu1 %v4142_v54  ;;  %v4145_v19 = vcombine.high %v3317_v27, %v3349_v28  ;;  %v4144_v16 = vcombine.low %v3317_v27, %v3349_v28  ;;  %v3477_v0 = vld [vmem:[#allocation17 + $0x28] sm:$0xff] }
 0x56e   : > { %4222 = vmatprep.subr.bf16.mxu0 %v4439_v55 }
 0x56f   : > { %v3414_v60 = vsel %vm3412_vm3, %v3408_v57, %v3410_v23  ;;  %v3379_v25 = vsel %vm543_vm0, %v3377_v6, %v3378_v5  ;;  %v4444_v24 = vld [vmem:[#allocation5 + $0x38] ss:$12 sps:$4 sm:$0xff]  }
 0x570   : > { %3418 = vst [vmem:[#allocation5 + $0x5c] sm:$0xf] %v3414_v60  ;;  %v3381_v56 = vsel %vm3380_vm2, %v3374_v53, %v3379_v25  ;;  %v3406_v11 = vpop.permute.xlu1 %3405  ;;  %3149 = vmatmul.mubr.bf16.vlgmr.msra.gmra.mrb[20].mxu0 %v4440_v34  ;;  %v3440_v61 = vpop.permute.xlu0 %3439  ;;  %3580 = vmatpush1.bf16.msra.mxu1 %v4141_v9 }
 0x571   : > { %v3409_v33 = vrot.slane %v3406_v11, 4  ;;  %v3442_v3 = vrot.slane %v3440_v61, 4  ;;  %4223 = vmatpush3.bf16.msra.mxu0 %v4439_v55  ;;  %4117 = vmatprep.mubr.msk.bf16.mxu0 %vm2150_vm11, %v4070_v49 }
 0x572   : > { %4224 = vmatprep.subr.bf16.mxu0 %v4443_v36  ;;  %3581 = vmatprep.subr.bf16.mxu1 %v4145_v19 }
 0x573   : > { %v3411_v31 = vsel %vm543_vm0, %v3409_v33, %v3410_v23  ;;  %v3446_v62 = vsel %vm979_vm10, %v3440_v61, %v3442_v3  ;;  %3108 = vmatmul.mubr.bf16.gmra.mrb[20].mxu1 %v4069_v29 }
 0x574   : > { %v3413_v41 = vsel %vm3412_vm3, %v3406_v11, %v3411_v31  ;;  %3450 = vst [vmem:[#allocation5 + $0x68] sm:$0xf] %v3446_v62  ;;  %v3438_v37 = vpop.permute.xlu1 %3437  ;;  %3582 = vmatpush1.bf16.msra.mxu1 %v4144_v16  ;;  %3609 = vmatprep.mubr.bf16.mxu1 %v4824_v21 }
 0x575   : > { %v3441_v32 = vrot.slane %v3438_v37, 4  ;;  %4225 = vmatpush3.bf16.msra.mxu0 %v4443_v36  ;;  %v4147_v43 = vcombine.low %v3381_v56, %v3413_v41  ;;  %v4148_v58 = vcombine.high %v3381_v56, %v3413_v41 }
 0x576   : > { %4226 = vmatprep.subr.bf16.mxu0 %v4444_v24 }
 0x577   : > { %v3443_v63 = vsel %vm543_vm0, %v3441_v32, %v3442_v3  ;;  %v4447_v52 = vld [vmem:[#allocation5 + $0x50] ss:$12 sps:$4 sm:$0xff]   ;;  %3583 = vmatprep.subr.bf16.mxu1 %v4148_v58 }
 0x578   : > { %v3445_v22 = vsel %vm979_vm10, %v3438_v37, %v3443_v63  ;;  %3157 = vmatmul.mubr.bf16.gmra.mrb[24].mxu0 %v4069_v29  ;;  %3584 = vmatpush1.bf16.msra.mxu1 %v4147_v43 }
 0x579   : > { %4227 = vmatpush3.bf16.msra.mxu0 %v4444_v24  ;;  %v4151_v50 = vcombine.high %v3445_v22, %v3445_v22  ;;  %v4150_v10 = vcombine.low %v3445_v22, %v3445_v22  ;;  %4232 = vmatprep.mubr.msk.bf16.mxu0 %vm3561_vm4, %v4449_v7  ;;  %v3748_v22 = vpop.permute.xlu0 %3747 }
 0x57a   : > { %4228 = vmatprep.subr.bf16.mxu0 %v4447_v52 }
 0x57b   : > { %v4448_v45 = vld [vmem:[#allocation5 + $0x68] ss:$0 sps:$4 sm:$0xff]   ;;  %4153 = vmatprep.subr.msk.bf16.mxu1 %vm543_vm0, %v4151_v50  ;;  %v3569_v18 = vsel %vm543_vm0, %v4150_v10, 0 }
 0x57c   : > { %3586 = vmatpush1.bf16.msra.mxu1 %v3569_v18  ;;  %v3575_v8 = vsel %vm543_vm0, %v4448_v45, 0  ;;  %v3479_v50 = vld [vmem:[#allocation17 + $0x38] sm:$0xff] }
 0x57d   : > { %4229 = vmatpush3.bf16.msra.mxu0 %v4447_v52  ;;  %v3478_v52 = vld [vmem:[#allocation17 + $0x30] sm:$0xff] }
 0x57e   : > { %4245 = vmatprep.subr.msk.bf16.mxu0 %vm543_vm0, %v4448_v45 }
 0x57f   : > { %4154 = vmatmul.mubr.msk.bf16.vlgmr.msra.gmra.mrb[16].mxu1 %vm3561_vm4, %v4449_v7 }
 0x580   : > { %3619 = vmatprep.mubr.bf16.mxu1 %v4824_v21 }
 0x581   : > { %4231 = vmatpush3.bf16.msra.mxu0 %v3575_v8 }
 0x584   : > { %4233 = vmatmul.mubr.msk.bf16.vlgmr.msra.gmra.mrb[28].mxu0 %vm3561_vm4, %v4450_v26 }
 0x587   : > { %4155 = vmatmul.mubr.msk.bf16.gmra.mrb[24].mxu1 %vm3561_vm4, %v4450_v26 }
 0x643   : > { %v3150_v17 = vpop.f32.mrb[20].mxu0 }
 0x644   : > { %v3152_v1 = vpop.f32.mrb[21].mxu0 }
 0x645   : > { %v3153_v2 = vpop.f32.mrb[22].mxu0 }
 0x646   : > { %v3155_v47 = vpop.f32.mrb[23].mxu0  ;;  %v6157_v30 = vpop.f32.mrb[20].mxu1 }
 0x647   : > { %v6159_v4 = vpop.f32.mrb[21].mxu1 }
 0x648   : > { %v3113_v12 = vpop.f32.mrb[22].mxu1 }
 0x649   : > { %v3114_v44 = vpop.f32.mrb[23].mxu1  ;;  %v3752_v12 = vpop.permute.xlu0 %3751 }
 0x64b   : > { %v6161_v42 = vpop.f32.mrb[24].mxu0 }
 0x64c   : > { %v3160_v46 = vpop.f32.mrb[25].mxu0 }
 0x64d   : > { %v3161_v34 = vpop.f32.mrb[26].mxu0 }
 0x64e   : > { %v3162_v21 = vpop.f32.mrb[27].mxu0 }
 0x652   : > { %v3611_v35 = vpop.f32.mrb[16].mxu1 }
 0x653   : > { %v3612_v27 = vadd.f32 %v3611_v35, %v3472_v14  ;;  %v3613_v59 = vpop.f32.mrb[17].mxu1  ;;  %v3480_v14 = vld [vmem:[#allocation17 + $0x40] sm:$0xff] }
 0x654   : > { %v3614_v51 = vadd.f32 %v3613_v59, %v3473_v20  ;;  %v3615_v49 = vpop.f32.mrb[18].mxu1 }
 0x655   : > { %v4158_v15 = vmul.f32 -1.442695, %v3612_v27  ;;  %v3616_v5 = vadd.f32 %v3615_v49, %v3475_v38  ;;  %v3617_v13 = vpop.f32.mrb[19].mxu1 }
 0x656   : > { %v4159_v39 = vmul.f32 -1.442695, %v3614_v51  ;;  %v3618_v54 = vadd.f32 %v3617_v13, %v3476_v48 }
 0x657   : > { %v6163_v28 = vpop.f32.mrb[28].mxu0  ;;  %4451 = vpow2.f32 %v4158_v15  ;;  %v4161_v57 = vmul.f32 -1.442695, %v3616_v5 }
 0x658   : > { %v3662_v53 = vpop.f32.mrb[29].mxu0  ;;  %4453 = vpow2.f32 %v4159_v39  ;;  %v4162_v55 = vmul.f32 -1.442695, %v3618_v54  ;;  %v3671_v49 = vadd.f32 %v6163_v28, %v3480_v14 }
 0x659   : > { %v3663_v23 = vadd.f32 %v3662_v53, %v3474_v40  ;;  %v4235_v6 = vpop.f32.mrb[30].mxu0  ;;  %4455 = vpow2.f32 %v4161_v57 }
 0x65a   : > { %v3665_v9 = vpop.f32.mrb[31].mxu0  ;;  %4457 = vpow2.f32 %v4162_v55  ;;  %v3621_v60 = vpop.f32.mrb[24].mxu1 }
 0x65b   : > { %v3678_v25 = vadd.f32 %v3663_v23, %v3150_v17  ;;  %v3666_v29 = vadd.f32 %v3665_v9, %v3477_v0  ;;  %v3623_v56 = vpop.f32.mrb[25].mxu1  ;;  %v3622_v10 = vadd.f32 %v3621_v60, %v3478_v52  ;;  %v3750_v17 = vpop.permute.xlu1 %3749 }
 0x65c   : > { %v3625_v11 = vpop.f32.mrb[26].mxu1  ;;  %v3624_v18 = vadd.f32 %v3623_v56, %v3479_v50  ;;  %v3756_v34 = vsel %vm3316_vm15, %v3748_v22, %v3750_v17  ;;  %v3757_v35 = vsel %vm3316_vm15, %v3750_v17, %v3752_v12 }
 0x65d   : > { %v4160_v61 = vmul.f32 -1.442695, %v3678_v25  ;;  %v3681_v36 = vadd.f32 %v3666_v29, %v3153_v2  ;;  %v3626_v19 = vpop.f32.mrb[27].mxu1 }
 0x65f   : > { %v4163_v33 = vmul.f32 -1.442695, %v3681_v36  ;;  %4459 = vpow2.f32 %v4160_v61  ;;  %v3754_v39 = vpop.permute.xlu1 %3753 }
 0x660   : > { %v3758_v55 = vsel %vm3316_vm15, %v3752_v12, %v3754_v39 }
 0x661   : > { %v4452_v3 = vpop.eup %4451  ;;  %4461 = vpow2.f32 %v4163_v33 }
 0x662   : > { %v4454_v16 = vpop.eup %4453  ;;  %v3700_v37 = vadd.f32 1.0, %v4452_v3 }
 0x663   : > { %v4456_v31 = vpop.eup %4455  ;;  %v3701_v32 = vadd.f32 1.0, %v4454_v16 }
 0x664   : > { %v4458_v62 = vpop.eup %4457  ;;  %v3703_v41 = vadd.f32 1.0, %v4456_v31 }
 0x665   : > { %v3704_v24 = vadd.f32 1.0, %v4458_v62 }
 0x666   : > { %4463 = vrcp.f32 %v3703_v41 }
 0x667   : > { %4465 = vrcp.f32 %v3704_v24 }
 0x668   : > { %4467 = vrcp.f32 %v3700_v37 }
 0x669   : > { %v4460_v43 = vpop.eup %4459  ;;  %4469 = vrcp.f32 %v3701_v32 }
 0x66a   : > { %v3702_v7 = vadd.f32 1.0, %v4460_v43 }
 0x66b   : > { %v4462_v58 = vpop.eup %4461 }
 0x66c   : > { %v3705_v63 = vadd.f32 1.0, %v4462_v58 }
 0x66e   : > { %4471 = vrcp.f32 %v3705_v63 }
 0x66f   : > { %4473 = vrcp.f32 %v3702_v7 }
 0x670   : > { %v4464_v45 = vpop.eup %4463 }
 0x671   : > { %v4466_v8 = vpop.eup %4465  ;;  %v3718_v26 = vmul.f32 %v4464_v45, %v6157_v30 }
 0x672   : > { %v3719_v1 = vmul.f32 %v4466_v8, %v6159_v4  ;;  %v4468_v2 = vpop.eup %4467 }
 0x673   : > { %v3721_v47 = vadd.f32 %v3718_v26, %v3622_v10  ;;  %v4470_v44 = vpop.eup %4469  ;;  %v3737_v20 = vsub.f32 1.0, %v4468_v2  ;;  %v3762_v4 = vmul.f32 %v4468_v2, %v3756_v34 }
 0x674   : > { %v3722_v46 = vadd.f32 %v3719_v1, %v3624_v18  ;;  %v3738_v27 = vsub.f32 1.0, %v4470_v44  ;;  %v3763_v5 = vmul.f32 %v4470_v44, %v3757_v35 }
 0x675   : > { %vm3724_vm0 = vcmp.ge.f32.partialorder %v3721_v47, 0.0  ;;  %v3727_v21 = vmul.f32 0.2, %v3721_v47 }
 0x676   : > { %vm3725_vm5 = vcmp.ge.f32.partialorder %v3722_v46, 0.0  ;;  %v3728_v38 = vmul.f32 0.2, %v3722_v46 }
 0x677   : > { %v3730_v30 = vsel %vm3724_vm0, %v3721_v47, %v3727_v21 }
 0x678   : > { %v4472_v59 = vpop.eup %4471  ;;  %v3740_v48 = vmul.f32 %v3737_v20, %v3730_v30  ;;  %v3731_v51 = vsel %vm3725_vm5, %v3722_v46, %v3728_v38 }
 0x679   : > { %v3720_v15 = vmul.f32 %v4472_v59, %v6161_v42  ;;  %v3741_v13 = vmul.f32 %v3738_v27, %v3731_v51  ;;  %v4474_v54 = vpop.eup %4473 }
 0x67a   : > { %v3765_v40 = vadd.f32 %v3762_v4, %v3740_v48  ;;  %v3739_v28 = vsub.f32 1.0, %v4474_v54  ;;  %v3764_v6 = vmul.f32 %v4474_v54, %v3758_v55 }
 0x67b   : > { %v3723_v57 = vadd.f32 %v3720_v15, %v3671_v49  ;;  %v3766_v53 = vadd.f32 %v3763_v5, %v3741_v13 }
 0x67c   : > { %3768 = vst [vmem:[%s473_s17] sm:$0xff] %v3765_v40 }
 0x67d   : > { %vm3726_vm6 = vcmp.ge.f32.partialorder %v3723_v57, 0.0  ;;  %v3729_v0 = vmul.f32 0.2, %v3723_v57  ;;  %3769 = vst [vmem:[%s473_s17 + $0x8] sm:$0xff] %v3766_v53 }
 0x67f   : > { %v3732_v23 = vsel %vm3726_vm6, %v3723_v57, %v3729_v0 }
 0x680   : > { %v3742_v42 = vmul.f32 %v3739_v28, %v3732_v23 }
 0x682   : > { %v3767_v9 = vadd.f32 %v3764_v6, %v3742_v42 }
 0x684   : > { %3770 = vst [vmem:[%s473_s17 + $0x10] sm:$0xff] %v3767_v9 }
 0x685   : > { %4722 = shalt.err (!%p4719_p8)
}
 0x686   : > { %s4723_s4 = scalar_lea.hbm %s6177_s27, 384  ;;  %s4727_s25 = scalar_lea.hbm %s6268_s2, 768 }
 0x687   : > { %p4724_p5 = scmp.ne.s32.totalorder %s6177_s27, %s4723_s4  ;;  %p4728_p11 = scmp.lt.u32.totalorder %s6177_s27, %s6268_s2 }
 0x688   : > { %p4729_p12 = scmp.lt.u32.totalorder %s4727_s25, %s4723_s4  ;;  %p4731_p7 = scmp.lt.u32.totalorder %s4723_s4, %s6177_s27 }
 0x689   : > { %p4725_p10 = pnand %p4724_p5, %p6269_p9 }
 0x68a   : > { %p4730_p13 = por %p4729_p12, %p4728_p11 }
 0x68b   : > { %p4726_p1 = pneg %p4725_p10 }
 0x68c   : > { %p4732_p2 = por %p4731_p7, %p4730_p13 }
 0x68e   : > { %p4733_p6 = pnand %p4732_p2, %p4726_p1 }
 0x690   : > { %4736 = shalt.err (!%p4733_p6)
}
 0x691   : > { %4282 = dma.vmem_to_hbm [thread:$0]  (%p6269_p9), %s6179_s29, 384, %s6177_s27, %s3772_s0  }
 0x692 PF: > { %s3798_s17 = sand.u32 1, %s4783_s30   ;;  %p6270_p3 = scmp.ne.s32.totalorder %s6254_s20, 0 }
 0x693   : > { %p6271_p0 = scmp.ge.s32.totalorder %s4795_s12, 2  ;;  %s3799_s28 = scalar_lea.sflag [#allocation10], %s3798_s17 }
 0x695   : > { %p4311_p4 = pnand %p6271_p0, %p6270_p3 }
 0x697   : > { %4778 = dma.done.wait (!%p4311_p4), %s3799_s28, 384  }
 0x698   : > { %4780 = vsyncadd (!%p4311_p4), %s3799_s28, 4294966912  ;;  %p28_p8 = scmp.ge.s32.totalorder %s5062_s21, 4   ;;  %s6272_s30 = smov %s4787_s10 }
 0x699   : > { %s6273_s10 = smov %s4791_s11  ;;  %s6274_s11 = smov %s5073_s3 }
 0x69a   : > { %s6275_s12 = smov %s5062_s21  ;;  %30 = sbr.rel (!%p28_p8) target bundleno = 16 (0x10), region = 138 }
 0x6a1   :  { %3804 = vsyncpa [#allocation9], 1 }
 0x6a2   :  { %3806 = vsyncpa [#allocation9 + $0x1], 1 }
 0x6a3   :  { %3807 = vsyncpa [#allocation12], 1 }
 0x6a4   :  { %3809 = vsyncpa [#allocation12 + $0x1], 1 }
 0x6a5   :  { %3810 = vsyncpa [#allocation15], 1 }
 0x6a6   :  { %3811 = vsyncpa [#allocation18], 1 }
 0x6a7   :  { %3812 = vsyncpa [#allocation21], 1 }
 0x6a8   :  { %3813 = vsyncpa [#allocation10], 1 }
 0x6a9   :  { %3815 = vsyncpa [#allocation10 + $0x1], 1 }

</bundles_post_ra>
